<compile_context>
chip_gen: v6e
topology: v6e:2x2x1
jax: 0.10.0
libtpu: 0.0.40
codegen_flags: <defaults>
</compile_context>

<pallas_src>
import functools
import math

import jax
import jax.numpy as jnp
from jax.experimental import pallas as pl
from jax.experimental.pallas import tpu as pltpu

# ---------------- small, deterministic configuration ----------------
NUM_USERS = 16
NUM_ITEMS = 16
NUM_NODES = NUM_USERS + NUM_ITEMS
NUM_COMMUNITY = 8
EMBED_DIM = 32
N_LAYERS = 2
BATCH = 8
WEIGHT_DECAY = 1e-4
# flags_obj.dropout == False -> graph_droped == Graph
# TODO(synk): sparse-graph dropout path (__dropout_x) not implemented; a dense
#             symmetric-normalized Graph is used instead of torch.sparse.


def _softplus(x):
    # stable softplus without relying on log1p lowering: max(x,0)+log(1+exp(-|x|))
    return jnp.maximum(x, 0.0) + jnp.log(1.0 + jnp.exp(-jnp.abs(x)))


def _full_spec(shape):
    # index_map also receives the 4 scalar-prefetch refs -> swallow with *_
    return pl.BlockSpec(tuple(shape), lambda i, *_: (0,) * len(shape))


# ------------------------------------------------------------------
# Fused kernel: propagation (computer()) + gathers + loss.
# ------------------------------------------------------------------
def _fused_kernel(users_ref, adj_ref, inter_ref, dist_ref,          # SMEM (scalar prefetch)
                  graph_ref, theta_u_ref, theta_i_ref,
                  w_u_ref, w_i_ref, uemb_ref, iemb_ref,              # VMEM inputs
                  loss_ref,                                          # (1,1) output
                  theta_merge_scr, z_scr,                            # VMEM scratch
                  *, n_layers, batch, num_users, num_items, weight_decay):
    U, I = num_users, num_items
    N = U + I
    C = theta_u_ref.shape[1]
    B = batch
    L1 = n_layers + 1

    # ---- LightGCN-style community propagation (computer()) ----
    tu = jax.nn.softmax(theta_u_ref[...], axis=-1)        # softmax(theta_user)
    ti = jax.nn.softmax(theta_i_ref[...], axis=-1)        # softmax(theta_item)
    theta = jnp.concatenate([tu, ti], axis=0)             # stays in vregs

    # all_z[0] = (softmax theta_user, softmax theta_item) -> scratch (for gathers)
    z_scr[0:U, :] = tu
    z_scr[U:N, :] = ti

    # hoisted loads + broadcasts of the packed w parameters (rows, 2)
    w1u = jnp.broadcast_to(w_u_ref[:, 0:1], (U, C))
    w2u = jnp.broadcast_to(w_u_ref[:, 1:2], (U, C))
    w1i = jnp.broadcast_to(w_i_ref[:, 0:1], (I, C))
    w2i = jnp.broadcast_to(w_i_ref[:, 1:2], (I, C))

    graph = graph_ref[...]
    theta_sum = theta
    for l in range(1, n_layers + 1):
        theta = jnp.dot(graph, theta, preferred_element_type=jnp.float32)   # Graph @ theta
        theta_sum = theta_sum + theta
        z_scr[l * N:l * N + U, :] = jax.nn.sigmoid(theta[0:U, :] * w1u + w2u)
        z_scr[l * N + U:(l + 1) * N, :] = jax.nn.sigmoid(theta[U:N, :] * w1i + w2i)

    theta_merge_scr[...] = theta_sum * (1.0 / float(L1))   # mean over layers

    # ---- in-kernel gathers; indices live in SMEM (scalar prefetch) ----
    lgc_u_rows, lgc_adj_rows, lgc_int_rows, lgc_dist_rows = [], [], [], []
    ue_rows, ae_rows, ie_rows, de_rows = [], [], [], []
    zu_rows = [[] for _ in range(L1)]
    zi_rows = [[] for _ in range(L1)]
    zd_rows = [[] for _ in range(L1)]
    for b in range(B):
        u = users_ref[b]
        a = adj_ref[b]
        it = inter_ref[b]
        dd = dist_ref[b]
        it_safe = jnp.maximum(it, 0)
        dd_safe = jnp.maximum(dd, 0)
        # get_multi_hop_vector: index == -1 -> zero row
        it_m = jnp.where(it >= 0, 1.0, 0.0)
        dd_m = jnp.where(dd >= 0, 1.0, 0.0)

        lgc_u_rows.append(theta_merge_scr[pl.ds(u, 1), :])
        lgc_adj_rows.append(theta_merge_scr[pl.ds(U + a, 1), :])
        lgc_int_rows.append(theta_merge_scr[pl.ds(U + it_safe, 1), :] * it_m)
        lgc_dist_rows.append(theta_merge_scr[pl.ds(U + dd_safe, 1), :] * dd_m)

        ue_rows.append(uemb_ref[pl.ds(u, 1), :])
        ae_rows.append(iemb_ref[pl.ds(a, 1), :])
        ie_rows.append(iemb_ref[pl.ds(it_safe, 1), :] * it_m)
        de_rows.append(iemb_ref[pl.ds(dd_safe, 1), :] * dd_m)

        for l in range(L1):
            zu_rows[l].append(z_scr[pl.ds(l * N + u, 1), :])
            zi_rows[l].append(z_scr[pl.ds(l * N + U + it_safe, 1), :] * it_m)
            zd_rows[l].append(z_scr[pl.ds(l * N + U + dd_safe, 1), :] * dd_m)

    cat = lambda rows: jnp.concatenate(rows, axis=0)
    lgc_u, lgc_adj = cat(lgc_u_rows), cat(lgc_adj_rows)
    lgc_int, lgc_dist = cat(lgc_int_rows), cat(lgc_dist_rows)
    ue, ae, ie, de = cat(ue_rows), cat(ae_rows), cat(ie_rows), cat(de_rows)
    zu = [cat(r) for r in zu_rows]
    zi = [cat(r) for r in zi_rows]
    zd = [cat(r) for r in zd_rows]

    # ---- loss ----
    rowsum = lambda x: jnp.sum(x, axis=-1, keepdims=True)   # (B, 1)
    ssum = lambda x: jnp.sum(x, keepdims=True)               # (1, 1)

    adj_score = rowsum(lgc_u * lgc_adj)
    int_score = rowsum(lgc_u * lgc_int)
    dist_score = rowsum(lgc_u * lgc_dist)
    gf_int = jax.nn.sigmoid(int_score)
    gf_dist = jax.nn.sigmoid(dist_score)
    # mean(log(1 / sigmoid(adj_score))) == mean(softplus(-adj_score))
    gamma_feature_loss = ssum(_softplus(-adj_score)) / float(B)

    # gamma_structure (the 'adjacent' entry is computed by the torch code but
    # never consumed by forward(), so it is omitted here).
    int_acc = jnp.zeros((B, 1), jnp.float32)
    dist_acc = jnp.zeros((B, 1), jnp.float32)
    for idx in range(n_layers):
        int_acc = int_acc + rowsum(zu[idx] * zi[idx + 1]) + rowsum(zu[idx + 1] * zi[idx])
        dist_acc = dist_acc + rowsum(zu[idx] * zd[idx + 1]) + rowsum(zu[idx + 1] * zd[idx])
    inv_2l = 1.0 / float(2 * n_layers)
    gs_int = int_acc * inv_2l
    gs_dist = dist_acc * inv_2l

    # mean(-logsigmoid(gs_int - gs_dist)) == mean(softplus(gs_dist - gs_int))
    gamma_structure_loss = ssum(_softplus(gs_dist - gs_int)) / float(B)

    intermediate_gamma = 0.5 * (gs_int + gf_int)
    distant_gamma = 0.5 * (gs_dist + gf_dist)
    inv_sum = pl.reciprocal(intermediate_gamma + distant_gamma + 1e-12, approx=True)
    neg_emb = (intermediate_gamma * inv_sum) * ie + (distant_gamma * inv_sum) * de

    pos_scores = rowsum(ue * ae)
    neg_scores = rowsum(ue * neg_emb)
    # BCE(sigmoid(score), {1,0}) via stable softplus.
    # TODO(synk): PyTorch BCELoss clamps each log term at -100; softplus is
    #             finite/stable but unclamped (differs only for |score| > 100).
    bce_loss = (ssum(_softplus(-pos_scores)) + ssum(_softplus(neg_scores))) / float(2 * B)

    rl1 = 0.5 * (ssum(ue * ue) + ssum(ae * ae) + ssum(ie * ie) + ssum(de * de)) / float(B)
    w_u = w_u_ref[...]
    w_i = w_i_ref[...]
    rl2 = 0.5 * (ssum(w_i * w_i) / float(I) + ssum(w_u * w_u) / float(U))
    th_u = theta_u_ref[...]
    th_i = theta_i_ref[...]
    rl3 = 0.5 * (ssum(th_u * th_u) / float(U) + ssum(th_i * th_i) / float(I))
    regular_loss = 10.0 * (weight_decay * (rl1 + rl3) + 0.1 * rl2)

    loss_ref[...] = bce_loss + gamma_feature_loss + 0.01 * gamma_structure_loss + regular_loss


# ------------------------------------------------------------------
# Wrapper: one fused pallas_call; only the tiny w1|w2 packing stays in XLA.
# ------------------------------------------------------------------
@jax.jit
def multi_fawmf_forward(params, graph, users, adjacent, intermediate, distant):
    U, D = params['user_embedding'].shape
    I = params['item_embedding'].shape[0]
    N = U + I
    C = params['theta_user'].shape[1]
    B = users.shape[0]

    # pack w1|w2 into lane-denser (rows, 2) slabs
    w_user = jnp.concatenate([params['w1_user'], params['w2_user']], axis=1)   # (U, 2)
    w_item = jnp.concatenate([params['w1_item'], params['w2_item']], axis=1)   # (I, 2)

    kernel = functools.partial(
        _fused_kernel, n_layers=N_LAYERS, batch=B,
        num_users=U, num_items=I, weight_decay=WEIGHT_DECAY)

    grid_spec = pltpu.PrefetchScalarGridSpec(
        num_scalar_prefetch=4,                         # users, adjacent, intermediate, distant
        grid=(1,),
        in_specs=[_full_spec((N, N)),                  # graph
                  _full_spec((U, C)), _full_spec((I, C)),        # theta_user / theta_item
                  _full_spec((U, 2)), _full_spec((I, 2)),        # packed w_user / w_item
                  _full_spec((U, D)), _full_spec((I, D))],       # embeddings
        out_specs=_full_spec((1, 1)),
        scratch_shapes=[pltpu.VMEM((N, C), jnp.float32),                 # theta_merge
                        pltpu.VMEM(((N_LAYERS + 1) * N, C), jnp.float32)])  # per-layer z

    loss = pl.pallas_call(
        kernel,
        out_shape=jax.ShapeDtypeStruct((1, 1), jnp.float32),
        grid_spec=grid_spec,
        compiler_params=pltpu.CompilerParams(dimension_semantics=("arbitrary",)),
    )(users.astype(jnp.int32), adjacent.astype(jnp.int32),
      intermediate.astype(jnp.int32), distant.astype(jnp.int32),
      graph, params['theta_user'], params['theta_item'],
      w_user, w_item, params['user_embedding'], params['item_embedding'])
    return loss[0, 0]


if __name__ == "__main__":
    key = jax.random.PRNGKey(0)
    ks = jax.random.split(key, 13)

    stdv = 1.0 / math.sqrt(EMBED_DIM)
    params = {
        'user_embedding': jax.random.uniform(ks[0], (NUM_USERS, EMBED_DIM),
                                             jnp.float32, -stdv, stdv),
        'item_embedding': jax.random.uniform(ks[1], (NUM_ITEMS, EMBED_DIM),
                                             jnp.float32, -stdv, stdv),
        'theta_user': jax.random.uniform(ks[2], (NUM_USERS, NUM_COMMUNITY),
                                         jnp.float32, -0.5, 0.5),
        'theta_item': jax.random.uniform(ks[3], (NUM_ITEMS, NUM_COMMUNITY),
                                         jnp.float32, -0.5, 0.5),
        'w1_user': jax.random.uniform(ks[4], (NUM_USERS, 1), jnp.float32, 0.0, 0.1),
        'w2_user': jax.random.uniform(ks[5], (NUM_USERS, 1), jnp.float32, -0.1, 0.1),
        'w1_item': jax.random.uniform(ks[6], (NUM_ITEMS, 1), jnp.float32, 0.0, 0.1),
        'w2_item': jax.random.uniform(ks[7], (NUM_ITEMS, 1), jnp.float32, -0.1, 0.1),
    }

    # Dense stand-in for dataset.origin_Graph: symmetric-normalized bipartite
    # user-item adjacency of size (num_users+num_items)^2.
    R = (jax.random.uniform(ks[8], (NUM_USERS, NUM_ITEMS)) < 0.35).astype(jnp.float32)
    A = jnp.zeros((NUM_NODES, NUM_NODES), jnp.float32)
    A = A.at[:NUM_USERS, NUM_USERS:].set(R).at[NUM_USERS:, :NUM_USERS].set(R.T)
    deg = jnp.clip(jnp.sum(A, axis=1), 1.0, None)
    dinv = 1.0 / jnp.sqrt(deg)
    graph = A * dinv[:, None] * dinv[None, :]

    users = jax.random.randint(ks[9], (BATCH,), 0, NUM_USERS, jnp.int32)
    adjacent_items = jax.random.randint(ks[10], (BATCH,), 0, NUM_ITEMS, jnp.int32)
    intermediate_items = jax.random.randint(ks[11], (BATCH,), -1, NUM_ITEMS, jnp.int32)
    distant_items = jax.random.randint(ks[12], (BATCH,), -1, NUM_ITEMS, jnp.int32)

    loss = multi_fawmf_forward(params, graph, users, adjacent_items,
                               intermediate_items, distant_items)
    loss = jax.block_until_ready(loss)
    assert bool(jnp.isfinite(loss)), f"non-finite loss: {loss}"
    print("KERNEL_OK")
</pallas_src>

<mosaic_0001>
module attributes {stable_mosaic.version = 11 : i64} {
  func.func @_fused_kernel(%arg0: i32, %arg1: memref<8xi32, #tpu.memory_space<smem>>, %arg2: memref<8xi32, #tpu.memory_space<smem>>, %arg3: memref<8xi32, #tpu.memory_space<smem>>, %arg4: memref<8xi32, #tpu.memory_space<smem>>, %arg5: memref<32x32xf32, #tpu.memory_space<vmem>>, %arg6: memref<16x8xf32, #tpu.memory_space<vmem>>, %arg7: memref<16x8xf32, #tpu.memory_space<vmem>>, %arg8: memref<16x2xf32, #tpu.memory_space<vmem>>, %arg9: memref<16x2xf32, #tpu.memory_space<vmem>>, %arg10: memref<16x32xf32, #tpu.memory_space<vmem>>, %arg11: memref<16x32xf32, #tpu.memory_space<vmem>>, %arg12: memref<1x1xf32, #tpu.memory_space<vmem>>, %arg13: memref<32x8xf32, #tpu.memory_space<vmem>>, %arg14: memref<96x8xf32, #tpu.memory_space<vmem>>) attributes {dimension_semantics = [#tpu.dimension_semantics<arbitrary>], iteration_bounds = array<i64: 1>, scalar_prefetch = 4 : i64, scratch_operands = 2 : i64, tpu.core_type = #tpu.core_type<tc>, window_params = [{pipeline_mode = #tpu.pipeline_mode<synchronous>, transform_indices = @transform_0, window_bounds = array<i64: 32, 32>}, {pipeline_mode = #tpu.pipeline_mode<synchronous>, transform_indices = @transform_1, window_bounds = array<i64: 16, 8>}, {pipeline_mode = #tpu.pipeline_mode<synchronous>, transform_indices = @transform_2, window_bounds = array<i64: 16, 8>}, {pipeline_mode = #tpu.pipeline_mode<synchronous>, transform_indices = @transform_3, window_bounds = array<i64: 16, 2>}, {pipeline_mode = #tpu.pipeline_mode<synchronous>, transform_indices = @transform_4, window_bounds = array<i64: 16, 2>}, {pipeline_mode = #tpu.pipeline_mode<synchronous>, transform_indices = @transform_5, window_bounds = array<i64: 16, 32>}, {pipeline_mode = #tpu.pipeline_mode<synchronous>, transform_indices = @transform_6, window_bounds = array<i64: 16, 32>}, {pipeline_mode = #tpu.pipeline_mode<synchronous>, transform_indices = @transform_7, window_bounds = array<i64: 1, 1>}]} {
    %c0 = arith.constant 0 : index
    %c0_0 = arith.constant 0 : index
    %0 = vector.load %arg6[%c0, %c0_0] : memref<16x8xf32, #tpu.memory_space<vmem>>, vector<16x8xf32>
    %cst = arith.constant dense<0xFF800000> : vector<16xf32>
    %1 = vector.multi_reduction <maximumf>, %0, %cst [1] : vector<16x8xf32> to vector<16xf32>
    %cst_1 = arith.constant 0xFF800000 : f32
    %2 = vector.broadcast %cst_1 : f32 to vector<16xf32>
    %3 = arith.maximumf %2, %1 : vector<16xf32>
    %4 = vector.shape_cast %3 : vector<16xf32> to vector<16x1xf32>
    %5 = vector.broadcast %4 : vector<16x1xf32> to vector<16x8xf32>
    %6 = arith.subf %0, %5 : vector<16x8xf32>
    %7 = math.exp %6 : vector<16x8xf32>
    %cst_2 = arith.constant dense<0.000000e+00> : vector<16xf32>
    %8 = vector.multi_reduction <add>, %7, %cst_2 [1] : vector<16x8xf32> to vector<16xf32>
    %9 = vector.shape_cast %8 : vector<16xf32> to vector<16x1xf32>
    %10 = vector.broadcast %9 : vector<16x1xf32> to vector<16x8xf32>
    %11 = arith.divf %7, %10 : vector<16x8xf32>
    %c0_3 = arith.constant 0 : index
    %c0_4 = arith.constant 0 : index
    %12 = vector.load %arg7[%c0_3, %c0_4] : memref<16x8xf32, #tpu.memory_space<vmem>>, vector<16x8xf32>
    %cst_5 = arith.constant dense<0xFF800000> : vector<16xf32>
    %13 = vector.multi_reduction <maximumf>, %12, %cst_5 [1] : vector<16x8xf32> to vector<16xf32>
    %cst_6 = arith.constant 0xFF800000 : f32
    %14 = vector.broadcast %cst_6 : f32 to vector<16xf32>
    %15 = arith.maximumf %14, %13 : vector<16xf32>
    %16 = vector.shape_cast %15 : vector<16xf32> to vector<16x1xf32>
    %17 = vector.broadcast %16 : vector<16x1xf32> to vector<16x8xf32>
    %18 = arith.subf %12, %17 : vector<16x8xf32>
    %19 = math.exp %18 : vector<16x8xf32>
    %cst_7 = arith.constant dense<0.000000e+00> : vector<16xf32>
    %20 = vector.multi_reduction <add>, %19, %cst_7 [1] : vector<16x8xf32> to vector<16xf32>
    %21 = vector.shape_cast %20 : vector<16xf32> to vector<16x1xf32>
    %22 = vector.broadcast %21 : vector<16x1xf32> to vector<16x8xf32>
    %23 = arith.divf %19, %22 : vector<16x8xf32>
    %24 = tpu.concatenate %11, %23 in 0 : vector<16x8xf32>, vector<16x8xf32> -> vector<32x8xf32>
    %c0_8 = arith.constant 0 : index
    %c0_9 = arith.constant 0 : index
    %25 = vector.load %arg14[%c0_8, %c0_9] : memref<96x8xf32, #tpu.memory_space<vmem>>, vector<16x8xf32>
    tpu.vector_store %arg14[%c0_8, %c0_9], %11 {strides = array<i32>} : memref<96x8xf32, #tpu.memory_space<vmem>>, vector<16x8xf32>,
    %c16 = arith.constant 16 : index
    %c0_10 = arith.constant 0 : index
    %26 = vector.load %arg14[%c16, %c0_10] : memref<96x8xf32, #tpu.memory_space<vmem>>, vector<16x8xf32>
    tpu.vector_store %arg14[%c16, %c0_10], %23 {strides = array<i32>} : memref<96x8xf32, #tpu.memory_space<vmem>>, vector<16x8xf32>,
    %c0_11 = arith.constant 0 : index
    %c0_12 = arith.constant 0 : index
    %27 = vector.load %arg8[%c0_11, %c0_12] : memref<16x2xf32, #tpu.memory_space<vmem>>, vector<16x1xf32>
    %28 = vector.shape_cast %27 : vector<16x1xf32> to vector<16x1xf32>
    %29 = vector.broadcast %28 : vector<16x1xf32> to vector<16x8xf32>
    %c0_13 = arith.constant 0 : index
    %c1 = arith.constant 1 : index
    %30 = vector.load %arg8[%c0_13, %c1] : memref<16x2xf32, #tpu.memory_space<vmem>>, vector<16x1xf32>
    %31 = vector.shape_cast %30 : vector<16x1xf32> to vector<16x1xf32>
    %32 = vector.broadcast %31 : vector<16x1xf32> to vector<16x8xf32>
    %c0_14 = arith.constant 0 : index
    %c0_15 = arith.constant 0 : index
    %33 = vector.load %arg9[%c0_14, %c0_15] : memref<16x2xf32, #tpu.memory_space<vmem>>, vector<16x1xf32>
    %34 = vector.shape_cast %33 : vector<16x1xf32> to vector<16x1xf32>
    %35 = vector.broadcast %34 : vector<16x1xf32> to vector<16x8xf32>
    %c0_16 = arith.constant 0 : index
    %c1_17 = arith.constant 1 : index
    %36 = vector.load %arg9[%c0_16, %c1_17] : memref<16x2xf32, #tpu.memory_space<vmem>>, vector<16x1xf32>
    %37 = vector.shape_cast %36 : vector<16x1xf32> to vector<16x1xf32>
    %38 = vector.broadcast %37 : vector<16x1xf32> to vector<16x8xf32>
    %c0_18 = arith.constant 0 : index
    %c0_19 = arith.constant 0 : index
    %39 = vector.load %arg5[%c0_18, %c0_19] : memref<32x32xf32, #tpu.memory_space<vmem>>, vector<32x32xf32>
    %cst_20 = arith.constant dense<0.000000e+00> : vector<32x8xf32>
    %40 = tpu.matmul %39, %24, %cst_20 {dimension_numbers = #tpu.dot_dimension_numbers<[1], [0], [0], [1], [0, 0, 1, 1], [], []>} : vector<32x32xf32>, vector<32x8xf32>, vector<32x8xf32> -> vector<32x8xf32>
    %41 = arith.addf %24, %40 : vector<32x8xf32>
    %42 = vector.extract_strided_slice %40 {offsets = [0, 0], sizes = [16, 8], strides = [1, 1]} : vector<32x8xf32> to vector<16x8xf32>
    %43 = arith.mulf %42, %29 : vector<16x8xf32>
    %44 = arith.addf %43, %32 : vector<16x8xf32>
    %45 = arith.negf %44 : vector<16x8xf32>
    %46 = math.exp %45 : vector<16x8xf32>
    %cst_21 = arith.constant 1.000000e+00 : f32
    %47 = vector.broadcast %cst_21 : f32 to vector<16x8xf32>
    %48 = arith.addf %47, %46 : vector<16x8xf32>
    %49 = arith.divf %47, %48 : vector<16x8xf32>
    %c32 = arith.constant 32 : index
    %c0_22 = arith.constant 0 : index
    %50 = vector.load %arg14[%c32, %c0_22] : memref<96x8xf32, #tpu.memory_space<vmem>>, vector<16x8xf32>
    tpu.vector_store %arg14[%c32, %c0_22], %49 {strides = array<i32>} : memref<96x8xf32, #tpu.memory_space<vmem>>, vector<16x8xf32>,
    %51 = vector.extract_strided_slice %40 {offsets = [16, 0], sizes = [16, 8], strides = [1, 1]} : vector<32x8xf32> to vector<16x8xf32>
    %52 = arith.mulf %51, %35 : vector<16x8xf32>
    %53 = arith.addf %52, %38 : vector<16x8xf32>
    %54 = arith.negf %53 : vector<16x8xf32>
    %55 = math.exp %54 : vector<16x8xf32>
    %cst_23 = arith.constant 1.000000e+00 : f32
    %56 = vector.broadcast %cst_23 : f32 to vector<16x8xf32>
    %57 = arith.addf %56, %55 : vector<16x8xf32>
    %58 = arith.divf %56, %57 : vector<16x8xf32>
    %c48 = arith.constant 48 : index
    %c0_24 = arith.constant 0 : index
    %59 = vector.load %arg14[%c48, %c0_24] : memref<96x8xf32, #tpu.memory_space<vmem>>, vector<16x8xf32>
    tpu.vector_store %arg14[%c48, %c0_24], %58 {strides = array<i32>} : memref<96x8xf32, #tpu.memory_space<vmem>>, vector<16x8xf32>,
    %cst_25 = arith.constant dense<0.000000e+00> : vector<32x8xf32>
    %60 = tpu.matmul %39, %40, %cst_25 {dimension_numbers = #tpu.dot_dimension_numbers<[1], [0], [0], [1], [0, 0, 1, 1], [], []>} : vector<32x32xf32>, vector<32x8xf32>, vector<32x8xf32> -> vector<32x8xf32>
    %61 = arith.addf %41, %60 : vector<32x8xf32>
    %62 = vector.extract_strided_slice %60 {offsets = [0, 0], sizes = [16, 8], strides = [1, 1]} : vector<32x8xf32> to vector<16x8xf32>
    %63 = arith.mulf %62, %29 : vector<16x8xf32>
    %64 = arith.addf %63, %32 : vector<16x8xf32>
    %65 = arith.negf %64 : vector<16x8xf32>
    %66 = math.exp %65 : vector<16x8xf32>
    %cst_26 = arith.constant 1.000000e+00 : f32
    %67 = vector.broadcast %cst_26 : f32 to vector<16x8xf32>
    %68 = arith.addf %67, %66 : vector<16x8xf32>
    %69 = arith.divf %67, %68 : vector<16x8xf32>
    %c64 = arith.constant 64 : index
    %c0_27 = arith.constant 0 : index
    %70 = vector.load %arg14[%c64, %c0_27] : memref<96x8xf32, #tpu.memory_space<vmem>>, vector<16x8xf32>
    tpu.vector_store %arg14[%c64, %c0_27], %69 {strides = array<i32>} : memref<96x8xf32, #tpu.memory_space<vmem>>, vector<16x8xf32>,
    %71 = vector.extract_strided_slice %60 {offsets = [16, 0], sizes = [16, 8], strides = [1, 1]} : vector<32x8xf32> to vector<16x8xf32>
    %72 = arith.mulf %71, %35 : vector<16x8xf32>
    %73 = arith.addf %72, %38 : vector<16x8xf32>
    %74 = arith.negf %73 : vector<16x8xf32>
    %75 = math.exp %74 : vector<16x8xf32>
    %cst_28 = arith.constant 1.000000e+00 : f32
    %76 = vector.broadcast %cst_28 : f32 to vector<16x8xf32>
    %77 = arith.addf %76, %75 : vector<16x8xf32>
    %78 = arith.divf %76, %77 : vector<16x8xf32>
    %c80 = arith.constant 80 : index
    %c0_29 = arith.constant 0 : index
    %79 = vector.load %arg14[%c80, %c0_29] : memref<96x8xf32, #tpu.memory_space<vmem>>, vector<16x8xf32>
    tpu.vector_store %arg14[%c80, %c0_29], %78 {strides = array<i32>} : memref<96x8xf32, #tpu.memory_space<vmem>>, vector<16x8xf32>,
    %cst_30 = arith.constant 0.333333343 : f32
    %80 = vector.broadcast %cst_30 : f32 to vector<32x8xf32>
    %81 = arith.mulf %61, %80 : vector<32x8xf32>
    %c0_31 = arith.constant 0 : index
    %c0_32 = arith.constant 0 : index
    %82 = vector.load %arg13[%c0_31, %c0_32] : memref<32x8xf32, #tpu.memory_space<vmem>>, vector<32x8xf32>
    tpu.vector_store %arg13[%c0_31, %c0_32], %81 {strides = array<i32>} : memref<32x8xf32, #tpu.memory_space<vmem>>, vector<32x8xf32>,
    %c0_33 = arith.constant 0 : index
    %83 = memref.load %arg1[%c0_33] : memref<8xi32, #tpu.memory_space<smem>>
    %c0_34 = arith.constant 0 : index
    %84 = memref.load %arg2[%c0_34] : memref<8xi32, #tpu.memory_space<smem>>
    %c0_35 = arith.constant 0 : index
    %85 = memref.load %arg3[%c0_35] : memref<8xi32, #tpu.memory_space<smem>>
    %c0_36 = arith.constant 0 : index
    %86 = memref.load %arg4[%c0_36] : memref<8xi32, #tpu.memory_space<smem>>
    %c0_i32 = arith.constant 0 : i32
    %87 = arith.maxsi %85, %c0_i32 : i32
    %c0_i32_37 = arith.constant 0 : i32
    %88 = arith.maxsi %86, %c0_i32_37 : i32
    %c0_i32_38 = arith.constant 0 : i32
    %89 = arith.cmpi sge, %85, %c0_i32_38 : i32
    %cst_39 = arith.constant 1.000000e+00 : f32
    %cst_40 = arith.constant 0.000000e+00 : f32
    %90 = arith.select %89, %cst_39, %cst_40 : f32
    %c0_i32_41 = arith.constant 0 : i32
    %91 = arith.cmpi sge, %86, %c0_i32_41 : i32
    %cst_42 = arith.constant 1.000000e+00 : f32
    %cst_43 = arith.constant 0.000000e+00 : f32
    %92 = arith.select %91, %cst_42, %cst_43 : f32
    %93 = arith.index_cast %83 : i32 to index
    %c0_44 = arith.constant 0 : index
    %94 = vector.load %arg13[%93, %c0_44] : memref<32x8xf32, #tpu.memory_space<vmem>>, vector<1x8xf32>
    %c16_i32 = arith.constant 16 : i32
    %95 = arith.addi %c16_i32, %84 : i32
    %96 = arith.index_cast %95 : i32 to index
    %c0_45 = arith.constant 0 : index
    %97 = vector.load %arg13[%96, %c0_45] : memref<32x8xf32, #tpu.memory_space<vmem>>, vector<1x8xf32>
    %c16_i32_46 = arith.constant 16 : i32
    %98 = arith.addi %c16_i32_46, %87 : i32
    %99 = arith.index_cast %98 : i32 to index
    %c0_47 = arith.constant 0 : index
    %100 = vector.load %arg13[%99, %c0_47] : memref<32x8xf32, #tpu.memory_space<vmem>>, vector<1x8xf32>
    %101 = vector.broadcast %90 : f32 to vector<1x8xf32>
    %102 = arith.mulf %100, %101 : vector<1x8xf32>
    %c16_i32_48 = arith.constant 16 : i32
    %103 = arith.addi %c16_i32_48, %88 : i32
    %104 = arith.index_cast %103 : i32 to index
    %c0_49 = arith.constant 0 : index
    %105 = vector.load %arg13[%104, %c0_49] : memref<32x8xf32, #tpu.memory_space<vmem>>, vector<1x8xf32>
    %106 = vector.broadcast %92 : f32 to vector<1x8xf32>
    %107 = arith.mulf %105, %106 : vector<1x8xf32>
    %108 = arith.index_cast %83 : i32 to index
    %c0_50 = arith.constant 0 : index
    %109 = vector.load %arg10[%108, %c0_50] : memref<16x32xf32, #tpu.memory_space<vmem>>, vector<1x32xf32>
    %110 = arith.index_cast %84 : i32 to index
    %c0_51 = arith.constant 0 : index
    %111 = vector.load %arg11[%110, %c0_51] : memref<16x32xf32, #tpu.memory_space<vmem>>, vector<1x32xf32>
    %112 = arith.index_cast %87 : i32 to index
    %c0_52 = arith.constant 0 : index
    %113 = vector.load %arg11[%112, %c0_52] : memref<16x32xf32, #tpu.memory_space<vmem>>, vector<1x32xf32>
    %114 = vector.broadcast %90 : f32 to vector<1x32xf32>
    %115 = arith.mulf %113, %114 : vector<1x32xf32>
    %116 = arith.index_cast %88 : i32 to index
    %c0_53 = arith.constant 0 : index
    %117 = vector.load %arg11[%116, %c0_53] : memref<16x32xf32, #tpu.memory_space<vmem>>, vector<1x32xf32>
    %118 = vector.broadcast %92 : f32 to vector<1x32xf32>
    %119 = arith.mulf %117, %118 : vector<1x32xf32>
    %c0_i32_54 = arith.constant 0 : i32
    %120 = arith.addi %c0_i32_54, %83 : i32
    %121 = arith.index_cast %120 : i32 to index
    %c0_55 = arith.constant 0 : index
    %122 = vector.load %arg14[%121, %c0_55] : memref<96x8xf32, #tpu.memory_space<vmem>>, vector<1x8xf32>
    %c16_i32_56 = arith.constant 16 : i32
    %123 = arith.addi %c16_i32_56, %87 : i32
    %124 = arith.index_cast %123 : i32 to index
    %c0_57 = arith.constant 0 : index
    %125 = vector.load %arg14[%124, %c0_57] : memref<96x8xf32, #tpu.memory_space<vmem>>, vector<1x8xf32>
    %126 = vector.broadcast %90 : f32 to vector<1x8xf32>
    %127 = arith.mulf %125, %126 : vector<1x8xf32>
    %c16_i32_58 = arith.constant 16 : i32
    %128 = arith.addi %c16_i32_58, %88 : i32
    %129 = arith.index_cast %128 : i32 to index
    %c0_59 = arith.constant 0 : index
    %130 = vector.load %arg14[%129, %c0_59] : memref<96x8xf32, #tpu.memory_space<vmem>>, vector<1x8xf32>
    %131 = vector.broadcast %92 : f32 to vector<1x8xf32>
    %132 = arith.mulf %130, %131 : vector<1x8xf32>
    %c32_i32 = arith.constant 32 : i32
    %133 = arith.addi %c32_i32, %83 : i32
    %134 = arith.index_cast %133 : i32 to index
    %c0_60 = arith.constant 0 : index
    %135 = vector.load %arg14[%134, %c0_60] : memref<96x8xf32, #tpu.memory_space<vmem>>, vector<1x8xf32>
    %c48_i32 = arith.constant 48 : i32
    %136 = arith.addi %c48_i32, %87 : i32
    %137 = arith.index_cast %136 : i32 to index
    %c0_61 = arith.constant 0 : index
    %138 = vector.load %arg14[%137, %c0_61] : memref<96x8xf32, #tpu.memory_space<vmem>>, vector<1x8xf32>
    %139 = vector.broadcast %90 : f32 to vector<1x8xf32>
    %140 = arith.mulf %138, %139 : vector<1x8xf32>
    %c48_i32_62 = arith.constant 48 : i32
    %141 = arith.addi %c48_i32_62, %88 : i32
    %142 = arith.index_cast %141 : i32 to index
    %c0_63 = arith.constant 0 : index
    %143 = vector.load %arg14[%142, %c0_63] : memref<96x8xf32, #tpu.memory_space<vmem>>, vector<1x8xf32>
    %144 = vector.broadcast %92 : f32 to vector<1x8xf32>
    %145 = arith.mulf %143, %144 : vector<1x8xf32>
    %c64_i32 = arith.constant 64 : i32
    %146 = arith.addi %c64_i32, %83 : i32
    %147 = arith.index_cast %146 : i32 to index
    %c0_64 = arith.constant 0 : index
    %148 = vector.load %arg14[%147, %c0_64] : memref<96x8xf32, #tpu.memory_space<vmem>>, vector<1x8xf32>
    %c80_i32 = arith.constant 80 : i32
    %149 = arith.addi %c80_i32, %87 : i32
    %150 = arith.index_cast %149 : i32 to index
    %c0_65 = arith.constant 0 : index
    %151 = vector.load %arg14[%150, %c0_65] : memref<96x8xf32, #tpu.memory_space<vmem>>, vector<1x8xf32>
    %152 = vector.broadcast %90 : f32 to vector<1x8xf32>
    %153 = arith.mulf %151, %152 : vector<1x8xf32>
    %c80_i32_66 = arith.constant 80 : i32
    %154 = arith.addi %c80_i32_66, %88 : i32
    %155 = arith.index_cast %154 : i32 to index
    %c0_67 = arith.constant 0 : index
    %156 = vector.load %arg14[%155, %c0_67] : memref<96x8xf32, #tpu.memory_space<vmem>>, vector<1x8xf32>
    %157 = vector.broadcast %92 : f32 to vector<1x8xf32>
    %158 = arith.mulf %156, %157 : vector<1x8xf32>
    %c1_68 = arith.constant 1 : index
    %159 = memref.load %arg1[%c1_68] : memref<8xi32, #tpu.memory_space<smem>>
    %c1_69 = arith.constant 1 : index
    %160 = memref.load %arg2[%c1_69] : memref<8xi32, #tpu.memory_space<smem>>
    %c1_70 = arith.constant 1 : index
    %161 = memref.load %arg3[%c1_70] : memref<8xi32, #tpu.memory_space<smem>>
    %c1_71 = arith.constant 1 : index
    %162 = memref.load %arg4[%c1_71] : memref<8xi32, #tpu.memory_space<smem>>
    %c0_i32_72 = arith.constant 0 : i32
    %163 = arith.maxsi %161, %c0_i32_72 : i32
    %c0_i32_73 = arith.constant 0 : i32
    %164 = arith.maxsi %162, %c0_i32_73 : i32
    %c0_i32_74 = arith.constant 0 : i32
    %165 = arith.cmpi sge, %161, %c0_i32_74 : i32
    %cst_75 = arith.constant 1.000000e+00 : f32
    %cst_76 = arith.constant 0.000000e+00 : f32
    %166 = arith.select %165, %cst_75, %cst_76 : f32
    %c0_i32_77 = arith.constant 0 : i32
    %167 = arith.cmpi sge, %162, %c0_i32_77 : i32
    %cst_78 = arith.constant 1.000000e+00 : f32
    %cst_79 = arith.constant 0.000000e+00 : f32
    %168 = arith.select %167, %cst_78, %cst_79 : f32
    %169 = arith.index_cast %159 : i32 to index
    %c0_80 = arith.constant 0 : index
    %170 = vector.load %arg13[%169, %c0_80] : memref<32x8xf32, #tpu.memory_space<vmem>>, vector<1x8xf32>
    %c16_i32_81 = arith.constant 16 : i32
    %171 = arith.addi %c16_i32_81, %160 : i32
    %172 = arith.index_cast %171 : i32 to index
    %c0_82 = arith.constant 0 : index
    %173 = vector.load %arg13[%172, %c0_82] : memref<32x8xf32, #tpu.memory_space<vmem>>, vector<1x8xf32>
    %c16_i32_83 = arith.constant 16 : i32
    %174 = arith.addi %c16_i32_83, %163 : i32
    %175 = arith.index_cast %174 : i32 to index
    %c0_84 = arith.constant 0 : index
    %176 = vector.load %arg13[%175, %c0_84] : memref<32x8xf32, #tpu.memory_space<vmem>>, vector<1x8xf32>
    %177 = vector.broadcast %166 : f32 to vector<1x8xf32>
    %178 = arith.mulf %176, %177 : vector<1x8xf32>
    %c16_i32_85 = arith.constant 16 : i32
    %179 = arith.addi %c16_i32_85, %164 : i32
    %180 = arith.index_cast %179 : i32 to index
    %c0_86 = arith.constant 0 : index
    %181 = vector.load %arg13[%180, %c0_86] : memref<32x8xf32, #tpu.memory_space<vmem>>, vector<1x8xf32>
    %182 = vector.broadcast %168 : f32 to vector<1x8xf32>
    %183 = arith.mulf %181, %182 : vector<1x8xf32>
    %184 = arith.index_cast %159 : i32 to index
    %c0_87 = arith.constant 0 : index
    %185 = vector.load %arg10[%184, %c0_87] : memref<16x32xf32, #tpu.memory_space<vmem>>, vector<1x32xf32>
    %186 = arith.index_cast %160 : i32 to index
    %c0_88 = arith.constant 0 : index
    %187 = vector.load %arg11[%186, %c0_88] : memref<16x32xf32, #tpu.memory_space<vmem>>, vector<1x32xf32>
    %188 = arith.index_cast %163 : i32 to index
    %c0_89 = arith.constant 0 : index
    %189 = vector.load %arg11[%188, %c0_89] : memref<16x32xf32, #tpu.memory_space<vmem>>, vector<1x32xf32>
    %190 = vector.broadcast %166 : f32 to vector<1x32xf32>
    %191 = arith.mulf %189, %190 : vector<1x32xf32>
    %192 = arith.index_cast %164 : i32 to index
    %c0_90 = arith.constant 0 : index
    %193 = vector.load %arg11[%192, %c0_90] : memref<16x32xf32, #tpu.memory_space<vmem>>, vector<1x32xf32>
    %194 = vector.broadcast %168 : f32 to vector<1x32xf32>
    %195 = arith.mulf %193, %194 : vector<1x32xf32>
    %c0_i32_91 = arith.constant 0 : i32
    %196 = arith.addi %c0_i32_91, %159 : i32
    %197 = arith.index_cast %196 : i32 to index
    %c0_92 = arith.constant 0 : index
    %198 = vector.load %arg14[%197, %c0_92] : memref<96x8xf32, #tpu.memory_space<vmem>>, vector<1x8xf32>
    %c16_i32_93 = arith.constant 16 : i32
    %199 = arith.addi %c16_i32_93, %163 : i32
    %200 = arith.index_cast %199 : i32 to index
    %c0_94 = arith.constant 0 : index
    %201 = vector.load %arg14[%200, %c0_94] : memref<96x8xf32, #tpu.memory_space<vmem>>, vector<1x8xf32>
    %202 = vector.broadcast %166 : f32 to vector<1x8xf32>
    %203 = arith.mulf %201, %202 : vector<1x8xf32>
    %c16_i32_95 = arith.constant 16 : i32
    %204 = arith.addi %c16_i32_95, %164 : i32
    %205 = arith.index_cast %204 : i32 to index
    %c0_96 = arith.constant 0 : index
    %206 = vector.load %arg14[%205, %c0_96] : memref<96x8xf32, #tpu.memory_space<vmem>>, vector<1x8xf32>
    %207 = vector.broadcast %168 : f32 to vector<1x8xf32>
    %208 = arith.mulf %206, %207 : vector<1x8xf32>
    %c32_i32_97 = arith.constant 32 : i32
    %209 = arith.addi %c32_i32_97, %159 : i32
    %210 = arith.index_cast %209 : i32 to index
    %c0_98 = arith.constant 0 : index
    %211 = vector.load %arg14[%210, %c0_98] : memref<96x8xf32, #tpu.memory_space<vmem>>, vector<1x8xf32>
    %c48_i32_99 = arith.constant 48 : i32
    %212 = arith.addi %c48_i32_99, %163 : i32
    %213 = arith.index_cast %212 : i32 to index
    %c0_100 = arith.constant 0 : index
    %214 = vector.load %arg14[%213, %c0_100] : memref<96x8xf32, #tpu.memory_space<vmem>>, vector<1x8xf32>
    %215 = vector.broadcast %166 : f32 to vector<1x8xf32>
    %216 = arith.mulf %214, %215 : vector<1x8xf32>
    %c48_i32_101 = arith.constant 48 : i32
    %217 = arith.addi %c48_i32_101, %164 : i32
    %218 = arith.index_cast %217 : i32 to index
    %c0_102 = arith.constant 0 : index
    %219 = vector.load %arg14[%218, %c0_102] : memref<96x8xf32, #tpu.memory_space<vmem>>, vector<1x8xf32>
    %220 = vector.broadcast %168 : f32 to vector<1x8xf32>
    %221 = arith.mulf %219, %220 : vector<1x8xf32>
    %c64_i32_103 = arith.constant 64 : i32
    %222 = arith.addi %c64_i32_103, %159 : i32
    %223 = arith.index_cast %222 : i32 to index
    %c0_104 = arith.constant 0 : index
    %224 = vector.load %arg14[%223, %c0_104] : memref<96x8xf32, #tpu.memory_space<vmem>>, vector<1x8xf32>
    %c80_i32_105 = arith.constant 80 : i32
    %225 = arith.addi %c80_i32_105, %163 : i32
    %226 = arith.index_cast %225 : i32 to index
    %c0_106 = arith.constant 0 : index
    %227 = vector.load %arg14[%226, %c0_106] : memref<96x8xf32, #tpu.memory_space<vmem>>, vector<1x8xf32>
    %228 = vector.broadcast %166 : f32 to vector<1x8xf32>
    %229 = arith.mulf %227, %228 : vector<1x8xf32>
    %c80_i32_107 = arith.constant 80 : i32
    %230 = arith.addi %c80_i32_107, %164 : i32
    %231 = arith.index_cast %230 : i32 to index
    %c0_108 = arith.constant 0 : index
    %232 = vector.load %arg14[%231, %c0_108] : memref<96x8xf32, #tpu.memory_space<vmem>>, vector<1x8xf32>
    %233 = vector.broadcast %168 : f32 to vector<1x8xf32>
    %234 = arith.mulf %232, %233 : vector<1x8xf32>
    %c2 = arith.constant 2 : index
    %235 = memref.load %arg1[%c2] : memref<8xi32, #tpu.memory_space<smem>>
    %c2_109 = arith.constant 2 : index
    %236 = memref.load %arg2[%c2_109] : memref<8xi32, #tpu.memory_space<smem>>
    %c2_110 = arith.constant 2 : index
    %237 = memref.load %arg3[%c2_110] : memref<8xi32, #tpu.memory_space<smem>>
    %c2_111 = arith.constant 2 : index
    %238 = memref.load %arg4[%c2_111] : memref<8xi32, #tpu.memory_space<smem>>
    %c0_i32_112 = arith.constant 0 : i32
    %239 = arith.maxsi %237, %c0_i32_112 : i32
    %c0_i32_113 = arith.constant 0 : i32
    %240 = arith.maxsi %238, %c0_i32_113 : i32
    %c0_i32_114 = arith.constant 0 : i32
    %241 = arith.cmpi sge, %237, %c0_i32_114 : i32
    %cst_115 = arith.constant 1.000000e+00 : f32
    %cst_116 = arith.constant 0.000000e+00 : f32
    %242 = arith.select %241, %cst_115, %cst_116 : f32
    %c0_i32_117 = arith.constant 0 : i32
    %243 = arith.cmpi sge, %238, %c0_i32_117 : i32
    %cst_118 = arith.constant 1.000000e+00 : f32
    %cst_119 = arith.constant 0.000000e+00 : f32
    %244 = arith.select %243, %cst_118, %cst_119 : f32
    %245 = arith.index_cast %235 : i32 to index
    %c0_120 = arith.constant 0 : index
    %246 = vector.load %arg13[%245, %c0_120] : memref<32x8xf32, #tpu.memory_space<vmem>>, vector<1x8xf32>
    %c16_i32_121 = arith.constant 16 : i32
    %247 = arith.addi %c16_i32_121, %236 : i32
    %248 = arith.index_cast %247 : i32 to index
    %c0_122 = arith.constant 0 : index
    %249 = vector.load %arg13[%248, %c0_122] : memref<32x8xf32, #tpu.memory_space<vmem>>, vector<1x8xf32>
    %c16_i32_123 = arith.constant 16 : i32
    %250 = arith.addi %c16_i32_123, %239 : i32
    %251 = arith.index_cast %250 : i32 to index
    %c0_124 = arith.constant 0 : index
    %252 = vector.load %arg13[%251, %c0_124] : memref<32x8xf32, #tpu.memory_space<vmem>>, vector<1x8xf32>
    %253 = vector.broadcast %242 : f32 to vector<1x8xf32>
    %254 = arith.mulf %252, %253 : vector<1x8xf32>
    %c16_i32_125 = arith.constant 16 : i32
    %255 = arith.addi %c16_i32_125, %240 : i32
    %256 = arith.index_cast %255 : i32 to index
    %c0_126 = arith.constant 0 : index
    %257 = vector.load %arg13[%256, %c0_126] : memref<32x8xf32, #tpu.memory_space<vmem>>, vector<1x8xf32>
    %258 = vector.broadcast %244 : f32 to vector<1x8xf32>
    %259 = arith.mulf %257, %258 : vector<1x8xf32>
    %260 = arith.index_cast %235 : i32 to index
    %c0_127 = arith.constant 0 : index
    %261 = vector.load %arg10[%260, %c0_127] : memref<16x32xf32, #tpu.memory_space<vmem>>, vector<1x32xf32>
    %262 = arith.index_cast %236 : i32 to index
    %c0_128 = arith.constant 0 : index
    %263 = vector.load %arg11[%262, %c0_128] : memref<16x32xf32, #tpu.memory_space<vmem>>, vector<1x32xf32>
    %264 = arith.index_cast %239 : i32 to index
    %c0_129 = arith.constant 0 : index
    %265 = vector.load %arg11[%264, %c0_129] : memref<16x32xf32, #tpu.memory_space<vmem>>, vector<1x32xf32>
    %266 = vector.broadcast %242 : f32 to vector<1x32xf32>
    %267 = arith.mulf %265, %266 : vector<1x32xf32>
    %268 = arith.index_cast %240 : i32 to index
    %c0_130 = arith.constant 0 : index
    %269 = vector.load %arg11[%268, %c0_130] : memref<16x32xf32, #tpu.memory_space<vmem>>, vector<1x32xf32>
    %270 = vector.broadcast %244 : f32 to vector<1x32xf32>
    %271 = arith.mulf %269, %270 : vector<1x32xf32>
    %c0_i32_131 = arith.constant 0 : i32
    %272 = arith.addi %c0_i32_131, %235 : i32
    %273 = arith.index_cast %272 : i32 to index
    %c0_132 = arith.constant 0 : index
    %274 = vector.load %arg14[%273, %c0_132] : memref<96x8xf32, #tpu.memory_space<vmem>>, vector<1x8xf32>
    %c16_i32_133 = arith.constant 16 : i32
    %275 = arith.addi %c16_i32_133, %239 : i32
    %276 = arith.index_cast %275 : i32 to index
    %c0_134 = arith.constant 0 : index
    %277 = vector.load %arg14[%276, %c0_134] : memref<96x8xf32, #tpu.memory_space<vmem>>, vector<1x8xf32>
    %278 = vector.broadcast %242 : f32 to vector<1x8xf32>
    %279 = arith.mulf %277, %278 : vector<1x8xf32>
    %c16_i32_135 = arith.constant 16 : i32
    %280 = arith.addi %c16_i32_135, %240 : i32
    %281 = arith.index_cast %280 : i32 to index
    %c0_136 = arith.constant 0 : index
    %282 = vector.load %arg14[%281, %c0_136] : memref<96x8xf32, #tpu.memory_space<vmem>>, vector<1x8xf32>
    %283 = vector.broadcast %244 : f32 to vector<1x8xf32>
    %284 = arith.mulf %282, %283 : vector<1x8xf32>
    %c32_i32_137 = arith.constant 32 : i32
    %285 = arith.addi %c32_i32_137, %235 : i32
    %286 = arith.index_cast %285 : i32 to index
    %c0_138 = arith.constant 0 : index
    %287 = vector.load %arg14[%286, %c0_138] : memref<96x8xf32, #tpu.memory_space<vmem>>, vector<1x8xf32>
    %c48_i32_139 = arith.constant 48 : i32
    %288 = arith.addi %c48_i32_139, %239 : i32
    %289 = arith.index_cast %288 : i32 to index
    %c0_140 = arith.constant 0 : index
    %290 = vector.load %arg14[%289, %c0_140] : memref<96x8xf32, #tpu.memory_space<vmem>>, vector<1x8xf32>
    %291 = vector.broadcast %242 : f32 to vector<1x8xf32>
    %292 = arith.mulf %290, %291 : vector<1x8xf32>
    %c48_i32_141 = arith.constant 48 : i32
    %293 = arith.addi %c48_i32_141, %240 : i32
    %294 = arith.index_cast %293 : i32 to index
    %c0_142 = arith.constant 0 : index
    %295 = vector.load %arg14[%294, %c0_142] : memref<96x8xf32, #tpu.memory_space<vmem>>, vector<1x8xf32>
    %296 = vector.broadcast %244 : f32 to vector<1x8xf32>
    %297 = arith.mulf %295, %296 : vector<1x8xf32>
    %c64_i32_143 = arith.constant 64 : i32
    %298 = arith.addi %c64_i32_143, %235 : i32
    %299 = arith.index_cast %298 : i32 to index
    %c0_144 = arith.constant 0 : index
    %300 = vector.load %arg14[%299, %c0_144] : memref<96x8xf32, #tpu.memory_space<vmem>>, vector<1x8xf32>
    %c80_i32_145 = arith.constant 80 : i32
    %301 = arith.addi %c80_i32_145, %239 : i32
    %302 = arith.index_cast %301 : i32 to index
    %c0_146 = arith.constant 0 : index
    %303 = vector.load %arg14[%302, %c0_146] : memref<96x8xf32, #tpu.memory_space<vmem>>, vector<1x8xf32>
    %304 = vector.broadcast %242 : f32 to vector<1x8xf32>
    %305 = arith.mulf %303, %304 : vector<1x8xf32>
    %c80_i32_147 = arith.constant 80 : i32
    %306 = arith.addi %c80_i32_147, %240 : i32
    %307 = arith.index_cast %306 : i32 to index
    %c0_148 = arith.constant 0 : index
    %308 = vector.load %arg14[%307, %c0_148] : memref<96x8xf32, #tpu.memory_space<vmem>>, vector<1x8xf32>
    %309 = vector.broadcast %244 : f32 to vector<1x8xf32>
    %310 = arith.mulf %308, %309 : vector<1x8xf32>
    %c3 = arith.constant 3 : index
    %311 = memref.load %arg1[%c3] : memref<8xi32, #tpu.memory_space<smem>>
    %c3_149 = arith.constant 3 : index
    %312 = memref.load %arg2[%c3_149] : memref<8xi32, #tpu.memory_space<smem>>
    %c3_150 = arith.constant 3 : index
    %313 = memref.load %arg3[%c3_150] : memref<8xi32, #tpu.memory_space<smem>>
    %c3_151 = arith.constant 3 : index
    %314 = memref.load %arg4[%c3_151] : memref<8xi32, #tpu.memory_space<smem>>
    %c0_i32_152 = arith.constant 0 : i32
    %315 = arith.maxsi %313, %c0_i32_152 : i32
    %c0_i32_153 = arith.constant 0 : i32
    %316 = arith.maxsi %314, %c0_i32_153 : i32
    %c0_i32_154 = arith.constant 0 : i32
    %317 = arith.cmpi sge, %313, %c0_i32_154 : i32
    %cst_155 = arith.constant 1.000000e+00 : f32
    %cst_156 = arith.constant 0.000000e+00 : f32
    %318 = arith.select %317, %cst_155, %cst_156 : f32
    %c0_i32_157 = arith.constant 0 : i32
    %319 = arith.cmpi sge, %314, %c0_i32_157 : i32
    %cst_158 = arith.constant 1.000000e+00 : f32
    %cst_159 = arith.constant 0.000000e+00 : f32
    %320 = arith.select %319, %cst_158, %cst_159 : f32
    %321 = arith.index_cast %311 : i32 to index
    %c0_160 = arith.constant 0 : index
    %322 = vector.load %arg13[%321, %c0_160] : memref<32x8xf32, #tpu.memory_space<vmem>>, vector<1x8xf32>
    %c16_i32_161 = arith.constant 16 : i32
    %323 = arith.addi %c16_i32_161, %312 : i32
    %324 = arith.index_cast %323 : i32 to index
    %c0_162 = arith.constant 0 : index
    %325 = vector.load %arg13[%324, %c0_162] : memref<32x8xf32, #tpu.memory_space<vmem>>, vector<1x8xf32>
    %c16_i32_163 = arith.constant 16 : i32
    %326 = arith.addi %c16_i32_163, %315 : i32
    %327 = arith.index_cast %326 : i32 to index
    %c0_164 = arith.constant 0 : index
    %328 = vector.load %arg13[%327, %c0_164] : memref<32x8xf32, #tpu.memory_space<vmem>>, vector<1x8xf32>
    %329 = vector.broadcast %318 : f32 to vector<1x8xf32>
    %330 = arith.mulf %328, %329 : vector<1x8xf32>
    %c16_i32_165 = arith.constant 16 : i32
    %331 = arith.addi %c16_i32_165, %316 : i32
    %332 = arith.index_cast %331 : i32 to index
    %c0_166 = arith.constant 0 : index
    %333 = vector.load %arg13[%332, %c0_166] : memref<32x8xf32, #tpu.memory_space<vmem>>, vector<1x8xf32>
    %334 = vector.broadcast %320 : f32 to vector<1x8xf32>
    %335 = arith.mulf %333, %334 : vector<1x8xf32>
    %336 = arith.index_cast %311 : i32 to index
    %c0_167 = arith.constant 0 : index
    %337 = vector.load %arg10[%336, %c0_167] : memref<16x32xf32, #tpu.memory_space<vmem>>, vector<1x32xf32>
    %338 = arith.index_cast %312 : i32 to index
    %c0_168 = arith.constant 0 : index
    %339 = vector.load %arg11[%338, %c0_168] : memref<16x32xf32, #tpu.memory_space<vmem>>, vector<1x32xf32>
    %340 = arith.index_cast %315 : i32 to index
    %c0_169 = arith.constant 0 : index
    %341 = vector.load %arg11[%340, %c0_169] : memref<16x32xf32, #tpu.memory_space<vmem>>, vector<1x32xf32>
    %342 = vector.broadcast %318 : f32 to vector<1x32xf32>
    %343 = arith.mulf %341, %342 : vector<1x32xf32>
    %344 = arith.index_cast %316 : i32 to index
    %c0_170 = arith.constant 0 : index
    %345 = vector.load %arg11[%344, %c0_170] : memref<16x32xf32, #tpu.memory_space<vmem>>, vector<1x32xf32>
    %346 = vector.broadcast %320 : f32 to vector<1x32xf32>
    %347 = arith.mulf %345, %346 : vector<1x32xf32>
    %c0_i32_171 = arith.constant 0 : i32
    %348 = arith.addi %c0_i32_171, %311 : i32
    %349 = arith.index_cast %348 : i32 to index
    %c0_172 = arith.constant 0 : index
    %350 = vector.load %arg14[%349, %c0_172] : memref<96x8xf32, #tpu.memory_space<vmem>>, vector<1x8xf32>
    %c16_i32_173 = arith.constant 16 : i32
    %351 = arith.addi %c16_i32_173, %315 : i32
    %352 = arith.index_cast %351 : i32 to index
    %c0_174 = arith.constant 0 : index
    %353 = vector.load %arg14[%352, %c0_174] : memref<96x8xf32, #tpu.memory_space<vmem>>, vector<1x8xf32>
    %354 = vector.broadcast %318 : f32 to vector<1x8xf32>
    %355 = arith.mulf %353, %354 : vector<1x8xf32>
    %c16_i32_175 = arith.constant 16 : i32
    %356 = arith.addi %c16_i32_175, %316 : i32
    %357 = arith.index_cast %356 : i32 to index
    %c0_176 = arith.constant 0 : index
    %358 = vector.load %arg14[%357, %c0_176] : memref<96x8xf32, #tpu.memory_space<vmem>>, vector<1x8xf32>
    %359 = vector.broadcast %320 : f32 to vector<1x8xf32>
    %360 = arith.mulf %358, %359 : vector<1x8xf32>
    %c32_i32_177 = arith.constant 32 : i32
    %361 = arith.addi %c32_i32_177, %311 : i32
    %362 = arith.index_cast %361 : i32 to index
    %c0_178 = arith.constant 0 : index
    %363 = vector.load %arg14[%362, %c0_178] : memref<96x8xf32, #tpu.memory_space<vmem>>, vector<1x8xf32>
    %c48_i32_179 = arith.constant 48 : i32
    %364 = arith.addi %c48_i32_179, %315 : i32
    %365 = arith.index_cast %364 : i32 to index
    %c0_180 = arith.constant 0 : index
    %366 = vector.load %arg14[%365, %c0_180] : memref<96x8xf32, #tpu.memory_space<vmem>>, vector<1x8xf32>
    %367 = vector.broadcast %318 : f32 to vector<1x8xf32>
    %368 = arith.mulf %366, %367 : vector<1x8xf32>
    %c48_i32_181 = arith.constant 48 : i32
    %369 = arith.addi %c48_i32_181, %316 : i32
    %370 = arith.index_cast %369 : i32 to index
    %c0_182 = arith.constant 0 : index
    %371 = vector.load %arg14[%370, %c0_182] : memref<96x8xf32, #tpu.memory_space<vmem>>, vector<1x8xf32>
    %372 = vector.broadcast %320 : f32 to vector<1x8xf32>
    %373 = arith.mulf %371, %372 : vector<1x8xf32>
    %c64_i32_183 = arith.constant 64 : i32
    %374 = arith.addi %c64_i32_183, %311 : i32
    %375 = arith.index_cast %374 : i32 to index
    %c0_184 = arith.constant 0 : index
    %376 = vector.load %arg14[%375, %c0_184] : memref<96x8xf32, #tpu.memory_space<vmem>>, vector<1x8xf32>
    %c80_i32_185 = arith.constant 80 : i32
    %377 = arith.addi %c80_i32_185, %315 : i32
    %378 = arith.index_cast %377 : i32 to index
    %c0_186 = arith.constant 0 : index
    %379 = vector.load %arg14[%378, %c0_186] : memref<96x8xf32, #tpu.memory_space<vmem>>, vector<1x8xf32>
    %380 = vector.broadcast %318 : f32 to vector<1x8xf32>
    %381 = arith.mulf %379, %380 : vector<1x8xf32>
    %c80_i32_187 = arith.constant 80 : i32
    %382 = arith.addi %c80_i32_187, %316 : i32
    %383 = arith.index_cast %382 : i32 to index
    %c0_188 = arith.constant 0 : index
    %384 = vector.load %arg14[%383, %c0_188] : memref<96x8xf32, #tpu.memory_space<vmem>>, vector<1x8xf32>
    %385 = vector.broadcast %320 : f32 to vector<1x8xf32>
    %386 = arith.mulf %384, %385 : vector<1x8xf32>
    %c4 = arith.constant 4 : index
    %387 = memref.load %arg1[%c4] : memref<8xi32, #tpu.memory_space<smem>>
    %c4_189 = arith.constant 4 : index
    %388 = memref.load %arg2[%c4_189] : memref<8xi32, #tpu.memory_space<smem>>
    %c4_190 = arith.constant 4 : index
    %389 = memref.load %arg3[%c4_190] : memref<8xi32, #tpu.memory_space<smem>>
    %c4_191 = arith.constant 4 : index
    %390 = memref.load %arg4[%c4_191] : memref<8xi32, #tpu.memory_space<smem>>
    %c0_i32_192 = arith.constant 0 : i32
    %391 = arith.maxsi %389, %c0_i32_192 : i32
    %c0_i32_193 = arith.constant 0 : i32
    %392 = arith.maxsi %390, %c0_i32_193 : i32
    %c0_i32_194 = arith.constant 0 : i32
    %393 = arith.cmpi sge, %389, %c0_i32_194 : i32
    %cst_195 = arith.constant 1.000000e+00 : f32
    %cst_196 = arith.constant 0.000000e+00 : f32
    %394 = arith.select %393, %cst_195, %cst_196 : f32
    %c0_i32_197 = arith.constant 0 : i32
    %395 = arith.cmpi sge, %390, %c0_i32_197 : i32
    %cst_198 = arith.constant 1.000000e+00 : f32
    %cst_199 = arith.constant 0.000000e+00 : f32
    %396 = arith.select %395, %cst_198, %cst_199 : f32
    %397 = arith.index_cast %387 : i32 to index
    %c0_200 = arith.constant 0 : index
    %398 = vector.load %arg13[%397, %c0_200] : memref<32x8xf32, #tpu.memory_space<vmem>>, vector<1x8xf32>
    %c16_i32_201 = arith.constant 16 : i32
    %399 = arith.addi %c16_i32_201, %388 : i32
    %400 = arith.index_cast %399 : i32 to index
    %c0_202 = arith.constant 0 : index
    %401 = vector.load %arg13[%400, %c0_202] : memref<32x8xf32, #tpu.memory_space<vmem>>, vector<1x8xf32>
    %c16_i32_203 = arith.constant 16 : i32
    %402 = arith.addi %c16_i32_203, %391 : i32
    %403 = arith.index_cast %402 : i32 to index
    %c0_204 = arith.constant 0 : index
    %404 = vector.load %arg13[%403, %c0_204] : memref<32x8xf32, #tpu.memory_space<vmem>>, vector<1x8xf32>
    %405 = vector.broadcast %394 : f32 to vector<1x8xf32>
    %406 = arith.mulf %404, %405 : vector<1x8xf32>
    %c16_i32_205 = arith.constant 16 : i32
    %407 = arith.addi %c16_i32_205, %392 : i32
    %408 = arith.index_cast %407 : i32 to index
    %c0_206 = arith.constant 0 : index
    %409 = vector.load %arg13[%408, %c0_206] : memref<32x8xf32, #tpu.memory_space<vmem>>, vector<1x8xf32>
    %410 = vector.broadcast %396 : f32 to vector<1x8xf32>
    %411 = arith.mulf %409, %410 : vector<1x8xf32>
    %412 = arith.index_cast %387 : i32 to index
    %c0_207 = arith.constant 0 : index
    %413 = vector.load %arg10[%412, %c0_207] : memref<16x32xf32, #tpu.memory_space<vmem>>, vector<1x32xf32>
    %414 = arith.index_cast %388 : i32 to index
    %c0_208 = arith.constant 0 : index
    %415 = vector.load %arg11[%414, %c0_208] : memref<16x32xf32, #tpu.memory_space<vmem>>, vector<1x32xf32>
    %416 = arith.index_cast %391 : i32 to index
    %c0_209 = arith.constant 0 : index
    %417 = vector.load %arg11[%416, %c0_209] : memref<16x32xf32, #tpu.memory_space<vmem>>, vector<1x32xf32>
    %418 = vector.broadcast %394 : f32 to vector<1x32xf32>
    %419 = arith.mulf %417, %418 : vector<1x32xf32>
    %420 = arith.index_cast %392 : i32 to index
    %c0_210 = arith.constant 0 : index
    %421 = vector.load %arg11[%420, %c0_210] : memref<16x32xf32, #tpu.memory_space<vmem>>, vector<1x32xf32>
    %422 = vector.broadcast %396 : f32 to vector<1x32xf32>
    %423 = arith.mulf %421, %422 : vector<1x32xf32>
    %c0_i32_211 = arith.constant 0 : i32
    %424 = arith.addi %c0_i32_211, %387 : i32
    %425 = arith.index_cast %424 : i32 to index
    %c0_212 = arith.constant 0 : index
    %426 = vector.load %arg14[%425, %c0_212] : memref<96x8xf32, #tpu.memory_space<vmem>>, vector<1x8xf32>
    %c16_i32_213 = arith.constant 16 : i32
    %427 = arith.addi %c16_i32_213, %391 : i32
    %428 = arith.index_cast %427 : i32 to index
    %c0_214 = arith.constant 0 : index
    %429 = vector.load %arg14[%428, %c0_214] : memref<96x8xf32, #tpu.memory_space<vmem>>, vector<1x8xf32>
    %430 = vector.broadcast %394 : f32 to vector<1x8xf32>
    %431 = arith.mulf %429, %430 : vector<1x8xf32>
    %c16_i32_215 = arith.constant 16 : i32
    %432 = arith.addi %c16_i32_215, %392 : i32
    %433 = arith.index_cast %432 : i32 to index
    %c0_216 = arith.constant 0 : index
    %434 = vector.load %arg14[%433, %c0_216] : memref<96x8xf32, #tpu.memory_space<vmem>>, vector<1x8xf32>
    %435 = vector.broadcast %396 : f32 to vector<1x8xf32>
    %436 = arith.mulf %434, %435 : vector<1x8xf32>
    %c32_i32_217 = arith.constant 32 : i32
    %437 = arith.addi %c32_i32_217, %387 : i32
    %438 = arith.index_cast %437 : i32 to index
    %c0_218 = arith.constant 0 : index
    %439 = vector.load %arg14[%438, %c0_218] : memref<96x8xf32, #tpu.memory_space<vmem>>, vector<1x8xf32>
    %c48_i32_219 = arith.constant 48 : i32
    %440 = arith.addi %c48_i32_219, %391 : i32
    %441 = arith.index_cast %440 : i32 to index
    %c0_220 = arith.constant 0 : index
    %442 = vector.load %arg14[%441, %c0_220] : memref<96x8xf32, #tpu.memory_space<vmem>>, vector<1x8xf32>
    %443 = vector.broadcast %394 : f32 to vector<1x8xf32>
    %444 = arith.mulf %442, %443 : vector<1x8xf32>
    %c48_i32_221 = arith.constant 48 : i32
    %445 = arith.addi %c48_i32_221, %392 : i32
    %446 = arith.index_cast %445 : i32 to index
    %c0_222 = arith.constant 0 : index
    %447 = vector.load %arg14[%446, %c0_222] : memref<96x8xf32, #tpu.memory_space<vmem>>, vector<1x8xf32>
    %448 = vector.broadcast %396 : f32 to vector<1x8xf32>
    %449 = arith.mulf %447, %448 : vector<1x8xf32>
    %c64_i32_223 = arith.constant 64 : i32
    %450 = arith.addi %c64_i32_223, %387 : i32
    %451 = arith.index_cast %450 : i32 to index
    %c0_224 = arith.constant 0 : index
    %452 = vector.load %arg14[%451, %c0_224] : memref<96x8xf32, #tpu.memory_space<vmem>>, vector<1x8xf32>
    %c80_i32_225 = arith.constant 80 : i32
    %453 = arith.addi %c80_i32_225, %391 : i32
    %454 = arith.index_cast %453 : i32 to index
    %c0_226 = arith.constant 0 : index
    %455 = vector.load %arg14[%454, %c0_226] : memref<96x8xf32, #tpu.memory_space<vmem>>, vector<1x8xf32>
    %456 = vector.broadcast %394 : f32 to vector<1x8xf32>
    %457 = arith.mulf %455, %456 : vector<1x8xf32>
    %c80_i32_227 = arith.constant 80 : i32
    %458 = arith.addi %c80_i32_227, %392 : i32
    %459 = arith.index_cast %458 : i32 to index
    %c0_228 = arith.constant 0 : index
    %460 = vector.load %arg14[%459, %c0_228] : memref<96x8xf32, #tpu.memory_space<vmem>>, vector<1x8xf32>
    %461 = vector.broadcast %396 : f32 to vector<1x8xf32>
    %462 = arith.mulf %460, %461 : vector<1x8xf32>
    %c5 = arith.constant 5 : index
    %463 = memref.load %arg1[%c5] : memref<8xi32, #tpu.memory_space<smem>>
    %c5_229 = arith.constant 5 : index
    %464 = memref.load %arg2[%c5_229] : memref<8xi32, #tpu.memory_space<smem>>
    %c5_230 = arith.constant 5 : index
    %465 = memref.load %arg3[%c5_230] : memref<8xi32, #tpu.memory_space<smem>>
    %c5_231 = arith.constant 5 : index
    %466 = memref.load %arg4[%c5_231] : memref<8xi32, #tpu.memory_space<smem>>
    %c0_i32_232 = arith.constant 0 : i32
    %467 = arith.maxsi %465, %c0_i32_232 : i32
    %c0_i32_233 = arith.constant 0 : i32
    %468 = arith.maxsi %466, %c0_i32_233 : i32
    %c0_i32_234 = arith.constant 0 : i32
    %469 = arith.cmpi sge, %465, %c0_i32_234 : i32
    %cst_235 = arith.constant 1.000000e+00 : f32
    %cst_236 = arith.constant 0.000000e+00 : f32
    %470 = arith.select %469, %cst_235, %cst_236 : f32
    %c0_i32_237 = arith.constant 0 : i32
    %471 = arith.cmpi sge, %466, %c0_i32_237 : i32
    %cst_238 = arith.constant 1.000000e+00 : f32
    %cst_239 = arith.constant 0.000000e+00 : f32
    %472 = arith.select %471, %cst_238, %cst_239 : f32
    %473 = arith.index_cast %463 : i32 to index
    %c0_240 = arith.constant 0 : index
    %474 = vector.load %arg13[%473, %c0_240] : memref<32x8xf32, #tpu.memory_space<vmem>>, vector<1x8xf32>
    %c16_i32_241 = arith.constant 16 : i32
    %475 = arith.addi %c16_i32_241, %464 : i32
    %476 = arith.index_cast %475 : i32 to index
    %c0_242 = arith.constant 0 : index
    %477 = vector.load %arg13[%476, %c0_242] : memref<32x8xf32, #tpu.memory_space<vmem>>, vector<1x8xf32>
    %c16_i32_243 = arith.constant 16 : i32
    %478 = arith.addi %c16_i32_243, %467 : i32
    %479 = arith.index_cast %478 : i32 to index
    %c0_244 = arith.constant 0 : index
    %480 = vector.load %arg13[%479, %c0_244] : memref<32x8xf32, #tpu.memory_space<vmem>>, vector<1x8xf32>
    %481 = vector.broadcast %470 : f32 to vector<1x8xf32>
    %482 = arith.mulf %480, %481 : vector<1x8xf32>
    %c16_i32_245 = arith.constant 16 : i32
    %483 = arith.addi %c16_i32_245, %468 : i32
    %484 = arith.index_cast %483 : i32 to index
    %c0_246 = arith.constant 0 : index
    %485 = vector.load %arg13[%484, %c0_246] : memref<32x8xf32, #tpu.memory_space<vmem>>, vector<1x8xf32>
    %486 = vector.broadcast %472 : f32 to vector<1x8xf32>
    %487 = arith.mulf %485, %486 : vector<1x8xf32>
    %488 = arith.index_cast %463 : i32 to index
    %c0_247 = arith.constant 0 : index
    %489 = vector.load %arg10[%488, %c0_247] : memref<16x32xf32, #tpu.memory_space<vmem>>, vector<1x32xf32>
    %490 = arith.index_cast %464 : i32 to index
    %c0_248 = arith.constant 0 : index
    %491 = vector.load %arg11[%490, %c0_248] : memref<16x32xf32, #tpu.memory_space<vmem>>, vector<1x32xf32>
    %492 = arith.index_cast %467 : i32 to index
    %c0_249 = arith.constant 0 : index
    %493 = vector.load %arg11[%492, %c0_249] : memref<16x32xf32, #tpu.memory_space<vmem>>, vector<1x32xf32>
    %494 = vector.broadcast %470 : f32 to vector<1x32xf32>
    %495 = arith.mulf %493, %494 : vector<1x32xf32>
    %496 = arith.index_cast %468 : i32 to index
    %c0_250 = arith.constant 0 : index
    %497 = vector.load %arg11[%496, %c0_250] : memref<16x32xf32, #tpu.memory_space<vmem>>, vector<1x32xf32>
    %498 = vector.broadcast %472 : f32 to vector<1x32xf32>
    %499 = arith.mulf %497, %498 : vector<1x32xf32>
    %c0_i32_251 = arith.constant 0 : i32
    %500 = arith.addi %c0_i32_251, %463 : i32
    %501 = arith.index_cast %500 : i32 to index
    %c0_252 = arith.constant 0 : index
    %502 = vector.load %arg14[%501, %c0_252] : memref<96x8xf32, #tpu.memory_space<vmem>>, vector<1x8xf32>
    %c16_i32_253 = arith.constant 16 : i32
    %503 = arith.addi %c16_i32_253, %467 : i32
    %504 = arith.index_cast %503 : i32 to index
    %c0_254 = arith.constant 0 : index
    %505 = vector.load %arg14[%504, %c0_254] : memref<96x8xf32, #tpu.memory_space<vmem>>, vector<1x8xf32>
    %506 = vector.broadcast %470 : f32 to vector<1x8xf32>
    %507 = arith.mulf %505, %506 : vector<1x8xf32>
    %c16_i32_255 = arith.constant 16 : i32
    %508 = arith.addi %c16_i32_255, %468 : i32
    %509 = arith.index_cast %508 : i32 to index
    %c0_256 = arith.constant 0 : index
    %510 = vector.load %arg14[%509, %c0_256] : memref<96x8xf32, #tpu.memory_space<vmem>>, vector<1x8xf32>
    %511 = vector.broadcast %472 : f32 to vector<1x8xf32>
    %512 = arith.mulf %510, %511 : vector<1x8xf32>
    %c32_i32_257 = arith.constant 32 : i32
    %513 = arith.addi %c32_i32_257, %463 : i32
    %514 = arith.index_cast %513 : i32 to index
    %c0_258 = arith.constant 0 : index
    %515 = vector.load %arg14[%514, %c0_258] : memref<96x8xf32, #tpu.memory_space<vmem>>, vector<1x8xf32>
    %c48_i32_259 = arith.constant 48 : i32
    %516 = arith.addi %c48_i32_259, %467 : i32
    %517 = arith.index_cast %516 : i32 to index
    %c0_260 = arith.constant 0 : index
    %518 = vector.load %arg14[%517, %c0_260] : memref<96x8xf32, #tpu.memory_space<vmem>>, vector<1x8xf32>
    %519 = vector.broadcast %470 : f32 to vector<1x8xf32>
    %520 = arith.mulf %518, %519 : vector<1x8xf32>
    %c48_i32_261 = arith.constant 48 : i32
    %521 = arith.addi %c48_i32_261, %468 : i32
    %522 = arith.index_cast %521 : i32 to index
    %c0_262 = arith.constant 0 : index
    %523 = vector.load %arg14[%522, %c0_262] : memref<96x8xf32, #tpu.memory_space<vmem>>, vector<1x8xf32>
    %524 = vector.broadcast %472 : f32 to vector<1x8xf32>
    %525 = arith.mulf %523, %524 : vector<1x8xf32>
    %c64_i32_263 = arith.constant 64 : i32
    %526 = arith.addi %c64_i32_263, %463 : i32
    %527 = arith.index_cast %526 : i32 to index
    %c0_264 = arith.constant 0 : index
    %528 = vector.load %arg14[%527, %c0_264] : memref<96x8xf32, #tpu.memory_space<vmem>>, vector<1x8xf32>
    %c80_i32_265 = arith.constant 80 : i32
    %529 = arith.addi %c80_i32_265, %467 : i32
    %530 = arith.index_cast %529 : i32 to index
    %c0_266 = arith.constant 0 : index
    %531 = vector.load %arg14[%530, %c0_266] : memref<96x8xf32, #tpu.memory_space<vmem>>, vector<1x8xf32>
    %532 = vector.broadcast %470 : f32 to vector<1x8xf32>
    %533 = arith.mulf %531, %532 : vector<1x8xf32>
    %c80_i32_267 = arith.constant 80 : i32
    %534 = arith.addi %c80_i32_267, %468 : i32
    %535 = arith.index_cast %534 : i32 to index
    %c0_268 = arith.constant 0 : index
    %536 = vector.load %arg14[%535, %c0_268] : memref<96x8xf32, #tpu.memory_space<vmem>>, vector<1x8xf32>
    %537 = vector.broadcast %472 : f32 to vector<1x8xf32>
    %538 = arith.mulf %536, %537 : vector<1x8xf32>
    %c6 = arith.constant 6 : index
    %539 = memref.load %arg1[%c6] : memref<8xi32, #tpu.memory_space<smem>>
    %c6_269 = arith.constant 6 : index
    %540 = memref.load %arg2[%c6_269] : memref<8xi32, #tpu.memory_space<smem>>
    %c6_270 = arith.constant 6 : index
    %541 = memref.load %arg3[%c6_270] : memref<8xi32, #tpu.memory_space<smem>>
    %c6_271 = arith.constant 6 : index
    %542 = memref.load %arg4[%c6_271] : memref<8xi32, #tpu.memory_space<smem>>
    %c0_i32_272 = arith.constant 0 : i32
    %543 = arith.maxsi %541, %c0_i32_272 : i32
    %c0_i32_273 = arith.constant 0 : i32
    %544 = arith.maxsi %542, %c0_i32_273 : i32
    %c0_i32_274 = arith.constant 0 : i32
    %545 = arith.cmpi sge, %541, %c0_i32_274 : i32
    %cst_275 = arith.constant 1.000000e+00 : f32
    %cst_276 = arith.constant 0.000000e+00 : f32
    %546 = arith.select %545, %cst_275, %cst_276 : f32
    %c0_i32_277 = arith.constant 0 : i32
    %547 = arith.cmpi sge, %542, %c0_i32_277 : i32
    %cst_278 = arith.constant 1.000000e+00 : f32
    %cst_279 = arith.constant 0.000000e+00 : f32
    %548 = arith.select %547, %cst_278, %cst_279 : f32
    %549 = arith.index_cast %539 : i32 to index
    %c0_280 = arith.constant 0 : index
    %550 = vector.load %arg13[%549, %c0_280] : memref<32x8xf32, #tpu.memory_space<vmem>>, vector<1x8xf32>
    %c16_i32_281 = arith.constant 16 : i32
    %551 = arith.addi %c16_i32_281, %540 : i32
    %552 = arith.index_cast %551 : i32 to index
    %c0_282 = arith.constant 0 : index
    %553 = vector.load %arg13[%552, %c0_282] : memref<32x8xf32, #tpu.memory_space<vmem>>, vector<1x8xf32>
    %c16_i32_283 = arith.constant 16 : i32
    %554 = arith.addi %c16_i32_283, %543 : i32
    %555 = arith.index_cast %554 : i32 to index
    %c0_284 = arith.constant 0 : index
    %556 = vector.load %arg13[%555, %c0_284] : memref<32x8xf32, #tpu.memory_space<vmem>>, vector<1x8xf32>
    %557 = vector.broadcast %546 : f32 to vector<1x8xf32>
    %558 = arith.mulf %556, %557 : vector<1x8xf32>
    %c16_i32_285 = arith.constant 16 : i32
    %559 = arith.addi %c16_i32_285, %544 : i32
    %560 = arith.index_cast %559 : i32 to index
    %c0_286 = arith.constant 0 : index
    %561 = vector.load %arg13[%560, %c0_286] : memref<32x8xf32, #tpu.memory_space<vmem>>, vector<1x8xf32>
    %562 = vector.broadcast %548 : f32 to vector<1x8xf32>
    %563 = arith.mulf %561, %562 : vector<1x8xf32>
    %564 = arith.index_cast %539 : i32 to index
    %c0_287 = arith.constant 0 : index
    %565 = vector.load %arg10[%564, %c0_287] : memref<16x32xf32, #tpu.memory_space<vmem>>, vector<1x32xf32>
    %566 = arith.index_cast %540 : i32 to index
    %c0_288 = arith.constant 0 : index
    %567 = vector.load %arg11[%566, %c0_288] : memref<16x32xf32, #tpu.memory_space<vmem>>, vector<1x32xf32>
    %568 = arith.index_cast %543 : i32 to index
    %c0_289 = arith.constant 0 : index
    %569 = vector.load %arg11[%568, %c0_289] : memref<16x32xf32, #tpu.memory_space<vmem>>, vector<1x32xf32>
    %570 = vector.broadcast %546 : f32 to vector<1x32xf32>
    %571 = arith.mulf %569, %570 : vector<1x32xf32>
    %572 = arith.index_cast %544 : i32 to index
    %c0_290 = arith.constant 0 : index
    %573 = vector.load %arg11[%572, %c0_290] : memref<16x32xf32, #tpu.memory_space<vmem>>, vector<1x32xf32>
    %574 = vector.broadcast %548 : f32 to vector<1x32xf32>
    %575 = arith.mulf %573, %574 : vector<1x32xf32>
    %c0_i32_291 = arith.constant 0 : i32
    %576 = arith.addi %c0_i32_291, %539 : i32
    %577 = arith.index_cast %576 : i32 to index
    %c0_292 = arith.constant 0 : index
    %578 = vector.load %arg14[%577, %c0_292] : memref<96x8xf32, #tpu.memory_space<vmem>>, vector<1x8xf32>
    %c16_i32_293 = arith.constant 16 : i32
    %579 = arith.addi %c16_i32_293, %543 : i32
    %580 = arith.index_cast %579 : i32 to index
    %c0_294 = arith.constant 0 : index
    %581 = vector.load %arg14[%580, %c0_294] : memref<96x8xf32, #tpu.memory_space<vmem>>, vector<1x8xf32>
    %582 = vector.broadcast %546 : f32 to vector<1x8xf32>
    %583 = arith.mulf %581, %582 : vector<1x8xf32>
    %c16_i32_295 = arith.constant 16 : i32
    %584 = arith.addi %c16_i32_295, %544 : i32
    %585 = arith.index_cast %584 : i32 to index
    %c0_296 = arith.constant 0 : index
    %586 = vector.load %arg14[%585, %c0_296] : memref<96x8xf32, #tpu.memory_space<vmem>>, vector<1x8xf32>
    %587 = vector.broadcast %548 : f32 to vector<1x8xf32>
    %588 = arith.mulf %586, %587 : vector<1x8xf32>
    %c32_i32_297 = arith.constant 32 : i32
    %589 = arith.addi %c32_i32_297, %539 : i32
    %590 = arith.index_cast %589 : i32 to index
    %c0_298 = arith.constant 0 : index
    %591 = vector.load %arg14[%590, %c0_298] : memref<96x8xf32, #tpu.memory_space<vmem>>, vector<1x8xf32>
    %c48_i32_299 = arith.constant 48 : i32
    %592 = arith.addi %c48_i32_299, %543 : i32
    %593 = arith.index_cast %592 : i32 to index
    %c0_300 = arith.constant 0 : index
    %594 = vector.load %arg14[%593, %c0_300] : memref<96x8xf32, #tpu.memory_space<vmem>>, vector<1x8xf32>
    %595 = vector.broadcast %546 : f32 to vector<1x8xf32>
    %596 = arith.mulf %594, %595 : vector<1x8xf32>
    %c48_i32_301 = arith.constant 48 : i32
    %597 = arith.addi %c48_i32_301, %544 : i32
    %598 = arith.index_cast %597 : i32 to index
    %c0_302 = arith.constant 0 : index
    %599 = vector.load %arg14[%598, %c0_302] : memref<96x8xf32, #tpu.memory_space<vmem>>, vector<1x8xf32>
    %600 = vector.broadcast %548 : f32 to vector<1x8xf32>
    %601 = arith.mulf %599, %600 : vector<1x8xf32>
    %c64_i32_303 = arith.constant 64 : i32
    %602 = arith.addi %c64_i32_303, %539 : i32
    %603 = arith.index_cast %602 : i32 to index
    %c0_304 = arith.constant 0 : index
    %604 = vector.load %arg14[%603, %c0_304] : memref<96x8xf32, #tpu.memory_space<vmem>>, vector<1x8xf32>
    %c80_i32_305 = arith.constant 80 : i32
    %605 = arith.addi %c80_i32_305, %543 : i32
    %606 = arith.index_cast %605 : i32 to index
    %c0_306 = arith.constant 0 : index
    %607 = vector.load %arg14[%606, %c0_306] : memref<96x8xf32, #tpu.memory_space<vmem>>, vector<1x8xf32>
    %608 = vector.broadcast %546 : f32 to vector<1x8xf32>
    %609 = arith.mulf %607, %608 : vector<1x8xf32>
    %c80_i32_307 = arith.constant 80 : i32
    %610 = arith.addi %c80_i32_307, %544 : i32
    %611 = arith.index_cast %610 : i32 to index
    %c0_308 = arith.constant 0 : index
    %612 = vector.load %arg14[%611, %c0_308] : memref<96x8xf32, #tpu.memory_space<vmem>>, vector<1x8xf32>
    %613 = vector.broadcast %548 : f32 to vector<1x8xf32>
    %614 = arith.mulf %612, %613 : vector<1x8xf32>
    %c7 = arith.constant 7 : index
    %615 = memref.load %arg1[%c7] : memref<8xi32, #tpu.memory_space<smem>>
    %c7_309 = arith.constant 7 : index
    %616 = memref.load %arg2[%c7_309] : memref<8xi32, #tpu.memory_space<smem>>
    %c7_310 = arith.constant 7 : index
    %617 = memref.load %arg3[%c7_310] : memref<8xi32, #tpu.memory_space<smem>>
    %c7_311 = arith.constant 7 : index
    %618 = memref.load %arg4[%c7_311] : memref<8xi32, #tpu.memory_space<smem>>
    %c0_i32_312 = arith.constant 0 : i32
    %619 = arith.maxsi %617, %c0_i32_312 : i32
    %c0_i32_313 = arith.constant 0 : i32
    %620 = arith.maxsi %618, %c0_i32_313 : i32
    %c0_i32_314 = arith.constant 0 : i32
    %621 = arith.cmpi sge, %617, %c0_i32_314 : i32
    %cst_315 = arith.constant 1.000000e+00 : f32
    %cst_316 = arith.constant 0.000000e+00 : f32
    %622 = arith.select %621, %cst_315, %cst_316 : f32
    %c0_i32_317 = arith.constant 0 : i32
    %623 = arith.cmpi sge, %618, %c0_i32_317 : i32
    %cst_318 = arith.constant 1.000000e+00 : f32
    %cst_319 = arith.constant 0.000000e+00 : f32
    %624 = arith.select %623, %cst_318, %cst_319 : f32
    %625 = arith.index_cast %615 : i32 to index
    %c0_320 = arith.constant 0 : index
    %626 = vector.load %arg13[%625, %c0_320] : memref<32x8xf32, #tpu.memory_space<vmem>>, vector<1x8xf32>
    %c16_i32_321 = arith.constant 16 : i32
    %627 = arith.addi %c16_i32_321, %616 : i32
    %628 = arith.index_cast %627 : i32 to index
    %c0_322 = arith.constant 0 : index
    %629 = vector.load %arg13[%628, %c0_322] : memref<32x8xf32, #tpu.memory_space<vmem>>, vector<1x8xf32>
    %c16_i32_323 = arith.constant 16 : i32
    %630 = arith.addi %c16_i32_323, %619 : i32
    %631 = arith.index_cast %630 : i32 to index
    %c0_324 = arith.constant 0 : index
    %632 = vector.load %arg13[%631, %c0_324] : memref<32x8xf32, #tpu.memory_space<vmem>>, vector<1x8xf32>
    %633 = vector.broadcast %622 : f32 to vector<1x8xf32>
    %634 = arith.mulf %632, %633 : vector<1x8xf32>
    %c16_i32_325 = arith.constant 16 : i32
    %635 = arith.addi %c16_i32_325, %620 : i32
    %636 = arith.index_cast %635 : i32 to index
    %c0_326 = arith.constant 0 : index
    %637 = vector.load %arg13[%636, %c0_326] : memref<32x8xf32, #tpu.memory_space<vmem>>, vector<1x8xf32>
    %638 = vector.broadcast %624 : f32 to vector<1x8xf32>
    %639 = arith.mulf %637, %638 : vector<1x8xf32>
    %640 = arith.index_cast %615 : i32 to index
    %c0_327 = arith.constant 0 : index
    %641 = vector.load %arg10[%640, %c0_327] : memref<16x32xf32, #tpu.memory_space<vmem>>, vector<1x32xf32>
    %642 = arith.index_cast %616 : i32 to index
    %c0_328 = arith.constant 0 : index
    %643 = vector.load %arg11[%642, %c0_328] : memref<16x32xf32, #tpu.memory_space<vmem>>, vector<1x32xf32>
    %644 = arith.index_cast %619 : i32 to index
    %c0_329 = arith.constant 0 : index
    %645 = vector.load %arg11[%644, %c0_329] : memref<16x32xf32, #tpu.memory_space<vmem>>, vector<1x32xf32>
    %646 = vector.broadcast %622 : f32 to vector<1x32xf32>
    %647 = arith.mulf %645, %646 : vector<1x32xf32>
    %648 = arith.index_cast %620 : i32 to index
    %c0_330 = arith.constant 0 : index
    %649 = vector.load %arg11[%648, %c0_330] : memref<16x32xf32, #tpu.memory_space<vmem>>, vector<1x32xf32>
    %650 = vector.broadcast %624 : f32 to vector<1x32xf32>
    %651 = arith.mulf %649, %650 : vector<1x32xf32>
    %c0_i32_331 = arith.constant 0 : i32
    %652 = arith.addi %c0_i32_331, %615 : i32
    %653 = arith.index_cast %652 : i32 to index
    %c0_332 = arith.constant 0 : index
    %654 = vector.load %arg14[%653, %c0_332] : memref<96x8xf32, #tpu.memory_space<vmem>>, vector<1x8xf32>
    %c16_i32_333 = arith.constant 16 : i32
    %655 = arith.addi %c16_i32_333, %619 : i32
    %656 = arith.index_cast %655 : i32 to index
    %c0_334 = arith.constant 0 : index
    %657 = vector.load %arg14[%656, %c0_334] : memref<96x8xf32, #tpu.memory_space<vmem>>, vector<1x8xf32>
    %658 = vector.broadcast %622 : f32 to vector<1x8xf32>
    %659 = arith.mulf %657, %658 : vector<1x8xf32>
    %c16_i32_335 = arith.constant 16 : i32
    %660 = arith.addi %c16_i32_335, %620 : i32
    %661 = arith.index_cast %660 : i32 to index
    %c0_336 = arith.constant 0 : index
    %662 = vector.load %arg14[%661, %c0_336] : memref<96x8xf32, #tpu.memory_space<vmem>>, vector<1x8xf32>
    %663 = vector.broadcast %624 : f32 to vector<1x8xf32>
    %664 = arith.mulf %662, %663 : vector<1x8xf32>
    %c32_i32_337 = arith.constant 32 : i32
    %665 = arith.addi %c32_i32_337, %615 : i32
    %666 = arith.index_cast %665 : i32 to index
    %c0_338 = arith.constant 0 : index
    %667 = vector.load %arg14[%666, %c0_338] : memref<96x8xf32, #tpu.memory_space<vmem>>, vector<1x8xf32>
    %c48_i32_339 = arith.constant 48 : i32
    %668 = arith.addi %c48_i32_339, %619 : i32
    %669 = arith.index_cast %668 : i32 to index
    %c0_340 = arith.constant 0 : index
    %670 = vector.load %arg14[%669, %c0_340] : memref<96x8xf32, #tpu.memory_space<vmem>>, vector<1x8xf32>
    %671 = vector.broadcast %622 : f32 to vector<1x8xf32>
    %672 = arith.mulf %670, %671 : vector<1x8xf32>
    %c48_i32_341 = arith.constant 48 : i32
    %673 = arith.addi %c48_i32_341, %620 : i32
    %674 = arith.index_cast %673 : i32 to index
    %c0_342 = arith.constant 0 : index
    %675 = vector.load %arg14[%674, %c0_342] : memref<96x8xf32, #tpu.memory_space<vmem>>, vector<1x8xf32>
    %676 = vector.broadcast %624 : f32 to vector<1x8xf32>
    %677 = arith.mulf %675, %676 : vector<1x8xf32>
    %c64_i32_343 = arith.constant 64 : i32
    %678 = arith.addi %c64_i32_343, %615 : i32
    %679 = arith.index_cast %678 : i32 to index
    %c0_344 = arith.constant 0 : index
    %680 = vector.load %arg14[%679, %c0_344] : memref<96x8xf32, #tpu.memory_space<vmem>>, vector<1x8xf32>
    %c80_i32_345 = arith.constant 80 : i32
    %681 = arith.addi %c80_i32_345, %619 : i32
    %682 = arith.index_cast %681 : i32 to index
    %c0_346 = arith.constant 0 : index
    %683 = vector.load %arg14[%682, %c0_346] : memref<96x8xf32, #tpu.memory_space<vmem>>, vector<1x8xf32>
    %684 = vector.broadcast %622 : f32 to vector<1x8xf32>
    %685 = arith.mulf %683, %684 : vector<1x8xf32>
    %c80_i32_347 = arith.constant 80 : i32
    %686 = arith.addi %c80_i32_347, %620 : i32
    %687 = arith.index_cast %686 : i32 to index
    %c0_348 = arith.constant 0 : index
    %688 = vector.load %arg14[%687, %c0_348] : memref<96x8xf32, #tpu.memory_space<vmem>>, vector<1x8xf32>
    %689 = vector.broadcast %624 : f32 to vector<1x8xf32>
    %690 = arith.mulf %688, %689 : vector<1x8xf32>
    %691 = tpu.concatenate %94, %170, %246, %322, %398, %474, %550, %626 in 0 : vector<1x8xf32>, vector<1x8xf32>, vector<1x8xf32>, vector<1x8xf32>, vector<1x8xf32>, vector<1x8xf32>, vector<1x8xf32>, vector<1x8xf32> -> vector<8x8xf32>
    %692 = tpu.concatenate %97, %173, %249, %325, %401, %477, %553, %629 in 0 : vector<1x8xf32>, vector<1x8xf32>, vector<1x8xf32>, vector<1x8xf32>, vector<1x8xf32>, vector<1x8xf32>, vector<1x8xf32>, vector<1x8xf32> -> vector<8x8xf32>
    %693 = tpu.concatenate %102, %178, %254, %330, %406, %482, %558, %634 in 0 : vector<1x8xf32>, vector<1x8xf32>, vector<1x8xf32>, vector<1x8xf32>, vector<1x8xf32>, vector<1x8xf32>, vector<1x8xf32>, vector<1x8xf32> -> vector<8x8xf32>
    %694 = tpu.concatenate %107, %183, %259, %335, %411, %487, %563, %639 in 0 : vector<1x8xf32>, vector<1x8xf32>, vector<1x8xf32>, vector<1x8xf32>, vector<1x8xf32>, vector<1x8xf32>, vector<1x8xf32>, vector<1x8xf32> -> vector<8x8xf32>
    %695 = tpu.concatenate %109, %185, %261, %337, %413, %489, %565, %641 in 0 : vector<1x32xf32>, vector<1x32xf32>, vector<1x32xf32>, vector<1x32xf32>, vector<1x32xf32>, vector<1x32xf32>, vector<1x32xf32>, vector<1x32xf32> -> vector<8x32xf32>
    %696 = tpu.concatenate %111, %187, %263, %339, %415, %491, %567, %643 in 0 : vector<1x32xf32>, vector<1x32xf32>, vector<1x32xf32>, vector<1x32xf32>, vector<1x32xf32>, vector<1x32xf32>, vector<1x32xf32>, vector<1x32xf32> -> vector<8x32xf32>
    %697 = tpu.concatenate %115, %191, %267, %343, %419, %495, %571, %647 in 0 : vector<1x32xf32>, vector<1x32xf32>, vector<1x32xf32>, vector<1x32xf32>, vector<1x32xf32>, vector<1x32xf32>, vector<1x32xf32>, vector<1x32xf32> -> vector<8x32xf32>
    %698 = tpu.concatenate %119, %195, %271, %347, %423, %499, %575, %651 in 0 : vector<1x32xf32>, vector<1x32xf32>, vector<1x32xf32>, vector<1x32xf32>, vector<1x32xf32>, vector<1x32xf32>, vector<1x32xf32>, vector<1x32xf32> -> vector<8x32xf32>
    %699 = tpu.concatenate %122, %198, %274, %350, %426, %502, %578, %654 in 0 : vector<1x8xf32>, vector<1x8xf32>, vector<1x8xf32>, vector<1x8xf32>, vector<1x8xf32>, vector<1x8xf32>, vector<1x8xf32>, vector<1x8xf32> -> vector<8x8xf32>
    %700 = tpu.concatenate %135, %211, %287, %363, %439, %515, %591, %667 in 0 : vector<1x8xf32>, vector<1x8xf32>, vector<1x8xf32>, vector<1x8xf32>, vector<1x8xf32>, vector<1x8xf32>, vector<1x8xf32>, vector<1x8xf32> -> vector<8x8xf32>
    %701 = tpu.concatenate %148, %224, %300, %376, %452, %528, %604, %680 in 0 : vector<1x8xf32>, vector<1x8xf32>, vector<1x8xf32>, vector<1x8xf32>, vector<1x8xf32>, vector<1x8xf32>, vector<1x8xf32>, vector<1x8xf32> -> vector<8x8xf32>
    %702 = tpu.concatenate %127, %203, %279, %355, %431, %507, %583, %659 in 0 : vector<1x8xf32>, vector<1x8xf32>, vector<1x8xf32>, vector<1x8xf32>, vector<1x8xf32>, vector<1x8xf32>, vector<1x8xf32>, vector<1x8xf32> -> vector<8x8xf32>
    %703 = tpu.concatenate %140, %216, %292, %368, %444, %520, %596, %672 in 0 : vector<1x8xf32>, vector<1x8xf32>, vector<1x8xf32>, vector<1x8xf32>, vector<1x8xf32>, vector<1x8xf32>, vector<1x8xf32>, vector<1x8xf32> -> vector<8x8xf32>
    %704 = tpu.concatenate %153, %229, %305, %381, %457, %533, %609, %685 in 0 : vector<1x8xf32>, vector<1x8xf32>, vector<1x8xf32>, vector<1x8xf32>, vector<1x8xf32>, vector<1x8xf32>, vector<1x8xf32>, vector<1x8xf32> -> vector<8x8xf32>
    %705 = tpu.concatenate %132, %208, %284, %360, %436, %512, %588, %664 in 0 : vector<1x8xf32>, vector<1x8xf32>, vector<1x8xf32>, vector<1x8xf32>, vector<1x8xf32>, vector<1x8xf32>, vector<1x8xf32>, vector<1x8xf32> -> vector<8x8xf32>
    %706 = tpu.concatenate %145, %221, %297, %373, %449, %525, %601, %677 in 0 : vector<1x8xf32>, vector<1x8xf32>, vector<1x8xf32>, vector<1x8xf32>, vector<1x8xf32>, vector<1x8xf32>, vector<1x8xf32>, vector<1x8xf32> -> vector<8x8xf32>
    %707 = tpu.concatenate %158, %234, %310, %386, %462, %538, %614, %690 in 0 : vector<1x8xf32>, vector<1x8xf32>, vector<1x8xf32>, vector<1x8xf32>, vector<1x8xf32>, vector<1x8xf32>, vector<1x8xf32>, vector<1x8xf32> -> vector<8x8xf32>
    %708 = arith.mulf %691, %692 : vector<8x8xf32>
    %cst_349 = arith.constant dense<0.000000e+00> : vector<8xf32>
    %709 = vector.multi_reduction <add>, %708, %cst_349 [1] : vector<8x8xf32> to vector<8xf32>
    %710 = vector.shape_cast %709 : vector<8xf32> to vector<8x1xf32>
    %711 = arith.mulf %691, %693 : vector<8x8xf32>
    %cst_350 = arith.constant dense<0.000000e+00> : vector<8xf32>
    %712 = vector.multi_reduction <add>, %711, %cst_350 [1] : vector<8x8xf32> to vector<8xf32>
    %713 = vector.shape_cast %712 : vector<8xf32> to vector<8x1xf32>
    %714 = arith.mulf %691, %694 : vector<8x8xf32>
    %cst_351 = arith.constant dense<0.000000e+00> : vector<8xf32>
    %715 = vector.multi_reduction <add>, %714, %cst_351 [1] : vector<8x8xf32> to vector<8xf32>
    %716 = vector.shape_cast %715 : vector<8xf32> to vector<8x1xf32>
    %717 = arith.negf %713 : vector<8x1xf32>
    %718 = math.exp %717 : vector<8x1xf32>
    %cst_352 = arith.constant 1.000000e+00 : f32
    %719 = vector.broadcast %cst_352 : f32 to vector<8x1xf32>
    %720 = arith.addf %719, %718 : vector<8x1xf32>
    %721 = arith.divf %719, %720 : vector<8x1xf32>
    %722 = arith.negf %716 : vector<8x1xf32>
    %723 = math.exp %722 : vector<8x1xf32>
    %cst_353 = arith.constant 1.000000e+00 : f32
    %724 = vector.broadcast %cst_353 : f32 to vector<8x1xf32>
    %725 = arith.addf %724, %723 : vector<8x1xf32>
    %726 = arith.divf %724, %725 : vector<8x1xf32>
    %cst_354 = arith.constant 0.000000e+00 : f32
    %727 = vector.broadcast %cst_354 : f32 to vector<8x1xf32>
    %728 = arith.subf %727, %710 : vector<8x1xf32>
    %cst_355 = arith.constant 0.000000e+00 : f32
    %729 = vector.broadcast %cst_355 : f32 to vector<8x1xf32>
    %730 = arith.maximumf %728, %729 : vector<8x1xf32>
    %731 = math.absf %728 : vector<8x1xf32>
    %cst_356 = arith.constant 0.000000e+00 : f32
    %732 = vector.broadcast %cst_356 : f32 to vector<8x1xf32>
    %733 = arith.subf %732, %731 : vector<8x1xf32>
    %734 = math.exp %733 : vector<8x1xf32>
    %cst_357 = arith.constant 1.000000e+00 : f32
    %735 = vector.broadcast %cst_357 : f32 to vector<8x1xf32>
    %736 = arith.addf %735, %734 : vector<8x1xf32>
    %737 = math.log %736 : vector<8x1xf32>
    %738 = arith.addf %730, %737 : vector<8x1xf32>
    %739 = vector.shape_cast %738 : vector<8x1xf32> to vector<1x8x1xf32>
    %cst_358 = arith.constant dense<0.000000e+00> : vector<1xf32>
    %740 = vector.multi_reduction <add>, %739, %cst_358 [1, 2] : vector<1x8x1xf32> to vector<1xf32>
    %741 = vector.shape_cast %740 : vector<1xf32> to vector<1x1x1xf32>
    %742 = vector.extract %741[0, 0, 0] : f32 from vector<1x1x1xf32>
    %743 = vector.broadcast %742 : f32 to vector<1x1xf32>
    %cst_359 = arith.constant 8.000000e+00 : f32
    %744 = vector.broadcast %cst_359 : f32 to vector<1x1xf32>
    %745 = arith.divf %743, %744 : vector<1x1xf32>
    %cst_360 = arith.constant 0.000000e+00 : f32
    %746 = vector.broadcast %cst_360 : f32 to vector<8x1xf32>
    %cst_361 = arith.constant 0.000000e+00 : f32
    %747 = vector.broadcast %cst_361 : f32 to vector<8x1xf32>
    %748 = arith.mulf %699, %703 : vector<8x8xf32>
    %cst_362 = arith.constant dense<0.000000e+00> : vector<8xf32>
    %749 = vector.multi_reduction <add>, %748, %cst_362 [1] : vector<8x8xf32> to vector<8xf32>
    %750 = vector.shape_cast %749 : vector<8xf32> to vector<8x1xf32>
    %751 = arith.addf %746, %750 : vector<8x1xf32>
    %752 = arith.mulf %700, %702 : vector<8x8xf32>
    %cst_363 = arith.constant dense<0.000000e+00> : vector<8xf32>
    %753 = vector.multi_reduction <add>, %752, %cst_363 [1] : vector<8x8xf32> to vector<8xf32>
    %754 = vector.shape_cast %753 : vector<8xf32> to vector<8x1xf32>
    %755 = arith.addf %751, %754 : vector<8x1xf32>
    %756 = arith.mulf %699, %706 : vector<8x8xf32>
    %cst_364 = arith.constant dense<0.000000e+00> : vector<8xf32>
    %757 = vector.multi_reduction <add>, %756, %cst_364 [1] : vector<8x8xf32> to vector<8xf32>
    %758 = vector.shape_cast %757 : vector<8xf32> to vector<8x1xf32>
    %759 = arith.addf %747, %758 : vector<8x1xf32>
    %760 = arith.mulf %700, %705 : vector<8x8xf32>
    %cst_365 = arith.constant dense<0.000000e+00> : vector<8xf32>
    %761 = vector.multi_reduction <add>, %760, %cst_365 [1] : vector<8x8xf32> to vector<8xf32>
    %762 = vector.shape_cast %761 : vector<8xf32> to vector<8x1xf32>
    %763 = arith.addf %759, %762 : vector<8x1xf32>
    %764 = arith.mulf %700, %704 : vector<8x8xf32>
    %cst_366 = arith.constant dense<0.000000e+00> : vector<8xf32>
    %765 = vector.multi_reduction <add>, %764, %cst_366 [1] : vector<8x8xf32> to vector<8xf32>
    %766 = vector.shape_cast %765 : vector<8xf32> to vector<8x1xf32>
    %767 = arith.addf %755, %766 : vector<8x1xf32>
    %768 = arith.mulf %701, %703 : vector<8x8xf32>
    %cst_367 = arith.constant dense<0.000000e+00> : vector<8xf32>
    %769 = vector.multi_reduction <add>, %768, %cst_367 [1] : vector<8x8xf32> to vector<8xf32>
    %770 = vector.shape_cast %769 : vector<8xf32> to vector<8x1xf32>
    %771 = arith.addf %767, %770 : vector<8x1xf32>
    %772 = arith.mulf %700, %707 : vector<8x8xf32>
    %cst_368 = arith.constant dense<0.000000e+00> : vector<8xf32>
    %773 = vector.multi_reduction <add>, %772, %cst_368 [1] : vector<8x8xf32> to vector<8xf32>
    %774 = vector.shape_cast %773 : vector<8xf32> to vector<8x1xf32>
    %775 = arith.addf %763, %774 : vector<8x1xf32>
    %776 = arith.mulf %701, %706 : vector<8x8xf32>
    %cst_369 = arith.constant dense<0.000000e+00> : vector<8xf32>
    %777 = vector.multi_reduction <add>, %776, %cst_369 [1] : vector<8x8xf32> to vector<8xf32>
    %778 = vector.shape_cast %777 : vector<8xf32> to vector<8x1xf32>
    %779 = arith.addf %775, %778 : vector<8x1xf32>
    %cst_370 = arith.constant 2.500000e-01 : f32
    %780 = vector.broadcast %cst_370 : f32 to vector<8x1xf32>
    %781 = arith.mulf %771, %780 : vector<8x1xf32>
    %cst_371 = arith.constant 2.500000e-01 : f32
    %782 = vector.broadcast %cst_371 : f32 to vector<8x1xf32>
    %783 = arith.mulf %779, %782 : vector<8x1xf32>
    %784 = arith.subf %783, %781 : vector<8x1xf32>
    %cst_372 = arith.constant 0.000000e+00 : f32
    %785 = vector.broadcast %cst_372 : f32 to vector<8x1xf32>
    %786 = arith.maximumf %784, %785 : vector<8x1xf32>
    %787 = math.absf %784 : vector<8x1xf32>
    %cst_373 = arith.constant 0.000000e+00 : f32
    %788 = vector.broadcast %cst_373 : f32 to vector<8x1xf32>
    %789 = arith.subf %788, %787 : vector<8x1xf32>
    %790 = math.exp %789 : vector<8x1xf32>
    %cst_374 = arith.constant 1.000000e+00 : f32
    %791 = vector.broadcast %cst_374 : f32 to vector<8x1xf32>
    %792 = arith.addf %791, %790 : vector<8x1xf32>
    %793 = math.log %792 : vector<8x1xf32>
    %794 = arith.addf %786, %793 : vector<8x1xf32>
    %795 = vector.shape_cast %794 : vector<8x1xf32> to vector<1x8x1xf32>
    %cst_375 = arith.constant dense<0.000000e+00> : vector<1xf32>
    %796 = vector.multi_reduction <add>, %795, %cst_375 [1, 2] : vector<1x8x1xf32> to vector<1xf32>
    %797 = vector.shape_cast %796 : vector<1xf32> to vector<1x1x1xf32>
    %798 = vector.extract %797[0, 0, 0] : f32 from vector<1x1x1xf32>
    %799 = vector.broadcast %798 : f32 to vector<1x1xf32>
    %cst_376 = arith.constant 8.000000e+00 : f32
    %800 = vector.broadcast %cst_376 : f32 to vector<1x1xf32>
    %801 = arith.divf %799, %800 : vector<1x1xf32>
    %802 = arith.addf %781, %721 : vector<8x1xf32>
    %cst_377 = arith.constant 5.000000e-01 : f32
    %803 = vector.broadcast %cst_377 : f32 to vector<8x1xf32>
    %804 = arith.mulf %803, %802 : vector<8x1xf32>
    %805 = arith.addf %783, %726 : vector<8x1xf32>
    %cst_378 = arith.constant 5.000000e-01 : f32
    %806 = vector.broadcast %cst_378 : f32 to vector<8x1xf32>
    %807 = arith.mulf %806, %805 : vector<8x1xf32>
    %808 = arith.addf %804, %807 : vector<8x1xf32>
    %cst_379 = arith.constant 9.99999996E-13 : f32
    %809 = vector.broadcast %cst_379 : f32 to vector<8x1xf32>
    %810 = arith.addf %808, %809 : vector<8x1xf32>
    %811 = tpu.reciprocal %810 {approx = true} : vector<8x1xf32> -> vector<8x1xf32>
    %812 = arith.mulf %804, %811 : vector<8x1xf32>
    %813 = vector.broadcast %812 : vector<8x1xf32> to vector<8x32xf32>
    %814 = arith.mulf %813, %697 : vector<8x32xf32>
    %815 = arith.mulf %807, %811 : vector<8x1xf32>
    %816 = vector.broadcast %815 : vector<8x1xf32> to vector<8x32xf32>
    %817 = arith.mulf %816, %698 : vector<8x32xf32>
    %818 = arith.addf %814, %817 : vector<8x32xf32>
    %819 = arith.mulf %695, %696 : vector<8x32xf32>
    %cst_380 = arith.constant dense<0.000000e+00> : vector<8xf32>
    %820 = vector.multi_reduction <add>, %819, %cst_380 [1] : vector<8x32xf32> to vector<8xf32>
    %821 = vector.shape_cast %820 : vector<8xf32> to vector<8x1xf32>
    %822 = arith.mulf %695, %818 : vector<8x32xf32>
    %cst_381 = arith.constant dense<0.000000e+00> : vector<8xf32>
    %823 = vector.multi_reduction <add>, %822, %cst_381 [1] : vector<8x32xf32> to vector<8xf32>
    %824 = vector.shape_cast %823 : vector<8xf32> to vector<8x1xf32>
    %cst_382 = arith.constant 0.000000e+00 : f32
    %825 = vector.broadcast %cst_382 : f32 to vector<8x1xf32>
    %826 = arith.subf %825, %821 : vector<8x1xf32>
    %cst_383 = arith.constant 0.000000e+00 : f32
    %827 = vector.broadcast %cst_383 : f32 to vector<8x1xf32>
    %828 = arith.maximumf %826, %827 : vector<8x1xf32>
    %829 = math.absf %826 : vector<8x1xf32>
    %cst_384 = arith.constant 0.000000e+00 : f32
    %830 = vector.broadcast %cst_384 : f32 to vector<8x1xf32>
    %831 = arith.subf %830, %829 : vector<8x1xf32>
    %832 = math.exp %831 : vector<8x1xf32>
    %cst_385 = arith.constant 1.000000e+00 : f32
    %833 = vector.broadcast %cst_385 : f32 to vector<8x1xf32>
    %834 = arith.addf %833, %832 : vector<8x1xf32>
    %835 = math.log %834 : vector<8x1xf32>
    %836 = arith.addf %828, %835 : vector<8x1xf32>
    %837 = vector.shape_cast %836 : vector<8x1xf32> to vector<1x8x1xf32>
    %cst_386 = arith.constant dense<0.000000e+00> : vector<1xf32>
    %838 = vector.multi_reduction <add>, %837, %cst_386 [1, 2] : vector<1x8x1xf32> to vector<1xf32>
    %839 = vector.shape_cast %838 : vector<1xf32> to vector<1x1x1xf32>
    %840 = vector.extract %839[0, 0, 0] : f32 from vector<1x1x1xf32>
    %841 = vector.broadcast %840 : f32 to vector<1x1xf32>
    %cst_387 = arith.constant 0.000000e+00 : f32
    %842 = vector.broadcast %cst_387 : f32 to vector<8x1xf32>
    %843 = arith.maximumf %824, %842 : vector<8x1xf32>
    %844 = math.absf %824 : vector<8x1xf32>
    %cst_388 = arith.constant 0.000000e+00 : f32
    %845 = vector.broadcast %cst_388 : f32 to vector<8x1xf32>
    %846 = arith.subf %845, %844 : vector<8x1xf32>
    %847 = math.exp %846 : vector<8x1xf32>
    %cst_389 = arith.constant 1.000000e+00 : f32
    %848 = vector.broadcast %cst_389 : f32 to vector<8x1xf32>
    %849 = arith.addf %848, %847 : vector<8x1xf32>
    %850 = math.log %849 : vector<8x1xf32>
    %851 = arith.addf %843, %850 : vector<8x1xf32>
    %852 = vector.shape_cast %851 : vector<8x1xf32> to vector<1x8x1xf32>
    %cst_390 = arith.constant dense<0.000000e+00> : vector<1xf32>
    %853 = vector.multi_reduction <add>, %852, %cst_390 [1, 2] : vector<1x8x1xf32> to vector<1xf32>
    %854 = vector.shape_cast %853 : vector<1xf32> to vector<1x1x1xf32>
    %855 = vector.extract %854[0, 0, 0] : f32 from vector<1x1x1xf32>
    %856 = vector.broadcast %855 : f32 to vector<1x1xf32>
    %857 = arith.addf %841, %856 : vector<1x1xf32>
    %cst_391 = arith.constant 1.600000e+01 : f32
    %858 = vector.broadcast %cst_391 : f32 to vector<1x1xf32>
    %859 = arith.divf %857, %858 : vector<1x1xf32>
    %860 = arith.mulf %695, %695 : vector<8x32xf32>
    %861 = vector.shape_cast %860 : vector<8x32xf32> to vector<1x8x32xf32>
    %cst_392 = arith.constant dense<0.000000e+00> : vector<1xf32>
    %862 = vector.multi_reduction <add>, %861, %cst_392 [1, 2] : vector<1x8x32xf32> to vector<1xf32>
    %863 = vector.shape_cast %862 : vector<1xf32> to vector<1x1x1xf32>
    %864 = vector.extract %863[0, 0, 0] : f32 from vector<1x1x1xf32>
    %865 = vector.broadcast %864 : f32 to vector<1x1xf32>
    %866 = arith.mulf %696, %696 : vector<8x32xf32>
    %867 = vector.shape_cast %866 : vector<8x32xf32> to vector<1x8x32xf32>
    %cst_393 = arith.constant dense<0.000000e+00> : vector<1xf32>
    %868 = vector.multi_reduction <add>, %867, %cst_393 [1, 2] : vector<1x8x32xf32> to vector<1xf32>
    %869 = vector.shape_cast %868 : vector<1xf32> to vector<1x1x1xf32>
    %870 = vector.extract %869[0, 0, 0] : f32 from vector<1x1x1xf32>
    %871 = vector.broadcast %870 : f32 to vector<1x1xf32>
    %872 = arith.addf %865, %871 : vector<1x1xf32>
    %873 = arith.mulf %697, %697 : vector<8x32xf32>
    %874 = vector.shape_cast %873 : vector<8x32xf32> to vector<1x8x32xf32>
    %cst_394 = arith.constant dense<0.000000e+00> : vector<1xf32>
    %875 = vector.multi_reduction <add>, %874, %cst_394 [1, 2] : vector<1x8x32xf32> to vector<1xf32>
    %876 = vector.shape_cast %875 : vector<1xf32> to vector<1x1x1xf32>
    %877 = vector.extract %876[0, 0, 0] : f32 from vector<1x1x1xf32>
    %878 = vector.broadcast %877 : f32 to vector<1x1xf32>
    %879 = arith.addf %872, %878 : vector<1x1xf32>
    %880 = arith.mulf %698, %698 : vector<8x32xf32>
    %881 = vector.shape_cast %880 : vector<8x32xf32> to vector<1x8x32xf32>
    %cst_395 = arith.constant dense<0.000000e+00> : vector<1xf32>
    %882 = vector.multi_reduction <add>, %881, %cst_395 [1, 2] : vector<1x8x32xf32> to vector<1xf32>
    %883 = vector.shape_cast %882 : vector<1xf32> to vector<1x1x1xf32>
    %884 = vector.extract %883[0, 0, 0] : f32 from vector<1x1x1xf32>
    %885 = vector.broadcast %884 : f32 to vector<1x1xf32>
    %886 = arith.addf %879, %885 : vector<1x1xf32>
    %cst_396 = arith.constant 5.000000e-01 : f32
    %887 = vector.broadcast %cst_396 : f32 to vector<1x1xf32>
    %888 = arith.mulf %887, %886 : vector<1x1xf32>
    %cst_397 = arith.constant 8.000000e+00 : f32
    %889 = vector.broadcast %cst_397 : f32 to vector<1x1xf32>
    %890 = arith.divf %888, %889 : vector<1x1xf32>
    %c0_398 = arith.constant 0 : index
    %c0_399 = arith.constant 0 : index
    %891 = vector.load %arg8[%c0_398, %c0_399] : memref<16x2xf32, #tpu.memory_space<vmem>>, vector<16x2xf32>
    %c0_400 = arith.constant 0 : index
    %c0_401 = arith.constant 0 : index
    %892 = vector.load %arg9[%c0_400, %c0_401] : memref<16x2xf32, #tpu.memory_space<vmem>>, vector<16x2xf32>
    %893 = arith.mulf %892, %892 : vector<16x2xf32>
    %894 = vector.shape_cast %893 : vector<16x2xf32> to vector<1x16x2xf32>
    %cst_402 = arith.constant dense<0.000000e+00> : vector<1xf32>
    %895 = vector.multi_reduction <add>, %894, %cst_402 [1, 2] : vector<1x16x2xf32> to vector<1xf32>
    %896 = vector.shape_cast %895 : vector<1xf32> to vector<1x1x1xf32>
    %897 = vector.extract %896[0, 0, 0] : f32 from vector<1x1x1xf32>
    %898 = vector.broadcast %897 : f32 to vector<1x1xf32>
    %cst_403 = arith.constant 1.600000e+01 : f32
    %899 = vector.broadcast %cst_403 : f32 to vector<1x1xf32>
    %900 = arith.divf %898, %899 : vector<1x1xf32>
    %901 = arith.mulf %891, %891 : vector<16x2xf32>
    %902 = vector.shape_cast %901 : vector<16x2xf32> to vector<1x16x2xf32>
    %cst_404 = arith.constant dense<0.000000e+00> : vector<1xf32>
    %903 = vector.multi_reduction <add>, %902, %cst_404 [1, 2] : vector<1x16x2xf32> to vector<1xf32>
    %904 = vector.shape_cast %903 : vector<1xf32> to vector<1x1x1xf32>
    %905 = vector.extract %904[0, 0, 0] : f32 from vector<1x1x1xf32>
    %906 = vector.broadcast %905 : f32 to vector<1x1xf32>
    %cst_405 = arith.constant 1.600000e+01 : f32
    %907 = vector.broadcast %cst_405 : f32 to vector<1x1xf32>
    %908 = arith.divf %906, %907 : vector<1x1xf32>
    %909 = arith.addf %900, %908 : vector<1x1xf32>
    %cst_406 = arith.constant 5.000000e-01 : f32
    %910 = vector.broadcast %cst_406 : f32 to vector<1x1xf32>
    %911 = arith.mulf %910, %909 : vector<1x1xf32>
    %c0_407 = arith.constant 0 : index
    %c0_408 = arith.constant 0 : index
    %912 = vector.load %arg6[%c0_407, %c0_408] : memref<16x8xf32, #tpu.memory_space<vmem>>, vector<16x8xf32>
    %c0_409 = arith.constant 0 : index
    %c0_410 = arith.constant 0 : index
    %913 = vector.load %arg7[%c0_409, %c0_410] : memref<16x8xf32, #tpu.memory_space<vmem>>, vector<16x8xf32>
    %914 = arith.mulf %912, %912 : vector<16x8xf32>
    %915 = vector.shape_cast %914 : vector<16x8xf32> to vector<1x16x8xf32>
    %cst_411 = arith.constant dense<0.000000e+00> : vector<1xf32>
    %916 = vector.multi_reduction <add>, %915, %cst_411 [1, 2] : vector<1x16x8xf32> to vector<1xf32>
    %917 = vector.shape_cast %916 : vector<1xf32> to vector<1x1x1xf32>
    %918 = vector.extract %917[0, 0, 0] : f32 from vector<1x1x1xf32>
    %919 = vector.broadcast %918 : f32 to vector<1x1xf32>
    %cst_412 = arith.constant 1.600000e+01 : f32
    %920 = vector.broadcast %cst_412 : f32 to vector<1x1xf32>
    %921 = arith.divf %919, %920 : vector<1x1xf32>
    %922 = arith.mulf %913, %913 : vector<16x8xf32>
    %923 = vector.shape_cast %922 : vector<16x8xf32> to vector<1x16x8xf32>
    %cst_413 = arith.constant dense<0.000000e+00> : vector<1xf32>
    %924 = vector.multi_reduction <add>, %923, %cst_413 [1, 2] : vector<1x16x8xf32> to vector<1xf32>
    %925 = vector.shape_cast %924 : vector<1xf32> to vector<1x1x1xf32>
    %926 = vector.extract %925[0, 0, 0] : f32 from vector<1x1x1xf32>
    %927 = vector.broadcast %926 : f32 to vector<1x1xf32>
    %cst_414 = arith.constant 1.600000e+01 : f32
    %928 = vector.broadcast %cst_414 : f32 to vector<1x1xf32>
    %929 = arith.divf %927, %928 : vector<1x1xf32>
    %930 = arith.addf %921, %929 : vector<1x1xf32>
    %cst_415 = arith.constant 5.000000e-01 : f32
    %931 = vector.broadcast %cst_415 : f32 to vector<1x1xf32>
    %932 = arith.mulf %931, %930 : vector<1x1xf32>
    %933 = arith.addf %890, %932 : vector<1x1xf32>
    %cst_416 = arith.constant 9.99999974E-5 : f32
    %934 = vector.broadcast %cst_416 : f32 to vector<1x1xf32>
    %935 = arith.mulf %934, %933 : vector<1x1xf32>
    %cst_417 = arith.constant 1.000000e-01 : f32
    %936 = vector.broadcast %cst_417 : f32 to vector<1x1xf32>
    %937 = arith.mulf %936, %911 : vector<1x1xf32>
    %938 = arith.addf %935, %937 : vector<1x1xf32>
    %cst_418 = arith.constant 1.000000e+01 : f32
    %939 = vector.broadcast %cst_418 : f32 to vector<1x1xf32>
    %940 = arith.mulf %939, %938 : vector<1x1xf32>
    %941 = arith.addf %859, %745 : vector<1x1xf32>
    %cst_419 = arith.constant 0.00999999977 : f32
    %942 = vector.broadcast %cst_419 : f32 to vector<1x1xf32>
    %943 = arith.mulf %942, %801 : vector<1x1xf32>
    %944 = arith.addf %941, %943 : vector<1x1xf32>
    %945 = arith.addf %944, %940 : vector<1x1xf32>
    %c0_420 = arith.constant 0 : index
    %c0_421 = arith.constant 0 : index
    %946 = vector.load %arg12[%c0_420, %c0_421] : memref<1x1xf32, #tpu.memory_space<vmem>>, vector<1x1xf32>
    tpu.vector_store %arg12[%c0_420, %c0_421], %945 {strides = array<i32>} : memref<1x1xf32, #tpu.memory_space<vmem>>, vector<1x1xf32>,
    return
  }
  func.func @transform_0(%arg0: i32, %arg1: memref<8xi32, #tpu.memory_space<smem>>, %arg2: memref<8xi32, #tpu.memory_space<smem>>, %arg3: memref<8xi32, #tpu.memory_space<smem>>, %arg4: memref<8xi32, #tpu.memory_space<smem>>) -> (i32, i32) {
    %c0_i32 = arith.constant 0 : i32
    %c0_i32_0 = arith.constant 0 : i32
    %c0_i32_1 = arith.constant 0 : i32
    return %c0_i32, %c0_i32_0 : i32, i32
  }
  func.func @transform_1(%arg0: i32, %arg1: memref<8xi32, #tpu.memory_space<smem>>, %arg2: memref<8xi32, #tpu.memory_space<smem>>, %arg3: memref<8xi32, #tpu.memory_space<smem>>, %arg4: memref<8xi32, #tpu.memory_space<smem>>) -> (i32, i32) {
    %c0_i32 = arith.constant 0 : i32
    %c0_i32_0 = arith.constant 0 : i32
    %c0_i32_1 = arith.constant 0 : i32
    return %c0_i32, %c0_i32_0 : i32, i32
  }
  func.func @transform_2(%arg0: i32, %arg1: memref<8xi32, #tpu.memory_space<smem>>, %arg2: memref<8xi32, #tpu.memory_space<smem>>, %arg3: memref<8xi32, #tpu.memory_space<smem>>, %arg4: memref<8xi32, #tpu.memory_space<smem>>) -> (i32, i32) {
    %c0_i32 = arith.constant 0 : i32
    %c0_i32_0 = arith.constant 0 : i32
    %c0_i32_1 = arith.constant 0 : i32
    return %c0_i32, %c0_i32_0 : i32, i32
  }
  func.func @transform_3(%arg0: i32, %arg1: memref<8xi32, #tpu.memory_space<smem>>, %arg2: memref<8xi32, #tpu.memory_space<smem>>, %arg3: memref<8xi32, #tpu.memory_space<smem>>, %arg4: memref<8xi32, #tpu.memory_space<smem>>) -> (i32, i32) {
    %c0_i32 = arith.constant 0 : i32
    %c0_i32_0 = arith.constant 0 : i32
    %c0_i32_1 = arith.constant 0 : i32
    return %c0_i32, %c0_i32_0 : i32, i32
  }
  func.func @transform_4(%arg0: i32, %arg1: memref<8xi32, #tpu.memory_space<smem>>, %arg2: memref<8xi32, #tpu.memory_space<smem>>, %arg3: memref<8xi32, #tpu.memory_space<smem>>, %arg4: memref<8xi32, #tpu.memory_space<smem>>) -> (i32, i32) {
    %c0_i32 = arith.constant 0 : i32
    %c0_i32_0 = arith.constant 0 : i32
    %c0_i32_1 = arith.constant 0 : i32
    return %c0_i32, %c0_i32_0 : i32, i32
  }
  func.func @transform_5(%arg0: i32, %arg1: memref<8xi32, #tpu.memory_space<smem>>, %arg2: memref<8xi32, #tpu.memory_space<smem>>, %arg3: memref<8xi32, #tpu.memory_space<smem>>, %arg4: memref<8xi32, #tpu.memory_space<smem>>) -> (i32, i32) {
    %c0_i32 = arith.constant 0 : i32
    %c0_i32_0 = arith.constant 0 : i32
    %c0_i32_1 = arith.constant 0 : i32
    return %c0_i32, %c0_i32_0 : i32, i32
  }
  func.func @transform_6(%arg0: i32, %arg1: memref<8xi32, #tpu.memory_space<smem>>, %arg2: memref<8xi32, #tpu.memory_space<smem>>, %arg3: memref<8xi32, #tpu.memory_space<smem>>, %arg4: memref<8xi32, #tpu.memory_space<smem>>) -> (i32, i32) {
    %c0_i32 = arith.constant 0 : i32
    %c0_i32_0 = arith.constant 0 : i32
    %c0_i32_1 = arith.constant 0 : i32
    return %c0_i32, %c0_i32_0 : i32, i32
  }
  func.func @transform_7(%arg0: i32, %arg1: memref<8xi32, #tpu.memory_space<smem>>, %arg2: memref<8xi32, #tpu.memory_space<smem>>, %arg3: memref<8xi32, #tpu.memory_space<smem>>, %arg4: memref<8xi32, #tpu.memory_space<smem>>) -> (i32, i32) {
    %c0_i32 = arith.constant 0 : i32
    %c0_i32_0 = arith.constant 0 : i32
    %c0_i32_1 = arith.constant 0 : i32
    return %c0_i32, %c0_i32_0 : i32, i32
  }
}

</mosaic_0001>

<bundles_post_ra>
// kernel: multi_fawmf_forward.1
= control target key start
LH: loop header
LB: loop body
LE: loop exit
PB: predicated region body
PF: predicated region fallthrough
CT: control target
= control target key end

     0   :  { %s3430_s0 = inlined_call_operand.vmem [shape: s32[8], index: 0, kind: input, shape index: {}]   ;;  %s3431_s4 = inlined_call_operand.vmem [shape: f32[32,32], index: 4, kind: input, shape index: {}]   ;;  %s3432_s5 = inlined_call_operand.vmem [shape: f32[16,8], index: 5, kind: input, shape index: {}]   ;;  %s3433_s6 = inlined_call_operand.vmem [shape: f32[16,8], index: 6, kind: input, shape index: {}]   ;;  %s3434_s7 = inlined_call_operand.vmem [shape: f32[16,2], index: 7, kind: input, shape index: {}]   ;;  %s3435_s8 = inlined_call_operand.vmem [shape: f32[16,2], index: 8, kind: input, shape index: {}]   ;;  %s3436_s9 = inlined_call_operand.vmem [shape: f32[16,32], index: 9, kind: input, shape index: {}]   ;;  %s3437_s10 = inlined_call_operand.vmem [shape: f32[16,32], index: 10, kind: input, shape index: {}]   ;;  %s3438_s11 = inlined_call_operand.hbm [shape: f32[1,1], index: 11, kind: output, shape index: {}]   ;;  %s3439_s1 = inlined_call_operand.vmem [shape: s32[8], index: 1, kind: input, shape index: {}]   ;;  %s3440_s2 = inlined_call_operand.vmem [shape: s32[8], index: 2, kind: input, shape index: {}]   ;;  %s3441_s3 = inlined_call_operand.vmem [shape: s32[8], index: 3, kind: input, shape index: {}]  }
   0x1   :  { %3489 = sst [smem:[#allocation40_spill]] %s3432_s5  ;;  %s16_s19 = sshll.u32 %s3430_s0, 4  ;;  %s17_s19 = int_to_ptr.vmem [resolvable:$true] %s16_s19 }
   0x2   :  { %3490 = sst [smem:[#allocation41_spill]] %s3433_s6  ;;  %s20_s22 = sshll.u32 %s3439_s1, 4  ;;  %s21_s22 = int_to_ptr.vmem [resolvable:$true] %s20_s22 }
   0x3   :  { %3491 = sst [smem:[#allocation42_spill]] %s3434_s7  ;;  %s2278_s23 = scalar_lea.vmem %s17_s19, 16 }
   0x4   :  { %3492 = sst [smem:[#allocation43_spill]] %s3435_s8  ;;  %p2279_p0 = scmp.ne.s32.totalorder %s17_s19, %s2278_s23 }
   0x5   :  { %3493 = sst [smem:[#allocation44_spill]] %s3436_s9  ;;  %p2283_p1 = scmp.lt.s32.totalorder %s17_s19, %s17_s19 }
   0x6   :  { %3494 = sst [smem:[#allocation45_spill]] %s3437_s10  ;;  %p2284_p2 = scmp.lt.s32.totalorder %s2278_s23, %s2278_s23 }
   0x7   :  { %3495 = sst [smem:[#allocation46_spill]] %s3438_s11 }
   0x8   :  { %p2285_p3 = por %p2284_p2, %p2283_p1 }
   0xa   :  { %p2286_p4 = pnand %p2285_p3, %p2279_p0 }
   0xc   :  { %2289 = shalt.err (!%p2286_p4)  }
   0xd   :  { %s2350_s24 = smov [#allocation5]   ;;  %s2290_s25 = scalar_lea.vmem %s21_s22, 16 }
   0xe   :  { %19 = dma.vmem_to_smem %s17_s19, 16, %s2350_s24, [#allocation4] }
   0xf   :  { %p2291_p5 = scmp.ne.s32.totalorder %s21_s22, %s2290_s25  ;;  %p2295_p6 = scmp.lt.s32.totalorder %s21_s22, %s21_s22 }
  0x10   :  { %p2296_p7 = scmp.lt.s32.totalorder %s2290_s25, %s2290_s25 }
  0x12   :  { %p2297_p8 = por %p2296_p7, %p2295_p6 }
  0x14   :  { %p2298_p9 = pnand %p2297_p8, %p2291_p5 }
  0x16   :  { %2301 = shalt.err (!%p2298_p9)  }
  0x17   :  { %s2351_s0 = smov [#allocation6]   ;;  %s24_s27 = sshll.u32 %s3440_s2, 4  ;;  %s25_s27 = int_to_ptr.vmem [resolvable:$true] %s24_s27 }
  0x18   :  { %23 = dma.vmem_to_smem %s21_s22, 16, %s2351_s0, [#allocation4] }
  0x19   :  { %s28_s30 = sshll.u32 %s3441_s3, 4  ;;  %s2302_s12 = scalar_lea.vmem %s25_s27, 16  ;;  %s29_s30 = int_to_ptr.vmem [resolvable:$true] %s28_s30 }
  0x1a   :  { %p2303_p10 = scmp.ne.s32.totalorder %s25_s27, %s2302_s12  ;;  %p2307_p11 = scmp.lt.s32.totalorder %s25_s27, %s25_s27 }
  0x1b   :  { %p2308_p12 = scmp.lt.s32.totalorder %s2302_s12, %s2302_s12 }
  0x1d   :  { %p2309_p13 = por %p2308_p12, %p2307_p11 }
  0x1f   :  { %p2310_p0 = pnand %p2309_p13, %p2303_p10 }
  0x21   :  { %2313 = shalt.err (!%p2310_p0)  }
  0x22   :  { %s2352_s13 = smov [#allocation7]   ;;  %s2314_s14 = scalar_lea.vmem %s29_s30, 16 }
  0x23   :  { %27 = dma.vmem_to_smem %s25_s27, 16, %s2352_s13, [#allocation4] }
  0x24   :  { %p2315_p1 = scmp.ne.s32.totalorder %s29_s30, %s2314_s14  ;;  %p2319_p2 = scmp.lt.s32.totalorder %s29_s30, %s29_s30 }
  0x25   :  { %p2320_p3 = scmp.lt.s32.totalorder %s2314_s14, %s2314_s14 }
  0x27   :  { %p2321_p4 = por %p2320_p3, %p2319_p2 }
  0x29   :  { %p2322_p5 = pnand %p2321_p4, %p2315_p1 }
  0x2b   :  { %2325 = shalt.err (!%p2322_p5)  }
  0x2c   :  { %s2353_s2 = smov [#allocation8]  }
  0x2d   :  { %31 = dma.vmem_to_smem %s29_s30, 16, %s2353_s2, [#allocation4] }
  0x2e   :  { %2346 = dma.done.wait [#allocation4], 64 }
  0x2f   :  { %2347 = vsyncadd [#allocation4], 4294967232 }
  0x30   :  { %33 = sfence }
  0x31   :  { %vm51_vm0 = vcmask 64512   ;;  %v75_v0 = vld [vmem:[%s3433_s6 + $0x8] sm:$0xff]  ;;  %v74_v1 = vld [vmem:[%s3433_s6] sm:$0xff] }
  0x32   :  { %v50_v2 = vld [vmem:[%s3432_s5 + $0x8] sm:$0xff]  ;;  %v79_v3 = vsel %vm51_vm0, %v75_v0, -inf  ;;  %v49_v5 = vld [vmem:[%s3432_s5] sm:$0xff] }
  0x33   :  { %v55_v4 = vsel %vm51_vm0, %v50_v2, -inf }
  0x34   :  { %34 = vsyncpa [#allocation10], 0  ;;  %80 = vmax.xlane.f32.xlu0 %v79_v3  ;;  %56 = vmax.xlane.f32.xlu1 %v55_v4  ;;  %v76_v6 = vsel %vm51_vm0, %v74_v1, -inf  ;;  %v52_v7 = vsel %vm51_vm0, %v49_v5, -inf  ;;  %v142_v28 = vld [vmem:[%s3431_s4] sm:$0xff]  ;;  %vm146_vm1 = vcmask 261120  }
  0x35   :  { %2149 = vmatprep.mubr.msk.f32.mxu0 %vm146_vm1, %v142_v28  ;;  %2163 = vmatprep.mubr.msk.f32.mxu1 %vm146_vm1, %v142_v28  ;;  %v103_v29 = vld [vmem:[%s3434_s7 + $0x8] sm:$0xff]  ;;  %v2354_v30 = vmov 0   ;;  %v102_v31 = vld [vmem:[%s3434_s7] sm:$0xff]  ;;  %v2355_v33 = vmov 1   ;;  %v144_v48 = vld [vmem:[%s3431_s4 + $0x10] sm:$0xff]  ;;  %s2021_s15 = sld [smem:[#allocation8 + $0x1]] }
  0x36   :  { %2201 = vset.pattern.permute.xlu1 %v2354_v30  ;;  %2200 = vset.pattern.permute.xlu0 %v2354_v30  ;;  %v122_v32 = vld [vmem:[%s3435_s8] sm:$0xff]  ;;  %v123_v34 = vld [vmem:[%s3435_s8 + $0x8] sm:$0xff]  ;;  %v145_v49 = vld [vmem:[%s3431_s4 + $0x18] sm:$0xff]  ;;  %s2036_s16 = sld [smem:[#allocation8 + $0x2]]  ;;  %vm974_vm2 = vcmask 1040384   ;;  %vm976_vm3 = vcmask 1041408  }
  0x37   :  { %v143_v47 = vld [vmem:[%s3431_s4 + $0x8] sm:$0xff]  ;;  %s420_s4 = sld [smem:[#allocation8]]  ;;  %vm978_vm4 = vcmask 1042432   ;;  %vm980_vm5 = vcmask 1043456   ;;  %vm982_vm6 = vcmask 1044480   ;;  %vm984_vm7 = vcmask 1045504  }
  0x38   :  { %77 = vmax.xlane.f32.xlu0 %v76_v6  ;;  %53 = vmax.xlane.f32.xlu1 %v52_v7  ;;  %s2553_s17 = sld [smem:[#allocation5]]  ;;  %vm986_vm8 = vcmask 1046528   ;;  %vm1671_vm9 = vcmask 15360   ;;  %vm1470_vm10 = vcmask 7168   ;;  %vm1751_vm11 = vcmask 0  }
  0x39   :  { %s2051_s18 = sld [smem:[#allocation8 + $0x3]] }
  0x3a   :  { %s2555_s19 = sld [smem:[#allocation5 + $0x1]] }
  0x3b   :  { %p490_p8 = scmp.gt.s32.totalorder %s2021_s15, 0  ;;  %p494_p9 = scmp.ge.s32.totalorder %s2021_s15, 0 }
  0x3c   :  { %p557_p10 = scmp.gt.s32.totalorder %s2036_s16, 0  ;;  %s2561_s21 = sld [smem:[#allocation5 + $0x2]] }
  0x3d   :  { %p423_p6 = scmp.gt.s32.totalorder %s420_s4, 0  ;;  %p427_p7 = scmp.ge.s32.totalorder %s420_s4, 0 }
  0x3e   :  { %3496 = sst [smem:[#allocation13_spill]] %s2553_s17  ;;  %s3568_s15 = smov (!%p490_p8, %s2021_s15), 0 }
  0x3f   :  { %s3566_s4 = smov (!%p423_p6, %s420_s4), 0  ;;  %3498 = sst [smem:[#allocation15_spill]] %s3568_s15 }
  0x40   :  { %3497 = sst [smem:[#allocation14_spill]] %s3566_s4  ;;  %p624_p11 = scmp.gt.s32.totalorder %s2051_s18, 0 }
  0x41   :  { %s2559_s20 = scalar_select %p427_p7, 1.0, 0.0 }
  0x42   :  { %s2565_s22 = scalar_select %p494_p9, 1.0, 0.0 }
  0x43   :  { %s2567_s23 = scalar_select %p557_p10, %s2036_s16, 0 }
  0x44   :  { %s2569_s24 = sld [smem:[#allocation5 + $0x3]]  ;;  %p561_p12 = scmp.ge.s32.totalorder %s2036_s16, 0 }
  0x45   :  { %3499 = sst [smem:[#allocation16_spill]] %s2567_s23  ;;  %p628_p13 = scmp.ge.s32.totalorder %s2051_s18, 0 }
  0x46   :  { %s2571_s25 = sld [smem:[#allocation5 + $0x4]]  ;;  %s3570_s18 = smov (!%p624_p11, %s2051_s18), 0 }
  0x47   :  { %s2066_s0 = sld [smem:[#allocation8 + $0x4]] }
  0x48   :  { %3500 = sst [smem:[#allocation17_spill]] %s3570_s18 }
  0x49   :  { %s2081_s1 = sld [smem:[#allocation8 + $0x5]] }
  0x4a   :  { %s2575_s26 = scalar_select %p561_p12, 1.0, 0.0 }
  0x4b   :  { %s2577_s27 = scalar_select %p628_p13, 1.0, 0.0 }
  0x4c   :  { %s2579_s28 = sld [smem:[#allocation5 + $0x5]] }
  0x4d   :  { %p691_p0 = scmp.gt.s32.totalorder %s2066_s0, 0  ;;  %s2096_s29 = sld [smem:[#allocation8 + $0x6]] }
  0x4e   :  { %p695_p1 = scmp.ge.s32.totalorder %s2066_s0, 0  ;;  %s2581_s30 = sld [smem:[#allocation5 + $0x6]] }
  0x4f   :  { %p758_p2 = scmp.gt.s32.totalorder %s2081_s1, 0  ;;  %s2111_s12 = sld [smem:[#allocation8 + $0x7]] }
  0x50   :  { %p762_p3 = scmp.ge.s32.totalorder %s2081_s1, 0  ;;  %s2583_s13 = sld [smem:[#allocation5 + $0x7]] }
  0x51   :  { %s3572_s0 = smov (!%p691_p0, %s2066_s0), 0  ;;  %s3574_s1 = smov (!%p758_p2, %s2081_s1), 0 }
  0x52   :  { %3501 = sst [smem:[#allocation18_spill]] %s2579_s28 }
  0x53   :  { %3504 = sst [smem:[#allocation21_spill]] %s3572_s0  ;;  %p825_p4 = scmp.gt.s32.totalorder %s2096_s29, 0 }
  0x54   :  { %3502 = sst [smem:[#allocation19_spill]] %s2581_s30  ;;  %p829_p5 = scmp.ge.s32.totalorder %s2096_s29, 0 }
  0x55   :  { %s2587_s14 = scalar_select %p695_p1, 1.0, 0.0 }
  0x56   :  { %3503 = sst [smem:[#allocation20_spill]] %s2583_s13  ;;  %p892_p6 = scmp.gt.s32.totalorder %s2111_s12, 0 }
  0x57   :  { %s2591_s2 = scalar_select %p762_p3, 1.0, 0.0 }
  0x58   :  { %s419_s3 = sld [smem:[#allocation7]]  ;;  %p896_p7 = scmp.ge.s32.totalorder %s2111_s12, 0 }
  0x59   :  { %s2020_s16 = sld [smem:[#allocation7 + $0x1]]  ;;  %s3576_s29 = smov (!%p825_p4, %s2096_s29), 0 }
  0x5a   :  { %3505 = sst [smem:[#allocation22_spill]] %s3576_s29  ;;  %s3578_s12 = smov (!%p892_p6, %s2111_s12), 0 }
  0x5b   :  { %s2595_s11 = scalar_select %p829_p5, 1.0, 0.0 }
  0x5c   :  { %3506 = sst [smem:[#allocation23_spill]] %s3578_s12 }
  0x5d   :  { %s2599_s6 = scalar_select %p896_p7, 1.0, 0.0 }
  0x5e   :  { %p421_p8 = scmp.gt.s32.totalorder %s419_s3, 0  ;;  %s2035_s5 = sld [smem:[#allocation7 + $0x2]] }
  0x5f   :  { %p425_p9 = scmp.ge.s32.totalorder %s419_s3, 0  ;;  %p488_p10 = scmp.gt.s32.totalorder %s2020_s16, 0 }
  0x60   :  { %s2601_s8 = sld [smem:[#allocation7 + $0x3]]  ;;  %p492_p11 = scmp.ge.s32.totalorder %s2020_s16, 0 }
  0x61   :  { %s3580_s3 = smov (!%p421_p8, %s419_s3), 0  ;;  %s3582_s16 = smov (!%p488_p10, %s2020_s16), 0 }
  0x62   :  { %3507 = sst [smem:[#allocation24_spill]] %s3580_s3 }
  0x63   :  { %s2605_s7 = scalar_select %p425_p9, 1.0, 0.0 }
  0x64   :  { %3508 = sst [smem:[#allocation25_spill]] %s3582_s16  ;;  %p555_p12 = scmp.gt.s32.totalorder %s2035_s5, 0 }
  0x65   :  { %s2609_s10 = scalar_select %p492_p11, 1.0, 0.0 }
  0x66   :  { %p559_p13 = scmp.ge.s32.totalorder %s2035_s5, 0  ;;  %s2613_s9 = sld [smem:[#allocation7 + $0x4]] }
  0x67   :  { %p622_p0 = scmp.gt.s32.totalorder %s2601_s8, 0  ;;  %p626_p1 = scmp.ge.s32.totalorder %s2601_s8, 0 }
  0x68   :  { %s2620_s3 = sld [smem:[#allocation7 + $0x5]] }
  0x69   :  { %s2624_s13 = scalar_select %p555_p12, %s2035_s5, 0 }
  0x6a   :  { %s2629_s16 = scalar_select %p559_p13, 1.0, 0.0 }
  0x6b   :  { %3509 = sst [smem:[#allocation26_spill]] %s2624_s13 }
  0x6c   :  { %s2636_s30 = scalar_select %p622_p0, %s2601_s8, 0 }
  0x6d   :  { %s2640_s13 = sld [smem:[#allocation7 + $0x6]]  ;;  %p689_p2 = scmp.gt.s32.totalorder %s2613_s9, 0 }
  0x6e   :  { %3510 = sst [smem:[#allocation27_spill]] %s2636_s30  ;;  %p693_p3 = scmp.ge.s32.totalorder %s2613_s9, 0 }
  0x6f   :  { %s2643_s5 = sld [smem:[#allocation7 + $0x7]]  ;;  %p760_p4 = scmp.ge.s32.totalorder %s2620_s3, 0 }
  0x70   :  { %s2653_s30 = scalar_select %p626_p1, 1.0, 0.0 }
  0x71   :  { %s3584_s9 = smov (!%p689_p2, %s2613_s9), 0  ;;  %p756_p6 = scmp.gt.s32.totalorder %s2620_s3, 0 }
  0x72   :  { %3511 = sst [smem:[#allocation28_spill]] %s3584_s9 }
  0x73   :  { %s2661_s17 = scalar_select %p693_p3, 1.0, 0.0 }
  0x74   :  { %p827_p5 = scmp.ge.s32.totalorder %s2640_s13, 0  ;;  %p823_p8 = scmp.gt.s32.totalorder %s2640_s13, 0 }
  0x75   :  { %p894_p7 = scmp.ge.s32.totalorder %s2643_s5, 0  ;;  %s2675_s9 = sld [smem:[#allocation6 + $0x1]] }
  0x76   :  { %s2666_s8 = scalar_select %p760_p4, 1.0, 0.0 }
  0x77   :  { %p890_p9 = scmp.gt.s32.totalorder %s2643_s5, 0  ;;  %s3586_s3 = smov (!%p756_p6, %s2620_s3), 0 }
  0x78   :  { %3513 = sst [smem:[#allocation30_spill]] %s3586_s3  ;;  %s3588_s13 = smov (!%p823_p8, %s2640_s13), 0 }
  0x79   :  { %3517 = sst [smem:[#allocation32_spill]] %s3588_s13  ;;  %s3590_s5 = smov (!%p890_p9, %s2643_s5), 0 }
  0x7a   :  { %3519 = sst [smem:[#allocation33_spill]] %s3590_s5 }
  0x7b   :  { %3512 = sst [smem:[#allocation29_spill]] %s2675_s9 }
  0xbd   :  { %v81_v8 = vpop.xlane.xlu0 %80  ;;  %v57_v9 = vpop.xlane.xlu1 %56 }
  0xbe   :  { %v83_v10 = vsub.f32 %v75_v0, %v81_v8  ;;  %v59_v11 = vsub.f32 %v50_v2, %v57_v9 }
  0xc0   :  { %v86_v12 = vmul.f32 1.442695, %v83_v10  ;;  %v62_v13 = vmul.f32 1.442695, %v59_v11 }
  0xc1   :  { %v78_v14 = vpop.xlane.xlu0 %77  ;;  %v54_v15 = vpop.xlane.xlu1 %53 }
  0xc2   :  { %2204 = vpow2.f32 %v86_v12  ;;  %v82_v16 = vsub.f32 %v74_v1, %v78_v14  ;;  %v58_v17 = vsub.f32 %v49_v5, %v54_v15 }
  0xc3   :  { %2206 = vpow2.f32 %v62_v13 }
  0xc4   :  { %v84_v18 = vmul.f32 1.442695, %v82_v16  ;;  %v60_v19 = vmul.f32 1.442695, %v58_v17 }
  0xc6   :  { %2208 = vpow2.f32 %v84_v18 }
  0xc7   :  { %2210 = vpow2.f32 %v60_v19 }
  0xcf   :  { %v2205_v20 = vpop.eup %2204 }
  0xd0   :  { %v2207_v21 = vpop.eup %2206  ;;  %v91_v22 = vsel %vm51_vm0, %v2205_v20, 0.0 }
  0xd1   :  { %92 = vadd.xlane.f32.xlu0 %v91_v22  ;;  %v67_v23 = vsel %vm51_vm0, %v2207_v21, 0.0 }
  0xd3   :  { %v2209_v24 = vpop.eup %2208 }
  0xd4   :  { %v2211_v25 = vpop.eup %2210  ;;  %v88_v26 = vsel %vm51_vm0, %v2209_v24, 0.0 }
  0xd5   :  { %68 = vadd.xlane.f32.xlu0 %v67_v23  ;;  %89 = vadd.xlane.f32.xlu1 %v88_v26  ;;  %v64_v27 = vsel %vm51_vm0, %v2211_v25, 0.0 }
  0xd9   :  { %65 = vadd.xlane.f32.xlu1 %v64_v27 }
  0xea   :  { %111 = vperm.xlu1 %2201, %v103_v29  }
  0xeb   :  { %106 = vperm.xlu0 %2200, %v102_v31  }
  0xee   :  { %126 = vperm.xlu1 %2201, %v122_v32  }
  0xef   :  { %2203 = vset.pattern.permute.xlu0 %v2355_v33 }
  0xf2   :  { %131 = vperm.xlu1 %2201, %v123_v34  }
  0xf6   :  { %2202 = vset.pattern.permute.xlu1 %v2355_v33 }
  0xf7   :  { %115 = vperm.xlu1 %2202, %v102_v31  }
  0xfb   :  { %119 = vperm.xlu1 %2202, %v103_v29  }
  0xff   :  { %135 = vperm.xlu1 %2202, %v122_v32  }
 0x103   :  { %139 = vperm.xlu1 %2202, %v123_v34  }
 0x15a   :  { %v93_v35 = vpop.xlane.xlu0 %92 }
 0x15b   :  { %2212 = vrcp.f32 %v93_v35 }
 0x15e   :  { %v69_v36 = vpop.xlane.xlu0 %68  ;;  %v90_v37 = vpop.xlane.xlu1 %89 }
 0x15f   :  { %2214 = vrcp.f32 %v69_v36 }
 0x160   :  { %2216 = vrcp.f32 %v90_v37 }
 0x162   :  { %v66_v38 = vpop.xlane.xlu1 %65 }
 0x163   :  { %2218 = vrcp.f32 %v66_v38 }
 0x166   :  { %v2502_v50 = vpop.permute.xlu1 %111  ;;  %v2516_v57 = vpop.permute.xlu0 %106 }
 0x168   :  { %v2213_v39 = vpop.eup %2212 }
 0x169   :  { %v2466_v40 = vmul.f32 %v2213_v39, %v2205_v20 }
 0x16a   :  { %v2504_v51 = vpop.permute.xlu1 %126 }
 0x16b   :  { %101 = vst.msk [vmem:[#allocation3 + $0x18] sm:$0xff] %vm51_vm0, %v2466_v40  ;;  %2141 = vmatprep.subr.mxu0 %v2466_v40 }
 0x16c   :  { %v2215_v41 = vpop.eup %2214  ;;  %2142 = vmatpush3.msra.mxu0 %v2466_v40 }
 0x16d   :  { %v2217_v42 = vpop.eup %2216  ;;  %v2472_v43 = vmul.f32 %v2215_v41, %v2207_v21 }
 0x16e   :  { %v2474_v44 = vmul.f32 %v2217_v42, %v2209_v24  ;;  %v2506_v52 = vpop.permute.xlu1 %131 }
 0x16f   :  { %99 = vst.msk [vmem:[#allocation3 + $0x8] sm:$0xff] %vm51_vm0, %v2472_v43 }
 0x170   :  { %v2219_v45 = vpop.eup %2218  ;;  %100 = vst.msk [vmem:[#allocation3 + $0x10] sm:$0xff] %vm51_vm0, %v2474_v44  ;;  %2143 = vmatprep.subr.mxu0 %v2474_v44 }
 0x171   :  { %2144 = vmatpush3.msra.mxu0 %v2474_v44  ;;  %v2482_v46 = vmul.f32 %v2219_v45, %v2211_v25 }
 0x172   :  { %2145 = vmatprep.subr.mxu0 %v2472_v43  ;;  %v2508_v53 = vpop.permute.xlu1 %115 }
 0x173   :  { %2146 = vmatpush3.msra.mxu0 %v2472_v43  ;;  %98 = vst.msk [vmem:[#allocation3] sm:$0xff] %vm51_vm0, %v2482_v46 }
 0x174   :  { %2147 = vmatprep.subr.mxu0 %v2482_v46 }
 0x175   :  { %2148 = vmatpush3.msra.mxu0 %v2482_v46 }
 0x176   :  { %2150 = vmatmul.mubr.msk.f32.vlgmr.msra.gmra.mxu0 %vm146_vm1, %v143_v47  ;;  %v2510_v54 = vpop.permute.xlu1 %119 }
 0x177   :  { %2152 = vmatprep.mubr.msk.f32.mxu0 %vm146_vm1, %v144_v48 }
 0x17a   :  { %2153 = vmatmul.mubr.msk.f32.gmra.mxu0 %vm146_vm1, %v145_v49  ;;  %v2512_v55 = vpop.permute.xlu1 %135 }
 0x17e   :  { %v2527_v63 = vpop.permute.xlu1 %139 }
 0x236   :  { %v2514_v56 = vpop.f32.mrf.mxu0 }
 0x237   :  { %v249_v58 = vmul.f32 %v2514_v56, %v2502_v50  ;;  %v245_v22 = vadd.f32 %v2514_v56, %v2472_v43 }
 0x238   :  { %v2520_v59 = vpop.f32.mrf.mxu0 }
 0x239   :  { %v251_v60 = vadd.f32 %v249_v58, %v2510_v54  ;;  %v248_v61 = vmul.f32 %v2520_v59, %v2516_v57  ;;  %v244_v26 = vadd.f32 %v2520_v59, %v2482_v46  ;;  %v2700_v58 = vstv %s2605_s7  ;;  %s563_s7 = scalar_lea.vmem [#allocation2], %s2561_s21 }
 0x23a   :  { %v2525_v62 = vpop.f32.mrf.mxu0 }
 0x23b   :  { %v1996_v0 = vmul.f32 -1.442695, %v251_v60  ;;  %v250_v1 = vadd.f32 %v248_v61, %v2508_v53  ;;  %2155 = vmatprep.subr.mxu1 %v2525_v62  ;;  %v267_v2 = vmul.f32 %v2525_v62, %v2506_v52  ;;  %v247_v28 = vadd.f32 %v2525_v62, %v2466_v40 }
 0x23c   :  { %v2533_v3 = vpop.f32.mrf.mxu0  ;;  %2156 = vmatpush3.msra.mxu1 %v2525_v62  ;;  %v2712_v62 = vstv %s2609_s10  ;;  %s1884_s10 = scalar_lea.vmem [#allocation2], %s3572_s0 }
 0x23d   :  { %2220 = vpow2.f32 %v1996_v0  ;;  %v1995_v4 = vmul.f32 -1.442695, %v250_v1  ;;  %v266_v5 = vmul.f32 %v2533_v3, %v2504_v51  ;;  %v269_v6 = vadd.f32 %v267_v2, %v2527_v63  ;;  %2157 = vmatprep.subr.mxu1 %v2533_v3 }
 0x23e   :  { %2158 = vmatpush3.msra.mxu1 %v2533_v3  ;;  %v246_v34 = vadd.f32 %v2533_v3, %v2474_v44  ;;  %v2720_v3 = vstv %s2629_s16  ;;  %s1912_s16 = scalar_lea.vmem [#allocation2], %s3574_s1 }
 0x23f   :  { %2222 = vpow2.f32 %v1995_v4  ;;  %v268_v7 = vadd.f32 %v266_v5, %v2512_v55  ;;  %v1998_v8 = vmul.f32 -1.442695, %v269_v6  ;;  %2159 = vmatprep.subr.mxu1 %v2514_v56 }
 0x240   :  { %2160 = vmatpush3.msra.mxu1 %v2514_v56  ;;  %v2694_v56 = vstv %s2595_s11  ;;  %s1828_s11 = scalar_lea.vmem [#allocation2], %s2567_s23 }
 0x241   :  { %v1997_v9 = vmul.f32 -1.442695, %v268_v7  ;;  %2224 = vpow2.f32 %v1998_v8  ;;  %2161 = vmatprep.subr.mxu1 %v2520_v59  ;;  %v2725_v7 = vstv %s2653_s30  ;;  %v2728_v8 = vstv %s2661_s17  ;;  %s697_s17 = scalar_lea.vmem [#allocation2], %s2571_s25  ;;  %s3514_s30 = sld [smem:[#allocation13_spill]] }
 0x242   :  { %2162 = vmatpush3.msra.mxu1 %v2520_v59 }
 0x243   :  { %2226 = vpow2.f32 %v1997_v9  ;;  %2164 = vmatmul.mubr.msk.f32.vlgmr.msra.gmra.mxu1 %vm146_vm1, %v143_v47 }
 0x244   :  { %2166 = vmatprep.mubr.msk.f32.mxu1 %vm146_vm1, %v144_v48 }
 0x247   :  { %2167 = vmatmul.mubr.msk.f32.gmra.mxu1 %vm146_vm1, %v145_v49 }
 0x24a   :  { %v2221_v10 = vpop.eup %2220 }
 0x24b   :  { %v259_v11 = vadd.f32 1.0, %v2221_v10 }
 0x24c   :  { %v2223_v12 = vpop.eup %2222 }
 0x24d   :  { %2228 = vrcp.f32 %v259_v11  ;;  %v258_v13 = vadd.f32 1.0, %v2223_v12 }
 0x24e   :  { %v2225_v14 = vpop.eup %2224 }
 0x24f   :  { %2230 = vrcp.f32 %v258_v13  ;;  %v277_v15 = vadd.f32 1.0, %v2225_v14 }
 0x250   :  { %v2227_v16 = vpop.eup %2226 }
 0x251   :  { %v276_v17 = vadd.f32 1.0, %v2227_v16  ;;  %2232 = vrcp.f32 %v277_v15  ;;  %v2744_v15 = vstv %s2666_s8  ;;  %s764_s8 = scalar_lea.vmem [#allocation2], %s2579_s28 }
 0x253   :  { %2234 = vrcp.f32 %v276_v17 }
 0x25a   :  { %v2229_v18 = vpop.eup %2228 }
 0x25b   :  { %265 = vst.msk [vmem:[#allocation3 + $0x28] sm:$0xff] %vm51_vm0, %v2229_v18 }
 0x25c   :  { %v2231_v19 = vpop.eup %2230 }
 0x25d   :  { %264 = vst.msk [vmem:[#allocation3 + $0x20] sm:$0xff] %vm51_vm0, %v2231_v19 }
 0x25e   :  { %v2233_v20 = vpop.eup %2232 }
 0x25f   :  { %283 = vst.msk [vmem:[#allocation3 + $0x38] sm:$0xff] %vm51_vm0, %v2233_v20 }
 0x260   :  { %v2235_v21 = vpop.eup %2234 }
 0x261   :  { %282 = vst.msk [vmem:[#allocation3 + $0x30] sm:$0xff] %vm51_vm0, %v2235_v21 }
 0x303   :  { %v2165_v23 = vpop.f32.mrf.mxu1 }
 0x304   :  { %v370_v24 = vadd.f32 %v2165_v23, %v245_v22  ;;  %v374_v25 = vmul.f32 %v2165_v23, %v2502_v50  ;;  %v2669_v50 = vstv %s2559_s20  ;;  %s2688_s20 = scalar_select %p827_p5, 1.0, 0.0 }
 0x305   :  { %v350_v27 = vpop.f32.mrf.mxu1 }
 0x306   :  { %v376_v29 = vadd.f32 %v374_v25, %v2510_v54  ;;  %v410_v30 = vmul.f32 0.33333334, %v370_v24  ;;  %v369_v31 = vadd.f32 %v350_v27, %v244_v26  ;;  %v373_v32 = vmul.f32 %v350_v27, %v2516_v57 }
 0x307   :  { %v2168_v33 = vpop.f32.mrf.mxu1  ;;  %v2684_v54 = vstv %s2587_s14  ;;  %v2697_v57 = vstv %s2599_s6  ;;  %s1772_s6 = scalar_lea.vmem [#allocation2], %s3566_s4  ;;  %s630_s14 = scalar_lea.vmem [#allocation2], %s2569_s24  ;;  %v2748_v18 = vstv %s2688_s20 }
 0x308   :  { %v2004_v35 = vmul.f32 -1.442695, %v376_v29  ;;  %414 = vst.msk [vmem:[#allocation2 + $0x8] sm:$0xff] %vm51_vm0, %v410_v30  ;;  %v375_v36 = vadd.f32 %v373_v32, %v2508_v53  ;;  %v409_v37 = vmul.f32 0.33333334, %v369_v31  ;;  %v372_v38 = vadd.f32 %v2168_v33, %v247_v28  ;;  %s429_s20 = scalar_lea.vmem [#allocation2], %s3514_s30 }
 0x309   :  { %v392_v39 = vmul.f32 %v2168_v33, %v2506_v52  ;;  %v360_v40 = vpop.f32.mrf.mxu1  ;;  %v2678_v52 = vstv %s2575_s26  ;;  %v2681_v53 = vstv %s2577_s27  ;;  %s496_s26 = scalar_lea.vmem [#allocation2], %s2555_s19  ;;  %s1800_s27 = scalar_lea.vmem [#allocation2], %s3568_s15 }
 0x30a   :  { %2236 = vpow2.f32 %v2004_v35  ;;  %v2003_v41 = vmul.f32 -1.442695, %v375_v36  ;;  %413 = vst.msk [vmem:[#allocation2] sm:$0xff] %vm51_vm0, %v409_v37  ;;  %v412_v42 = vmul.f32 0.33333334, %v372_v38  ;;  %v371_v43 = vadd.f32 %v360_v40, %v246_v34 }
 0x30b   :  { %v394_v44 = vadd.f32 %v392_v39, %v2527_v63  ;;  %v391_v45 = vmul.f32 %v360_v40, %v2504_v51  ;;  %v2672_v51 = vstv %s2565_s22  ;;  %s2704_s22 = scalar_select %p894_p7, 1.0, 0.0 }
 0x30c   :  { %2238 = vpow2.f32 %v2003_v41  ;;  %416 = vst.msk [vmem:[#allocation2 + $0x18] sm:$0xff] %vm51_vm0, %v412_v42  ;;  %v411_v46 = vmul.f32 0.33333334, %v371_v43 }
 0x30d   :  { %v2006_v47 = vmul.f32 -1.442695, %v394_v44  ;;  %v393_v48 = vadd.f32 %v391_v45, %v2512_v55  ;;  %v2691_v55 = vstv %s2591_s2  ;;  %s1856_s2 = scalar_lea.vmem [#allocation2], %s3570_s18  ;;  %v2751_v19 = vstv %s2704_s22  ;;  %s3518_s22 = sld [smem:[#allocation25_spill]] }
 0x30e   :  { %415 = vst.msk [vmem:[#allocation2 + $0x10] sm:$0xff] %vm51_vm0, %v411_v46 }
 0x30f   :  { %2240 = vpow2.f32 %v2006_v47  ;;  %v2005_v49 = vmul.f32 -1.442695, %v393_v48 }
 0x311   :  { %2242 = vpow2.f32 %v2005_v49 }
 0x315   :  { %v2707_v59 = vld [vmem:[%s496_s26] sm:$0x1]  ;;  %v2024_v60 = vld [vmem:[%s1800_s27 + $0x10] sm:$0x1]  ;;  %s1940_s26 = scalar_lea.vmem [#allocation2], %s3576_s29  ;;  %s2753_s27 = sld [smem:[#allocation6 + $0x2]] }
 0x316   :  { %v2039_v61 = vld [vmem:[%s1828_s11 + $0x10] sm:$0x1]  ;;  %v564_v1 = vld [vmem:[%s563_s7] sm:$0x1]  ;;  %v510_v10 = vmul.f32 %v2024_v60, %v2672_v51  ;;  %v954_v14 = vrot.slane %v2707_v59, 7  ;;  %s3516_s11 = sld [smem:[#allocation19_spill]] }
 0x317   :  { %v2237_v63 = vpop.eup %2236  ;;  %v2009_v0 = vld [vmem:[%s1772_s6 + $0x10] sm:$0x1]  ;;  %v2717_v2 = vld [vmem:[%s630_s14] sm:$0x1]  ;;  %v2733_v11 = vmul.f32 %v2039_v61, %v2678_v52  ;;  %s1968_s6 = scalar_lea.vmem [#allocation2], %s3578_s12  ;;  %v957_v25 = vrot.slane %v564_v1, 6 }
 0x318   :  { %v384_v4 = vadd.f32 1.0, %v2237_v63  ;;  %v2054_v5 = vld [vmem:[%s1856_s2 + $0x10] sm:$0x1]  ;;  %v698_v17 = vld [vmem:[%s697_s17] sm:$0x1]  ;;  %v443_v20 = vmul.f32 %v2009_v0, %v2669_v50  ;;  %v960_v31 = vrot.slane %v2717_v2, 5 }
 0x319   :  { %v2069_v6 = vld [vmem:[%s1884_s10 + $0x10] sm:$0x1]  ;;  %v2239_v9 = vpop.eup %2238  ;;  %v644_v21 = vmul.f32 %v2054_v5, %v2681_v53  ;;  %v765_v23 = vld [vmem:[%s764_s8] sm:$0x1]  ;;  %s3520_s14 = sld [smem:[#allocation20_spill]]  ;;  %v1045_v34 = vrot.slane %v510_v10, 7 }
 0x31a   :  { %v2084_v12 = vld [vmem:[%s1912_s16 + $0x10] sm:$0x1]  ;;  %2244 = vrcp.f32 %v384_v4  ;;  %v383_v16 = vadd.f32 1.0, %v2239_v9  ;;  %v2758_v22 = vmul.f32 %v2069_v6, %v2684_v54  ;;  %v430_v27 = vld [vmem:[%s429_s20] sm:$0x1]  ;;  %v1048_v35 = vrot.slane %v2733_v11, 6 }
 0x31b   :  { %v2099_v13 = vld [vmem:[%s1940_s26 + $0x10] sm:$0x1]  ;;  %3515 = sst [smem:[#allocation31_spill]] %s2753_s27  ;;  %v778_v28 = vmul.f32 %v2084_v12, %v2691_v55  ;;  %v975_v33 = vsel %vm974_vm2, %v430_v27, %v954_v14  ;;  %v963_v38 = vrot.slane %v698_v17, 4  ;;  %v966_v39 = vrot.slane %v765_v23, 3  ;;  %s1798_s26 = scalar_lea.vmem [#allocation2], %s3518_s22 }
 0x31c   :  { %v2114_v24 = vld [vmem:[%s1968_s6 + $0x10] sm:$0x1]  ;;  %v2241_v26 = vpop.eup %2240  ;;  %2246 = vrcp.f32 %v383_v16  ;;  %s831_s7 = scalar_lea.vmem [#allocation2], %s3516_s11  ;;  %v845_v30 = vmul.f32 %v2099_v13, %v2694_v56  ;;  %s3521_s2 = sld [smem:[#allocation26_spill]]  ;;  %v977_v40 = vsel %vm976_vm3, %v975_v33, %v957_v25  ;;  %v1051_v48 = vrot.slane %v644_v21, 5 }
 0x31d   :  { %v832_v29 = vld [vmem:[%s831_s7] sm:$0x1]  ;;  %v402_v32 = vadd.f32 1.0, %v2241_v26  ;;  %s2779_s10 = sld [smem:[#allocation6]]  ;;  %v912_v37 = vmul.f32 %v2114_v24, %v2697_v57  ;;  %v2023_v41 = vld [vmem:[%s1798_s26 + $0x10] sm:$0x1]  ;;  %v979_v45 = vsel %vm978_vm4, %v977_v40, %v960_v31  ;;  %v1065_v59 = vsel %vm974_vm2, %v443_v20, %v1045_v34 }
 0x31e   :  { %v2243_v36 = vpop.eup %2242  ;;  %s3523_s16 = sld [smem:[#allocation27_spill]]  ;;  %v969_v44 = vrot.slane %v832_v29, 2  ;;  %v981_v47 = vsel %vm980_vm5, %v979_v45, %v963_v38  ;;  %v1054_v49 = vrot.slane %v2758_v22, 4  ;;  %v1066_v63 = vsel %vm976_vm3, %v1065_v59, %v1048_v35  ;;  %s1966_s29 = scalar_lea.vmem [#allocation2], %s3590_s5 }
 0x31f   :  { %s2784_s17 = sld [smem:[#allocation6 + $0x3]]  ;;  %2248 = vrcp.f32 %v402_v32  ;;  %v401_v42 = vadd.f32 1.0, %v2243_v36  ;;  %s898_s8 = scalar_lea.vmem [#allocation2], %s3520_s14  ;;  %v983_v61 = vsel %vm982_vm6, %v981_v47, %v966_v39  ;;  %v505_v0 = vmul.f32 %v2023_v41, %v2712_v62  ;;  %v2113_v17 = vld [vmem:[%s1966_s29 + $0x10] sm:$0x1] }
 0x320   :  { %s3525_s6 = sld [smem:[#allocation28_spill]]  ;;  %v899_v43 = vld [vmem:[%s898_s8] sm:$0x1]  ;;  %v1057_v4 = vrot.slane %v778_v28, 3  ;;  %v1067_v5 = vsel %vm978_vm4, %v1066_v63, %v1051_v48  ;;  %v985_v11 = vsel %vm984_vm7, %v983_v61, %v969_v44  ;;  %v1060_v12 = vrot.slane %v845_v30, 2  ;;  %s1824_s29 = scalar_lea.vmem [#allocation2], %s2753_s27 }
 0x321   :  { %s3526_s7 = sld [smem:[#allocation24_spill]]  ;;  %2250 = vrcp.f32 %v401_v42  ;;  %v972_v2 = vrot.slane %v899_v43, 1  ;;  %v1068_v13 = vsel %vm980_vm5, %v1067_v5, %v1054_v49  ;;  %v1063_v20 = vrot.slane %v912_v37, 1  ;;  %v2037_v33 = vld [vmem:[%s1824_s29 + $0x10] sm:$0x1] }
 0x322   :  { %s1826_s20 = scalar_lea.vmem [#allocation2], %s3521_s2  ;;  %v1069_v21 = vsel %vm982_vm6, %v1068_v13, %v1057_v4  ;;  %v1017_v23 = vrot.slane %v505_v0, 7  ;;  %v907_v32 = vmul.f32 %v2113_v17, %v2751_v19 }
 0x323   :  { %3522 = sst [smem:[#allocation34_spill]] %s2779_s10  ;;  %v2038_v46 = vld [vmem:[%s1826_s20 + $0x10] sm:$0x1]  ;;  %v1070_v25 = vsel %vm984_vm7, %v1069_v21, %v1060_v12  ;;  %v2815_v29 = vsel %vm986_vm8, %v985_v11, %v972_v2  ;;  %s1768_s29 = scalar_lea.vmem [#allocation2], %s2779_s10 }
 0x324   :  { %s1854_s26 = scalar_lea.vmem [#allocation2], %s3523_s16  ;;  %s2797_s20 = sld [smem:[#allocation6 + $0x4]]  ;;  %v572_v9 = vmul.f32 %v2038_v46, %v2720_v3  ;;  %v1071_v30 = vsel %vm986_vm8, %v1070_v25, %v1063_v20  ;;  %v2007_v45 = vld [vmem:[%s1768_s29 + $0x10] sm:$0x1]  ;;  %v992_v46 = vrot.slane %v2037_v33, 6  ;;  %v1035_v59 = vrot.slane %v907_v32, 1 }
 0x325   :  { %3524 = sst [smem:[#allocation35_spill]] %s2784_s17  ;;  %v2053_v60 = vld [vmem:[%s1854_s26 + $0x10] sm:$0x1]  ;;  %s1910_s26 = scalar_lea.vmem [#allocation2], %s3586_s3  ;;  %v1444_v35 = vmul.f32 %v1071_v30, %v2815_v29 }
 0x326   :  { %s1882_s8 = scalar_lea.vmem [#allocation2], %s3525_s6  ;;  %v2083_v10 = vld [vmem:[%s1910_s26 + $0x10] sm:$0x1]  ;;  %v639_v14 = vmul.f32 %v2053_v60, %v2725_v7  ;;  %v1020_v28 = vrot.slane %v572_v9, 6  ;;  %s2821_s26 = sld [smem:[#allocation6 + $0x5]] }
 0x327   :  { %v2068_v1 = vld [vmem:[%s1882_s8 + $0x10] sm:$0x1]  ;;  %s1770_s12 = scalar_lea.vmem [#allocation2], %s3526_s7  ;;  %s1938_s8 = scalar_lea.vmem [#allocation2], %s3588_s13  ;;  %v773_v27 = vmul.f32 %v2083_v10, %v2744_v15  ;;  %v2245_v34 = vpop.eup %2244  ;;  %v1445_v42 = vsel %vm51_vm0, %v1444_v35, 0.0 }
 0x328   :  { %v2008_v6 = vld [vmem:[%s1770_s12 + $0x10] sm:$0x1]  ;;  %v706_v22 = vmul.f32 %v2068_v1, %v2728_v8  ;;  %s1796_s12 = scalar_lea.vmem [#allocation2], %s2675_s9  ;;  %v1023_v36 = vrot.slane %v639_v14, 5  ;;  %390 = vst.msk [vmem:[#allocation3 + $0x48] sm:$0xff] %vm51_vm0, %v2245_v34  ;;  %1446 = vadd.xlane.f32.xlu0 %v1445_v42  ;;  %s1852_s27 = scalar_lea.vmem [#allocation2], %s2784_s17 }
 0x329   :  { %v2098_v16 = vld [vmem:[%s1938_s8 + $0x10] sm:$0x1]  ;;  %v438_v26 = vmul.f32 %v2008_v6, %v2700_v58  ;;  %s2825_s8 = sld [smem:[#allocation6 + $0x6]]  ;;  %v2247_v41 = vpop.eup %2246  ;;  %v1029_v43 = vrot.slane %v773_v27, 3  ;;  %s2918_s10 = scalar_lea.vmem [#allocation3], %s3590_s5 }
 0x32a   :  { %3527 = sst [smem:[#allocation36_spill]] %s2797_s20  ;;  %v2022_v24 = vld [vmem:[%s1796_s12 + $0x10] sm:$0x1]  ;;  %v840_v31 = vmul.f32 %v2098_v16, %v2748_v18  ;;  %v1026_v39 = vrot.slane %v706_v22, 4  ;;  %389 = vst.msk [vmem:[#allocation3 + $0x40] sm:$0xff] %vm51_vm0, %v2247_v41  ;;  %s1880_s29 = scalar_lea.vmem [#allocation2], %s2797_s20 }
 0x32b   :  { %v1037_v37 = vsel %vm974_vm2, %v438_v26, %v1017_v23  ;;  %v989_v38 = vrot.slane %v2022_v24, 7  ;;  %s2829_s12 = sld [smem:[#allocation6 + $0x7]]  ;;  %v2052_v61 = vld [vmem:[%s1852_s27 + $0x10] sm:$0x1]  ;;  %s2924_s9 = scalar_lea.vmem [#allocation3], %s3520_s14 }
 0x32c   :  { %3528 = sst [smem:[#allocation37_spill]] %s2821_s26  ;;  %v1038_v40 = vsel %vm976_vm3, %v1037_v37, %v1020_v28  ;;  %v1032_v47 = vrot.slane %v840_v31, 2  ;;  %v2249_v63 = vpop.eup %2248  ;;  %v2067_v6 = vld [vmem:[%s1880_s29 + $0x10] sm:$0x1]  ;;  %v995_v9 = vrot.slane %v2052_v61, 5  ;;  %s1908_s27 = scalar_lea.vmem [#allocation2], %s2821_s26 }
 0x32d   :  { %v1039_v44 = vsel %vm978_vm4, %v1038_v40, %v1023_v36  ;;  %v1009_v49 = vsel %vm974_vm2, %v2007_v45, %v989_v38  ;;  %408 = vst.msk [vmem:[#allocation3 + $0x58] sm:$0xff] %vm51_vm0, %v2249_v63  ;;  %v2082_v12 = vld [vmem:[%s1908_s27 + $0x10] sm:$0x1]  ;;  %v998_v13 = vrot.slane %v2067_v6, 4  ;;  %s2855_s29 = scalar_lea.vmem [#allocation3], %s3526_s7  ;;  %s2859_s26 = scalar_lea.vmem [#allocation3], %s3518_s22 }
 0x32e   :  { %v1040_v48 = vsel %vm980_vm5, %v1039_v44, %v1026_v39  ;;  %v1010_v2 = vsel %vm976_vm3, %v1009_v49, %v992_v46  ;;  %v2251_v4 = vpop.eup %2250  ;;  %v1001_v20 = vrot.slane %v2082_v12, 3  ;;  %s2873_s27 = scalar_lea.vmem [#allocation3], %s2561_s21  ;;  %s2877_s7 = scalar_lea.vmem [#allocation3], %s3523_s16 }
 0x32f   :  { %3529 = sst [smem:[#allocation38_spill]] %s2825_s8  ;;  %v1041_v60 = vsel %vm982_vm6, %v1040_v48, %v1029_v43  ;;  %407 = vst.msk [vmem:[#allocation3 + $0x50] sm:$0xff] %vm51_vm0, %v2251_v4  ;;  %v1011_v11 = vsel %vm978_vm4, %v1010_v2, %v995_v9  ;;  %s1936_s17 = scalar_lea.vmem [#allocation2], %s2825_s8 }
 0x330   :  { %v1042_v0 = vsel %vm984_vm7, %v1041_v60, %v1032_v47  ;;  %v2097_v14 = vld [vmem:[%s1936_s17 + $0x10] sm:$0x1]  ;;  %v1012_v17 = vsel %vm980_vm5, %v1011_v11, %v998_v13  ;;  %s2865_s17 = scalar_lea.vmem [#allocation3], %s2555_s19  ;;  %s2881_s22 = scalar_lea.vmem [#allocation3], %s2569_s24 }
 0x331   :  { %3530 = sst [smem:[#allocation39_spill]] %s2829_s12  ;;  %v1043_v1 = vsel %vm986_vm8, %v1042_v0, %v1035_v59  ;;  %s1964_s20 = scalar_lea.vmem [#allocation2], %s2829_s12  ;;  %v1004_v23 = vrot.slane %v2097_v14, 2  ;;  %v1013_v25 = vsel %vm982_vm6, %v1012_v17, %v1001_v20 }
 0x332   :  { %v1440_v5 = vmul.f32 %v1043_v1, %v2815_v29  ;;  %v2851_v16 = vld [vmem:[%s1964_s20 + $0x10] sm:$0x1]  ;;  %s2869_s20 = scalar_lea.vmem [#allocation3], %s3521_s2  ;;  %s2885_s12 = scalar_lea.vmem [#allocation3], %s3525_s6 }
 0x333   :  { %v1007_v24 = vrot.slane %v2851_v16, 1  ;;  %s2891_s2 = scalar_lea.vmem [#allocation3], %s2571_s25  ;;  %s2895_s16 = scalar_lea.vmem [#allocation3], %s3586_s3  ;;  %v2903_v38 = vsel %vm984_vm7, %v1013_v25, %v1004_v23 }
 0x334   :  { %v1441_v10 = vsel %vm51_vm0, %v1440_v5, 0.0  ;;  %s2899_s8 = scalar_lea.vmem [#allocation3], %s2579_s28  ;;  %s2910_s3 = scalar_lea.vmem [#allocation3], %s3588_s13 }
 0x335   :  { %1442 = vadd.xlane.f32.xlu1 %v1441_v10  ;;  %s2914_s6 = scalar_lea.vmem [#allocation3], %s3516_s11  ;;  %s2928_s13 = scalar_lea.vmem [#allocation3], %s3514_s30 }
 0x336   :  { %v2010_v21 = vld [vmem:[%s2855_s29 + $0x10] sm:$0x1]  ;;  %v2027_v26 = vld [vmem:[%s2865_s17 + $0x20] sm:$0x1]  ;;  %s2982_s5 = scalar_lea.vmem [#allocation3], %s3566_s4  ;;  %s2988_s14 = scalar_lea.vmem [#allocation3], %s3568_s15 }
 0x337   :  { %v2025_v22 = vld [vmem:[%s2859_s26 + $0x10] sm:$0x1]  ;;  %v2042_v28 = vld [vmem:[%s2873_s27 + $0x20] sm:$0x1]  ;;  %v458_v39 = vmul.f32 %v2010_v21, %v2700_v58  ;;  %v1213_v49 = vrot.slane %v2027_v26, 7  ;;  %s2992_s11 = scalar_lea.vmem [#allocation3], %s2567_s23 }
 0x338   :  { %v2040_v27 = vld [vmem:[%s2869_s20 + $0x10] sm:$0x1]  ;;  %v2057_v31 = vld [vmem:[%s2881_s22 + $0x20] sm:$0x1]  ;;  %v525_v33 = vmul.f32 %v2025_v22, %v2712_v62  ;;  %v1216_v59 = vrot.slane %v2042_v28, 6  ;;  %s3531_s4 = sld [smem:[#allocation22_spill]] }
 0x339   :  { %v2055_v30 = vld [vmem:[%s2877_s7 + $0x10] sm:$0x1]  ;;  %v592_v34 = vmul.f32 %v2040_v27, %v2720_v3  ;;  %v2072_v35 = vld [vmem:[%s2891_s2 + $0x20] sm:$0x1]  ;;  %v1219_v61 = vrot.slane %v2057_v31, 5  ;;  %s2999_s28 = scalar_lea.vmem [#allocation3], %s3570_s18 }
 0x33a   :  { %v2070_v32 = vld [vmem:[%s2885_s12 + $0x10] sm:$0x1]  ;;  %v2087_v37 = vld [vmem:[%s2899_s8 + $0x20] sm:$0x1]  ;;  %v659_v40 = vmul.f32 %v2055_v30, %v2725_v7  ;;  %v1222_v63 = vrot.slane %v2072_v35, 4  ;;  %v1269_v5 = vrot.slane %v525_v33, 7 }
 0x33b   :  { %v2085_v36 = vld [vmem:[%s2895_s16 + $0x10] sm:$0x1]  ;;  %v726_v41 = vmul.f32 %v2070_v32, %v2728_v8  ;;  %v2102_v44 = vld [vmem:[%s2914_s6 + $0x20] sm:$0x1]  ;;  %v1225_v0 = vrot.slane %v2087_v37, 3  ;;  %v1272_v6 = vrot.slane %v592_v34, 6 }
 0x33c   :  { %v793_v42 = vmul.f32 %v2085_v36, %v2744_v15  ;;  %v2100_v43 = vld [vmem:[%s2910_s3 + $0x10] sm:$0x1]  ;;  %v2117_v48 = vld [vmem:[%s2924_s9 + $0x20] sm:$0x1]  ;;  %v1228_v1 = vrot.slane %v2102_v44, 2  ;;  %v1275_v11 = vrot.slane %v659_v40, 5  ;;  %v1289_v22 = vsel %vm974_vm2, %v458_v39, %v1269_v5 }
 0x33d   :  { %v2115_v45 = vld [vmem:[%s2918_s10 + $0x10] sm:$0x1]  ;;  %v860_v46 = vmul.f32 %v2100_v43, %v2748_v18  ;;  %v2012_v60 = vld [vmem:[%s2928_s13 + $0x20] sm:$0x1]  ;;  %v1231_v2 = vrot.slane %v2117_v48, 1  ;;  %v1278_v12 = vrot.slane %v726_v41, 4  ;;  %v1290_v27 = vsel %vm976_vm3, %v1289_v22, %v1272_v6 }
 0x33e   :  { %v927_v47 = vmul.f32 %v2115_v45, %v2751_v19  ;;  %v1233_v4 = vsel %vm974_vm2, %v2012_v60, %v1213_v49  ;;  %v2013_v9 = vld [vmem:[%s2855_s29 + $0x30] sm:$0x1]  ;;  %v1281_v13 = vrot.slane %v793_v42, 3  ;;  %v522_v23 = vld [vmem:[%s2865_s17] sm:$0x1]  ;;  %v1291_v35 = vsel %vm978_vm4, %v1290_v27, %v1275_v11  ;;  %s3532_s23 = sld [smem:[#allocation23_spill]] }
 0x33f   :  { %v1234_v10 = vsel %vm976_vm3, %v1233_v4, %v1216_v59  ;;  %v2028_v14 = vld [vmem:[%s2859_s26 + $0x30] sm:$0x1]  ;;  %v1284_v20 = vrot.slane %v860_v46, 2  ;;  %v468_v28 = vmul.f32 %v2013_v9, %v2700_v58  ;;  %v589_v31 = vld [vmem:[%s2873_s27] sm:$0x1]  ;;  %v1292_v43 = vsel %vm980_vm5, %v1291_v35, %v1278_v12  ;;  %s3007_s15 = scalar_lea.vmem [#allocation3], %s3572_s0 }
 0x340   :  { %v1235_v17 = vsel %vm978_vm4, %v1234_v10, %v1219_v61  ;;  %v1287_v21 = vrot.slane %v927_v47, 1  ;;  %v2043_v25 = vld [vmem:[%s2869_s20 + $0x30] sm:$0x1]  ;;  %v535_v30 = vmul.f32 %v2028_v14, %v2712_v62  ;;  %v656_v32 = vld [vmem:[%s2881_s22] sm:$0x1]  ;;  %v1293_v59 = vsel %vm982_vm6, %v1292_v43, %v1281_v13  ;;  %s3015_s18 = scalar_lea.vmem [#allocation3], %s3574_s1 }
 0x341   :  { %v1236_v26 = vsel %vm980_vm5, %v1235_v17, %v1222_v63  ;;  %v2058_v33 = vld [vmem:[%s2877_s7 + $0x30] sm:$0x1]  ;;  %v602_v36 = vmul.f32 %v2043_v25, %v2720_v3  ;;  %v723_v39 = vld [vmem:[%s2891_s2] sm:$0x1]  ;;  %v1188_v6 = vrot.slane %v589_v31, 6  ;;  %v1191_v9 = vrot.slane %v656_v32, 5 }
 0x342   :  { %v1237_v34 = vsel %vm982_vm6, %v1236_v26, %v1225_v0  ;;  %v2950_v37 = vmul.f32 %v2058_v33, %v2725_v7  ;;  %v2073_v40 = vld [vmem:[%s2885_s12 + $0x30] sm:$0x1]  ;;  %v790_v45 = vld [vmem:[%s2899_s8] sm:$0x1]  ;;  %v1185_v0 = vrot.slane %v522_v23, 7  ;;  %v1194_v10 = vrot.slane %v723_v39, 4 }
 0x343   :  { %v2088_v41 = vld [vmem:[%s2895_s16 + $0x30] sm:$0x1]  ;;  %v1238_v42 = vsel %vm984_vm7, %v1237_v34, %v1228_v1  ;;  %v2958_v44 = vmul.f32 %v2073_v40, %v2728_v8  ;;  %v857_v47 = vld [vmem:[%s2914_s6] sm:$0x1]  ;;  %v1294_v1 = vsel %vm984_vm7, %v1293_v59, %v1284_v20  ;;  %v1197_v11 = vrot.slane %v790_v45, 3  ;;  %s3019_s30 = scalar_lea.vmem [#allocation3], %s3531_s4 }
 0x344   :  { %v2962_v46 = vmul.f32 %v2088_v41, %v2744_v15  ;;  %v2103_v48 = vld [vmem:[%s2910_s3 + $0x30] sm:$0x1]  ;;  %v2967_v49 = vsel %vm986_vm8, %v1238_v42, %v1231_v2  ;;  %v924_v61 = vld [vmem:[%s2924_s9] sm:$0x1]  ;;  %v1295_v2 = vsel %vm986_vm8, %v1294_v1, %v1287_v21  ;;  %v1200_v12 = vrot.slane %v857_v47, 2  ;;  %s3027_s0 = scalar_lea.vmem [#allocation3], %s3532_s23 }
 0x345   :  { %v2971_v60 = vmul.f32 %v2103_v48, %v2748_v18  ;;  %v2118_v63 = vld [vmem:[%s2918_s10 + $0x30] sm:$0x1]  ;;  %v455_v4 = vld [vmem:[%s2928_s13] sm:$0x1]  ;;  %v1489_v14 = vmul.f32 %v1295_v2, %v2967_v49  ;;  %v1203_v17 = vrot.slane %v924_v61, 1  ;;  %v1297_v22 = vrot.slane %v535_v30, 7 }
 0x346   :  { %v2978_v5 = vmul.f32 %v2118_v63, %v2751_v19  ;;  %v2011_v13 = vld [vmem:[%s2982_s5 + $0x10] sm:$0x1]  ;;  %v1205_v20 = vsel %vm974_vm2, %v455_v4, %v1185_v0  ;;  %v1300_v26 = vrot.slane %v602_v36, 6  ;;  %v1303_v27 = vrot.slane %v2950_v37, 5 }
 0x347   :  { %v2026_v23 = vld [vmem:[%s2988_s14 + $0x10] sm:$0x1]  ;;  %v1206_v25 = vsel %vm976_vm3, %v1205_v20, %v1188_v6  ;;  %v1306_v31 = vrot.slane %v2958_v44, 4  ;;  %v1490_v32 = vsel %vm51_vm0, %v1489_v14, 0.0  ;;  %v1309_v34 = vrot.slane %v2962_v46, 3 }
 0x348   :  { %v2041_v21 = vld [vmem:[%s2992_s11 + $0x10] sm:$0x1]  ;;  %v1207_v33 = vsel %vm978_vm4, %v1206_v25, %v1191_v9  ;;  %v1312_v35 = vrot.slane %v2971_v60, 2  ;;  %1491 = vadd.xlane.f32.xlu1 %v1490_v32  ;;  %v1315_v39 = vrot.slane %v2978_v5, 1  ;;  %v1317_v40 = vsel %vm974_vm2, %v468_v28, %v1297_v22 }
 0x349   :  { %v2056_v30 = vld [vmem:[%s2999_s28 + $0x10] sm:$0x1]  ;;  %v1208_v37 = vsel %vm980_vm5, %v1207_v33, %v1194_v10  ;;  %v461_v41 = vmul.f32 %v2011_v13, %v2669_v50  ;;  %v1318_v45 = vsel %vm976_vm3, %v1317_v40, %v1300_v26  ;;  %v528_v46 = vmul.f32 %v2026_v23, %v2672_v51 }
 0x34a   :  { %v2071_v36 = vld [vmem:[%s3007_s15 + $0x10] sm:$0x1]  ;;  %v1209_v44 = vsel %vm982_vm6, %v1208_v37, %v1197_v11  ;;  %v595_v28 = vmul.f32 %v2041_v21, %v2678_v52  ;;  %v1319_v59 = vsel %vm978_vm4, %v1318_v45, %v1303_v27  ;;  %v662_v60 = vmul.f32 %v2056_v30, %v2681_v53 }
 0x34b   :  { %v2086_v42 = vld [vmem:[%s3015_s18 + $0x10] sm:$0x1]  ;;  %v1210_v48 = vsel %vm984_vm7, %v1209_v44, %v1200_v12  ;;  %v729_v61 = vmul.f32 %v2071_v36, %v2684_v54  ;;  %v1320_v0 = vsel %vm980_vm5, %v1319_v59, %v1306_v31  ;;  %v1353_v10 = vrot.slane %v528_v46, 7 }
 0x34c   :  { %v2101_v43 = vld [vmem:[%s3019_s30 + $0x10] sm:$0x1]  ;;  %v3035_v63 = vsel %vm986_vm8, %v1210_v48, %v1203_v17  ;;  %v796_v1 = vmul.f32 %v2086_v42, %v2691_v55  ;;  %v1321_v9 = vsel %vm982_vm6, %v1320_v0, %v1309_v34  ;;  %v1356_v11 = vrot.slane %v595_v28, 6 }
 0x34d   :  { %v2116_v47 = vld [vmem:[%s3027_s0 + $0x10] sm:$0x1]  ;;  %v863_v4 = vmul.f32 %v2101_v43, %v2694_v56  ;;  %v1322_v14 = vsel %vm984_vm7, %v1321_v9, %v1312_v35  ;;  %v1359_v17 = vrot.slane %v662_v60, 5  ;;  %v1362_v20 = vrot.slane %v729_v61, 4 }
 0x34e   :  { %v2014_v5 = vld [vmem:[%s2982_s5 + $0x30] sm:$0x1]  ;;  %v930_v2 = vmul.f32 %v2116_v47, %v2697_v57  ;;  %v1365_v22 = vrot.slane %v796_v1, 3  ;;  %v3049_v21 = vsel %vm986_vm8, %v1322_v14, %v1315_v39  ;;  %v1373_v27 = vsel %vm974_vm2, %v461_v41, %v1353_v10 }
 0x34f   :  { %v2029_v6 = vld [vmem:[%s2988_s14 + $0x30] sm:$0x1]  ;;  %v1368_v25 = vrot.slane %v863_v4, 2  ;;  %v1484_v32 = vmul.f32 %v3049_v21, %v3035_v63  ;;  %v1374_v33 = vsel %vm976_vm3, %v1373_v27, %v1356_v11  ;;  %v472_v34 = vmul.f32 %v2014_v5, %v2669_v50 }
 0x350   :  { %v2044_v12 = vld [vmem:[%s2992_s11 + $0x30] sm:$0x1]  ;;  %v1371_v26 = vrot.slane %v930_v2, 1  ;;  %v539_v35 = vmul.f32 %v2029_v6, %v2672_v51  ;;  %v1375_v37 = vsel %vm978_vm4, %v1374_v33, %v1359_v17 }
 0x351   :  { %v2059_v13 = vld [vmem:[%s2999_s28 + $0x30] sm:$0x1]  ;;  %v606_v39 = vmul.f32 %v2044_v12, %v2678_v52  ;;  %v1485_v42 = vsel %vm51_vm0, %v1484_v32, 0.0  ;;  %v1376_v43 = vsel %vm980_vm5, %v1375_v37, %v1362_v20 }
 0x352   :  { %v2074_v23 = vld [vmem:[%s3007_s15 + $0x30] sm:$0x1]  ;;  %v673_v40 = vmul.f32 %v2059_v13, %v2681_v53  ;;  %1486 = vadd.xlane.f32.xlu0 %v1485_v42  ;;  %v1377_v47 = vsel %vm982_vm6, %v1376_v43, %v1365_v22  ;;  %v1381_v59 = vrot.slane %v539_v35, 7 }
 0x353   :  { %v2089_v31 = vld [vmem:[%s3015_s18 + $0x30] sm:$0x1]  ;;  %v740_v41 = vmul.f32 %v2074_v23, %v2684_v54  ;;  %v1384_v60 = vrot.slane %v606_v39, 6  ;;  %v1378_v1 = vsel %vm984_vm7, %v1377_v47, %v1368_v25 }
 0x354   :  { %v2104_v30 = vld [vmem:[%s3019_s30 + $0x30] sm:$0x1]  ;;  %v807_v44 = vmul.f32 %v2089_v31, %v2691_v55  ;;  %v1387_v4 = vrot.slane %v673_v40, 5  ;;  %v1379_v2 = vsel %vm986_vm8, %v1378_v1, %v1371_v26  ;;  %v1401_v12 = vsel %vm974_vm2, %v472_v34, %v1381_v59 }
 0x355   :  { %v2119_v36 = vld [vmem:[%s3027_s0 + $0x30] sm:$0x1]  ;;  %v874_v45 = vmul.f32 %v2104_v30, %v2694_v56  ;;  %v1390_v5 = vrot.slane %v740_v41, 4  ;;  %v1499_v17 = vmul.f32 %v1379_v2, %v2967_v49  ;;  %v1402_v20 = vsel %vm976_vm3, %v1401_v12, %v1384_v60 }
 0x356   :  { %v2017_v46 = vld [vmem:[%s2982_s5 + $0x50] sm:$0x1]  ;;  %v941_v48 = vmul.f32 %v2119_v36, %v2697_v57  ;;  %v1393_v6 = vrot.slane %v807_v44, 3  ;;  %v1403_v26 = vsel %vm978_vm4, %v1402_v20, %v1387_v4 }
 0x357   :  { %v2032_v28 = vld [vmem:[%s2988_s14 + $0x50] sm:$0x1]  ;;  %v1396_v10 = vrot.slane %v874_v45, 2  ;;  %v483_v22 = vmul.f32 %v2017_v46, %v2669_v50  ;;  %v1500_v32 = vsel %vm51_vm0, %v1499_v17, 0.0  ;;  %v1404_v33 = vsel %vm980_vm5, %v1403_v26, %v1390_v5  ;;  %s3542_s14 = sld [smem:[#allocation36_spill]] }
 0x358   :  { %v2047_v61 = vld [vmem:[%s2992_s11 + $0x50] sm:$0x1]  ;;  %v1399_v11 = vrot.slane %v941_v48, 1  ;;  %v550_v23 = vmul.f32 %v2032_v28, %v2672_v51  ;;  %1501 = vadd.xlane.f32.xlu1 %v1500_v32  ;;  %v1405_v39 = vsel %vm982_vm6, %v1404_v33, %v1393_v6  ;;  %s3534_s11 = sld [smem:[#allocation13_spill]] }
 0x359   :  { %v2062_v0 = vld [vmem:[%s2999_s28 + $0x50] sm:$0x1]  ;;  %v617_v27 = vmul.f32 %v2047_v61, %v2678_v52  ;;  %v1406_v45 = vsel %vm984_vm7, %v1405_v39, %v1396_v10 }
 0x35a   :  { %v2077_v9 = vld [vmem:[%s3007_s15 + $0x50] sm:$0x1]  ;;  %v684_v31 = vmul.f32 %v2062_v0, %v2681_v53  ;;  %v1409_v41 = vrot.slane %v550_v23, 7  ;;  %v3102_v59 = vsel %vm986_vm8, %v1406_v45, %v1399_v11  ;;  %s3541_s15 = sld [smem:[#allocation45_spill]] }
 0x35b   :  { %v2092_v13 = vld [vmem:[%s3015_s18 + $0x50] sm:$0x1]  ;;  %v751_v30 = vmul.f32 %v2077_v9, %v2684_v54  ;;  %v1412_v42 = vrot.slane %v617_v27, 6  ;;  %v1494_v5 = vmul.f32 %v3102_v59, %v3035_v63 }
 0x35c   :  { %v2107_v14 = vld [vmem:[%s3019_s30 + $0x50] sm:$0x1]  ;;  %v818_v34 = vmul.f32 %v2092_v13, %v2691_v55  ;;  %v1415_v46 = vrot.slane %v684_v31, 5  ;;  %v1429_v0 = vsel %vm974_vm2, %v483_v22, %v1409_v41  ;;  %v2030_v31 = vld [vmem:[%s2865_s17 + $0x40] sm:$0x1] }
 0x35d   :  { %v2122_v25 = vld [vmem:[%s3027_s0 + $0x50] sm:$0x1]  ;;  %v885_v35 = vmul.f32 %v2107_v14, %v2694_v56  ;;  %v1418_v28 = vrot.slane %v751_v30, 4  ;;  %v1430_v6 = vsel %vm976_vm3, %v1429_v0, %v1412_v42  ;;  %v1495_v63 = vsel %vm51_vm0, %v1494_v5, 0.0  ;;  %v2045_v30 = vld [vmem:[%s2873_s27 + $0x40] sm:$0x1] }
 0x35e   :  { %v2016_v36 = vld [vmem:[%s2855_s29 + $0x50] sm:$0x1]  ;;  %v952_v40 = vmul.f32 %v2122_v25, %v2697_v57  ;;  %v1421_v47 = vrot.slane %v818_v34, 3  ;;  %v1431_v11 = vsel %vm978_vm4, %v1430_v6, %v1415_v46  ;;  %1496 = vadd.xlane.f32.xlu0 %v1495_v63  ;;  %s3533_s0 = sld [smem:[#allocation44_spill]]  ;;  %v2060_v34 = vld [vmem:[%s2881_s22 + $0x40] sm:$0x1] }
 0x35f   :  { %v2031_v37 = vld [vmem:[%s2859_s26 + $0x50] sm:$0x1]  ;;  %v1424_v60 = vrot.slane %v885_v35, 2  ;;  %v479_v9 = vmul.f32 %v2016_v36, %v2700_v58  ;;  %v1432_v17 = vsel %vm980_vm5, %v1431_v11, %v1418_v28  ;;  %v2075_v35 = vld [vmem:[%s2891_s2 + $0x40] sm:$0x1]  ;;  %v3140_v36 = vsel %vm986_vm8, %v2903_v38, %v1007_v24  ;;  %s3537_s26 = sld [smem:[#allocation19_spill]] }
 0x360   :  { %v2046_v43 = vld [vmem:[%s2869_s20 + $0x50] sm:$0x1]  ;;  %v1427_v61 = vrot.slane %v952_v40, 1  ;;  %v546_v2 = vmul.f32 %v2031_v37, %v2712_v62  ;;  %v1433_v23 = vsel %vm982_vm6, %v1432_v17, %v1421_v47  ;;  %v2090_v42 = vld [vmem:[%s2899_s8 + $0x40] sm:$0x1]  ;;  %v1241_v45 = vrot.slane %v2030_v31, 7 }
 0x361   :  { %v2061_v44 = vld [vmem:[%s2877_s7 + $0x50] sm:$0x1]  ;;  %v613_v12 = vmul.f32 %v2046_v43, %v2720_v3  ;;  %v1434_v32 = vsel %vm984_vm7, %v1433_v23, %v1424_v60  ;;  %v3150_v43 = vld [vmem:[%s2914_s6 + $0x40] sm:$0x1]  ;;  %v1244_v46 = vrot.slane %v2045_v30, 6  ;;  %s3538_s6 = sld [smem:[#allocation31_spill]] }
 0x362   :  { %v2076_v48 = vld [vmem:[%s2885_s12 + $0x50] sm:$0x1]  ;;  %v680_v13 = vmul.f32 %v2061_v44, %v2725_v7  ;;  %v1325_v26 = vrot.slane %v546_v2, 7  ;;  %v1435_v37 = vsel %vm986_vm8, %v1434_v32, %v1427_v61  ;;  %v2015_v38 = vld [vmem:[%s2928_s13 + $0x40] sm:$0x1]  ;;  %s3539_s20 = sld [smem:[#allocation34_spill]] }
 0x363   :  { %v2091_v1 = vld [vmem:[%s2895_s16 + $0x50] sm:$0x1]  ;;  %v747_v14 = vmul.f32 %v2076_v48, %v2728_v8  ;;  %v1328_v27 = vrot.slane %v613_v12, 6  ;;  %s3536_s16 = sld [smem:[#allocation29_spill]]  ;;  %v1514_v16 = vmul.f32 %v1435_v37, %v2967_v49  ;;  %v3160_v44 = vld [vmem:[%s2924_s9 + $0x40] sm:$0x1]  ;;  %v1261_v11 = vsel %vm974_vm2, %v2015_v38, %v1241_v45 }
 0x364   :  { %v2106_v4 = vld [vmem:[%s2910_s3 + $0x50] sm:$0x1]  ;;  %v814_v20 = vmul.f32 %v2091_v1, %v2744_v15  ;;  %s511_s28 = scalar_lea.vmem %s3533_s0, %s2555_s19  ;;  %s578_s30 = scalar_lea.vmem %s3533_s0, %s2561_s21  ;;  %v1331_v33 = vrot.slane %v680_v13, 5  ;;  %v1345_v41 = vsel %vm974_vm2, %v479_v9, %v1325_v26  ;;  %v1247_v0 = vrot.slane %v2060_v34, 5 }
 0x365   :  { %v2121_v10 = vld [vmem:[%s2918_s10 + $0x50] sm:$0x1]  ;;  %v881_v22 = vmul.f32 %v2106_v4, %v2748_v18  ;;  %s645_s10 = scalar_lea.vmem %s3533_s0, %s2569_s24  ;;  %s3535_s21 = sld [smem:[#allocation18_spill]]  ;;  %v1334_v39 = vrot.slane %v747_v14, 4  ;;  %v1346_v24 = vsel %vm976_vm3, %v1345_v41, %v1328_v27  ;;  %v512_v28 = vld [vmem:[%s511_s28] sm:$0x1] }
 0x366   :  { %v948_v25 = vmul.f32 %v2121_v10, %v2751_v19  ;;  %v1337_v40 = vrot.slane %v814_v20, 3  ;;  %s712_s7 = scalar_lea.vmem %s3533_s0, %s2571_s25  ;;  %s444_s8 = scalar_lea.vmem %s3533_s0, %s3534_s11  ;;  %v579_v47 = vld [vmem:[%s578_s30] sm:$0x1]  ;;  %v1347_v61 = vsel %vm978_vm4, %v1346_v24, %v1331_v33  ;;  %v1515_v4 = vsel %vm51_vm0, %v1514_v16, 0.0 }
 0x367   :  { %v1340_v48 = vrot.slane %v881_v22, 2  ;;  %s3540_s9 = sld [smem:[#allocation35_spill]]  ;;  %v646_v1 = vld [vmem:[%s645_s10] sm:$0x1]  ;;  %s846_s28 = scalar_lea.vmem %s3533_s0, %s3537_s26  ;;  %v1348_v5 = vsel %vm980_vm5, %v1347_v61, %v1334_v39  ;;  %v1250_v6 = vrot.slane %v2075_v35, 4  ;;  %v1253_v9 = vrot.slane %v2090_v42, 3  ;;  %1516 = vadd.xlane.f32.xlu1 %v1515_v4 }
 0x368   :  { %v1343_v60 = vrot.slane %v948_v25, 1  ;;  %s580_s19 = scalar_lea.vmem %s3541_s15, %s3538_s6  ;;  %v713_v2 = vld [vmem:[%s712_s7] sm:$0x1]  ;;  %v1349_v10 = vsel %vm982_vm6, %v1348_v5, %v1337_v40  ;;  %s446_s2 = scalar_lea.vmem %s3541_s15, %s3539_s20  ;;  %v1073_v14 = vrot.slane %v512_v28, 7  ;;  %v1076_v63 = vrot.slane %v579_v47, 6 }
 0x369   :  { %s513_s18 = scalar_lea.vmem %s3541_s15, %s3536_s16  ;;  %v445_v12 = vld [vmem:[%s444_s8] sm:$0x1]  ;;  %s3544_s12 = sld [smem:[#allocation38_spill]]  ;;  %v1350_v17 = vsel %vm984_vm7, %v1349_v10, %v1340_v48  ;;  %v1256_v20 = vrot.slane %v3150_v43, 2  ;;  %v1262_v22 = vsel %vm976_vm3, %v1261_v11, %v1244_v46  ;;  %v1079_v26 = vrot.slane %v646_v1, 5 }
 0x36a   :  { %s3545_s29 = sld [smem:[#allocation20_spill]]  ;;  %v514_v23 = vld [vmem:[%s513_s18] sm:$0x1]  ;;  %s714_s8 = scalar_lea.vmem %s3541_s15, %s3542_s14  ;;  %v1351_v27 = vsel %vm986_vm8, %v1350_v17, %v1343_v60  ;;  %v1259_v31 = vrot.slane %v3160_v44, 1  ;;  %v1263_v30 = vsel %vm978_vm4, %v1262_v22, %v1247_v0  ;;  %v1082_v33 = vrot.slane %v713_v2, 4 }
 0x36b   :  { %s779_s25 = scalar_lea.vmem %s3533_s0, %s3535_s21  ;;  %s3543_s21 = sld [smem:[#allocation37_spill]]  ;;  %v847_v25 = vld [vmem:[%s846_s28] sm:$0x1]  ;;  %v1504_v34 = vmul.f32 %v1351_v27, %v2967_v49  ;;  %v1264_v35 = vsel %vm980_vm5, %v1263_v30, %v1250_v6  ;;  %v1093_v41 = vsel %vm974_vm2, %v445_v12, %v1073_v14  ;;  %v1101_v44 = vrot.slane %v514_v23, 7 }
 0x36c   :  { %v780_v13 = vld [vmem:[%s779_s25] sm:$0x1]  ;;  %s3546_s25 = sld [smem:[#allocation39_spill]]  ;;  %v1265_v42 = vsel %vm982_vm6, %v1264_v35, %v1253_v9  ;;  %v1088_v24 = vrot.slane %v847_v25, 2  ;;  %v1094_v38 = vsel %vm976_vm3, %v1093_v41, %v1076_v63  ;;  %v1436_v61 = vmul.f32 %v3140_v36, %v2815_v29 }
 0x36d   :  { %s647_s24 = scalar_lea.vmem %s3541_s15, %s3540_s9  ;;  %v581_v32 = vld [vmem:[%s580_s19] sm:$0x1]  ;;  %v1085_v40 = vrot.slane %v780_v13, 3  ;;  %v1505_v49 = vsel %vm51_vm0, %v1504_v34, 0.0  ;;  %v1266_v45 = vsel %vm984_vm7, %v1265_v42, %v1256_v20  ;;  %v1095_v47 = vsel %vm978_vm4, %v1094_v38, %v1079_v26  ;;  %s3548_s19 = sld [smem:[#allocation15_spill]] }
 0x36e   :  { %v447_v37 = vld [vmem:[%s446_s2] sm:$0x1]  ;;  %v1104_v48 = vrot.slane %v581_v32, 6  ;;  %1506 = vadd.xlane.f32.xlu0 %v1505_v49  ;;  %v1267_v60 = vsel %vm986_vm8, %v1266_v45, %v1259_v31  ;;  %v1096_v0 = vsel %vm980_vm5, %v1095_v47, %v1082_v33  ;;  %v1437_v23 = vsel %vm51_vm0, %v1436_v61, 0.0  ;;  %s3550_s10 = sld [smem:[#allocation14_spill]] }
 0x36f   :  { %s848_s18 = scalar_lea.vmem %s3541_s15, %s3544_s12  ;;  %v648_v39 = vld [vmem:[%s647_s24] sm:$0x1]  ;;  %v1519_v4 = vmul.f32 %v3102_v59, %v1267_v60  ;;  %v1509_v5 = vmul.f32 %v3049_v21, %v1267_v60  ;;  %v1097_v9 = vsel %vm982_vm6, %v1096_v0, %v1085_v40  ;;  %v1121_v13 = vsel %vm974_vm2, %v447_v37, %v1101_v44  ;;  %s3551_s22 = sld [smem:[#allocation26_spill]] }
 0x370   :  { %s913_s30 = scalar_lea.vmem %s3533_s0, %s3545_s29  ;;  %v715_v43 = vld [vmem:[%s714_s8] sm:$0x1]  ;;  %v1107_v1 = vrot.slane %v648_v39, 5  ;;  %v1098_v36 = vsel %vm984_vm7, %v1097_v9, %v1088_v24  ;;  %v1122_v63 = vsel %vm976_vm3, %v1121_v13, %v1104_v48  ;;  %s3547_s0 = sld [smem:[#allocation25_spill]] }
 0x371   :  { %s781_s9 = scalar_lea.vmem %s3541_s15, %s3543_s21  ;;  %v849_v46 = vld [vmem:[%s848_s18] sm:$0x1]  ;;  %v1110_v2 = vrot.slane %v715_v43, 4  ;;  %v1520_v14 = vsel %vm51_vm0, %v1519_v4, 0.0  ;;  %v1510_v29 = vsel %vm51_vm0, %v1509_v5, 0.0  ;;  %s3549_s21 = sld [smem:[#allocation24_spill]] }
 0x372   :  { %v782_v16 = vld [vmem:[%s781_s9] sm:$0x1]  ;;  %s915_s14 = scalar_lea.vmem %s3541_s15, %s3546_s25  ;;  %v1116_v12 = vrot.slane %v849_v46, 2  ;;  %1521 = vadd.xlane.f32.xlu1 %v1520_v14  ;;  %1511 = vadd.xlane.f32.xlu0 %v1510_v29  ;;  %v1123_v59 = vsel %vm978_vm4, %v1122_v63, %v1107_v1  ;;  %s3552_s2 = sld [smem:[#allocation16_spill]] }
 0x373   :  { %v914_v28 = vld [vmem:[%s913_s30] sm:$0x1]  ;;  %v1113_v11 = vrot.slane %v782_v16, 3  ;;  %v1124_v17 = vsel %vm980_vm5, %v1123_v59, %v1110_v2  ;;  %s518_s7 = scalar_lea.vmem %s3541_s15, %s3548_s19  ;;  %s3553_s6 = sld [smem:[#allocation27_spill]] }
 0x374   :  { %v916_v6 = vld [vmem:[%s915_s14] sm:$0x1]  ;;  %v1091_v10 = vrot.slane %v914_v28, 1  ;;  %s451_s13 = scalar_lea.vmem %s3541_s15, %s3550_s10  ;;  %s3554_s3 = sld [smem:[#allocation17_spill]] }
 0x375   :  { %v1119_v21 = vrot.slane %v916_v6, 1  ;;  %v1125_v22 = vsel %vm982_vm6, %v1124_v17, %v1113_v11  ;;  %v519_v46 = vld [vmem:[%s518_s7] sm:$0x1]  ;;  %s582_s5 = scalar_lea.vmem %s3541_s15, %s3551_s22  ;;  %s3555_s14 = sld [smem:[#allocation28_spill]] }
 0x376   :  { %v3244_v20 = vsel %vm986_vm8, %v1098_v36, %v1091_v10  ;;  %v1126_v25 = vsel %vm984_vm7, %v1125_v22, %v1116_v12  ;;  %1438 = vadd.xlane.f32.xlu0 %v1437_v23  ;;  %s515_s24 = scalar_lea.vmem %s3541_s15, %s3547_s0  ;;  %v452_v0 = vld [vmem:[%s451_s13] sm:$0x1]  ;;  %v520_v4 = vmul.f32 %v519_v46, %v2672_v51  ;;  %s3556_s10 = sld [smem:[#allocation21_spill]] }
 0x377   :  { %v3250_v26 = vsel %vm986_vm8, %v1126_v25, %v1119_v21  ;;  %s448_s20 = scalar_lea.vmem %s3541_s15, %s3549_s21  ;;  %v516_v45 = vld [vmem:[%s515_s24] sm:$0x1]  ;;  %v453_v51 = vmul.f32 %v452_v0, %v2669_v50  ;;  %s3557_s29 = sld [smem:[#allocation30_spill]] }
 0x378   :  { %v1560_v27 = vmul.f32 %v3250_v26, %v3244_v20  ;;  %s585_s11 = scalar_lea.vmem %s3541_s15, %s3552_s2  ;;  %v449_v61 = vld [vmem:[%s448_s20] sm:$0x1]  ;;  %v517_v1 = vmul.f32 %v516_v45, %v2712_v62  ;;  %s3558_s27 = sld [smem:[#allocation32_spill]] }
 0x379   :  { %s649_s21 = scalar_lea.vmem %s3541_s15, %s3553_s6  ;;  %v583_v9 = vld [vmem:[%s582_s5] sm:$0x1]  ;;  %v450_v62 = vmul.f32 %v449_v61, %v2700_v58  ;;  %v1157_v58 = vrot.slane %v520_v4, 7  ;;  %s786_s18 = scalar_lea.vmem %s3541_s15, %s3574_s1 }
 0x37a   :  { %v1561_v31 = vsel %vm146_vm1, %v1560_v27, 0.0  ;;  %v586_v2 = vld [vmem:[%s585_s11] sm:$0x1]  ;;  %s652_s16 = scalar_lea.vmem %s3541_s15, %s3554_s3  ;;  %v584_v36 = vmul.f32 %v583_v9, %v2720_v3  ;;  %v1129_v50 = vrot.slane %v517_v1, 7  ;;  %s3559_s5 = sld [smem:[#allocation33_spill]] }
 0x37b   :  { %1562 = vadd.xlane.f32.xlu1 %v1561_v31  ;;  %v650_v13 = vld [vmem:[%s649_s21] sm:$0x1]  ;;  %s716_s12 = scalar_lea.vmem %s3541_s15, %s3555_s14  ;;  %v587_v63 = vmul.f32 %v586_v2, %v2678_v52  ;;  %s853_s14 = scalar_lea.vmem %s3541_s15, %s3531_s4 }
 0x37c   :  { %v653_v21 = vld [vmem:[%s652_s16] sm:$0x1]  ;;  %s719_s8 = scalar_lea.vmem %s3541_s15, %s3556_s10  ;;  %v651_v25 = vmul.f32 %v650_v13, %v2725_v7  ;;  %s920_s22 = scalar_lea.vmem %s3541_s15, %s3532_s23 }
 0x37d   :  { %v717_v3 = vld [vmem:[%s716_s12] sm:$0x1]  ;;  %s783_s9 = scalar_lea.vmem %s3541_s15, %s3557_s29  ;;  %s3560_s2 = sld [smem:[#allocation42_spill]] }
 0x37e   :  { %s850_s30 = scalar_lea.vmem %s3541_s15, %s3558_s27  ;;  %v1135_v45 = vrot.slane %v651_v25, 5  ;;  %v854_v0 = vld [vmem:[%s853_s14] sm:$0x1]  ;;  %s3561_s29 = sld [smem:[#allocation43_spill]] }
 0x37f   :  { %v851_v61 = vld [vmem:[%s850_s30] sm:$0x1]  ;;  %v855_v9 = vmul.f32 %v854_v0, %v2694_v56  ;;  %s3562_s20 = sld [smem:[#allocation40_spill]] }
 0x380   :  { %s917_s19 = scalar_lea.vmem %s3541_s15, %s3559_s5  ;;  %s2356_s15 = smov [#allocation9]  }
 0x381   :  { %v918_v2 = vld [vmem:[%s917_s19] sm:$0x1] }
 0x3b1   :  { %v1447_v30 = vpop.xlane.xlu0 %1446 }
 0x3b2   :  { %v2124_v33 = vmul.f32 -1.442695, %v1447_v30  ;;  %v654_v30 = vmul.f32 %v653_v21, %v2681_v53  ;;  %v1172_v21 = vrot.slane %v855_v9, 2  ;;  %v1667_v9 = vld [vmem:[%s3561_s29] sm:$0xff] }
 0x3b4   :  { %2252 = vpow2.f32 %v2124_v33  ;;  %v1132_v33 = vrot.slane %v584_v36, 6  ;;  %v1163_v46 = vrot.slane %v654_v30, 5 }
 0x3be   :  { %v1443_v32 = vpop.xlane.xlu1 %1442 }
 0x3bf   :  { %v2123_v34 = vmul.f32 -1.442695, %v1443_v32  ;;  %v720_v32 = vld [vmem:[%s719_s8] sm:$0x1] }
 0x3c1   :  { %2254 = vpow2.f32 %v2123_v34  ;;  %v2253_v37 = vpop.eup %2252  ;;  %v1149_v34 = vsel %vm974_vm2, %v450_v62, %v1129_v50 }
 0x3c2   :  { %v1457_v41 = vadd.f32 1.0, %v2253_v37 }
 0x3c4   :  { %2256 = vrcp.f32 %v1457_v41 }
 0x3ce   :  { %v2255_v39 = vpop.eup %2254 }
 0x3cf   :  { %v1451_v42 = vadd.f32 1.0, %v2255_v39 }
 0x3d1   :  { %v1492_v35 = vpop.xlane.xlu1 %1491  ;;  %2258 = vrcp.f32 %v1451_v42  ;;  %v2257_v10 = vpop.eup %2256 }
 0x3db   :  { %v1487_v40 = vpop.xlane.xlu0 %1486 }
 0x3dc   :  { %v1493_v44 = vadd.f32 %v1492_v35, %v1487_v40  ;;  %v1160_v35 = vrot.slane %v587_v63, 6  ;;  %v1177_v40 = vsel %vm974_vm2, %v453_v51, %v1157_v58 }
 0x3de   :  { %v2259_v14 = vpop.eup %2258 }
 0x3e1   :  { %v1502_v43 = vpop.xlane.xlu1 %1501 }
 0x3e7   :  { %v1497_v16 = vpop.xlane.xlu0 %1496 }
 0x3e8   :  { %v1503_v49 = vadd.f32 %v1502_v43, %v1497_v16  ;;  %v718_v43 = vmul.f32 %v717_v3, %v2728_v8  ;;  %v721_v16 = vmul.f32 %v720_v32, %v2684_v54  ;;  %v1150_v8 = vsel %vm976_vm3, %v1149_v34, %v1132_v33 }
 0x3e9   :  { %v1178_v54 = vsel %vm976_vm3, %v1177_v40, %v1160_v35 }
 0x3ea   :  { %v1138_v1 = vrot.slane %v718_v43, 4  ;;  %v1166_v4 = vrot.slane %v721_v16, 4  ;;  %v1624_v43 = vmul.f32 %v3250_v26, %v3250_v26 }
 0x3f0   :  { %v1517_v24 = vpop.xlane.xlu1 %1516 }
 0x3f1   :  { %v1518_v47 = vadd.f32 %v1517_v24, %v1503_v49  ;;  %v784_v24 = vld [vmem:[%s783_s9] sm:$0x1] }
 0x3f7   :  { %v1507_v38 = vpop.xlane.xlu0 %1506 }
 0x3f8   :  { %v1508_v28 = vadd.f32 %v1507_v38, %v1493_v44  ;;  %v787_v38 = vld [vmem:[%s786_s18] sm:$0x1]  ;;  %s3563_s18 = sld [smem:[#allocation41_spill]] }
 0x3fb   :  { %v1512_v48 = vpop.xlane.xlu0 %1511  ;;  %v1522_v60 = vpop.xlane.xlu1 %1521 }
 0x3fc   :  { %v1513_v5 = vadd.f32 %v1512_v48, %v1508_v28  ;;  %v1523_v6 = vadd.f32 %v1522_v60, %v1518_v47  ;;  %v785_v48 = vmul.f32 %v784_v24, %v2744_v15  ;;  %v788_v60 = vmul.f32 %v787_v38, %v2691_v55 }
 0x3fd   :  { %v1179_v15 = vsel %vm978_vm4, %v1178_v54, %v1163_v46  ;;  %v852_v55 = vmul.f32 %v851_v61, %v2748_v18  ;;  %v1625_v24 = vsel %vm146_vm1, %v1624_v43, 0.0 }
 0x3fe   :  { %v1524_v11 = vmul.f32 0.25, %v1513_v5  ;;  %v1525_v12 = vmul.f32 0.25, %v1523_v6  ;;  %v1151_v6 = vsel %vm978_vm4, %v1150_v8, %v1135_v45  ;;  %v1169_v62 = vrot.slane %v788_v60, 3 }
 0x3ff   :  { %v3295_v29 = vpop.xlane.xlu0 %1438  ;;  %v1152_v51 = vsel %vm980_vm5, %v1151_v6, %v1138_v1  ;;  %v1180_v13 = vsel %vm980_vm5, %v1179_v15, %v1166_v4  ;;  %v1144_v63 = vrot.slane %v852_v55, 2 }
 0x400   :  { %v1548_v59 = vadd.f32 %v2259_v14, %v1524_v11  ;;  %v3303_v17 = vsub.f32 %v1525_v12, %v1524_v11  ;;  %v1550_v22 = vadd.f32 %v2257_v10, %v1525_v12  ;;  %v1460_v23 = vsub.f32 0.0, %v3295_v29  ;;  %v921_v10 = vld [vmem:[%s920_s22] sm:$0x1] }
 0x401   :  { %v1141_v12 = vrot.slane %v785_v48, 3  ;;  %v919_v14 = vmul.f32 %v918_v2, %v2751_v19  ;;  %v922_v36 = vmul.f32 %v921_v10, %v2697_v57  ;;  %v1181_v56 = vsel %vm982_vm6, %v1180_v13, %v1169_v62  ;;  %v1668_v2 = vld [vmem:[%s3561_s29 + $0x8] sm:$0xff]  ;;  %v1704_v10 = vld [vmem:[%s3562_s20] sm:$0xff] }
 0x402   :  { %v3307_v27 = vmul.f32 0.5, %v1548_v59  ;;  %v1528_v52 = vand.u32 2147483647, %v3303_v17  ;;  %v3310_v31 = vmul.f32 0.5, %v1550_v22  ;;  %v1462_v7 = vand.u32 2147483647, %v1460_v23 }
 0x403   :  { %v1153_v18 = vsel %vm982_vm6, %v1152_v51, %v1141_v12  ;;  %v1147_v50 = vrot.slane %v919_v14, 1  ;;  %v1175_v58 = vrot.slane %v922_v36, 1  ;;  %v1182_v22 = vsel %vm984_vm7, %v1181_v56, %v1172_v21 }
 0x404   :  { %v3324_v37 = vpop.xlane.xlu1 %1562  ;;  %v1529_v53 = vsub.f32 0.0, %v1528_v52  ;;  %v1552_v39 = vadd.f32 %v3310_v31, %v3307_v27  ;;  %v1463_v42 = vsub.f32 0.0, %v1462_v7  ;;  %v1154_v59 = vsel %vm984_vm7, %v1153_v18, %v1144_v63 }
 0x405   :  { %v1568_v41 = vsub.f32 0.0, %v3324_v37  ;;  %v1155_v52 = vsel %vm986_vm8, %v1154_v59, %v1147_v50  ;;  %v1183_v19 = vsel %vm986_vm8, %v1182_v22, %v1175_v58  ;;  %v1527_v61 = vmax.f32 %v3303_v17, 0.0 }
 0x406   :  { %v1530_v44 = vmul.f32 1.442695, %v1529_v53  ;;  %v1553_v49 = vadd.f32 1e-12, %v1552_v39  ;;  %v1464_v28 = vmul.f32 1.442695, %v1463_v42  ;;  %v1650_v38 = vmul.f32 %v1183_v19, %v1183_v19 }
 0x407   :  { %v1570_v47 = vand.u32 2147483647, %v1568_v41  ;;  %v1569_v0 = vmax.f32 %v1568_v41, 0.0  ;;  %v1612_v17 = vmul.f32 %v3244_v20, %v3244_v20  ;;  %v1637_v41 = vmul.f32 %v1155_v52, %v1155_v52 }
 0x408   :  { %2260 = vpow2.f32 %v1530_v44  ;;  %v1651_v45 = vsel %vm146_vm1, %v1650_v38, 0.0  ;;  %v1670_v12 = vmul.f32 %v1668_v2, %v1668_v2  ;;  %v1708_v62 = vmul.f32 %v1704_v10, %v1704_v10 }
 0x409   :  { %2262 = vrcp.f32 %v1553_v49  ;;  %v1571_v5 = vsub.f32 0.0, %v1570_v47  ;;  %v1461_v47 = vmax.f32 %v1460_v23, 0.0  ;;  %v1613_v37 = vsel %vm146_vm1, %v1612_v17, 0.0 }
 0x40a   :  { %2264 = vpow2.f32 %v1464_v28  ;;  %v1638_v51 = vsel %vm146_vm1, %v1637_v41, 0.0  ;;  %v1673_v36 = vsel %vm1671_vm9, %v1670_v12, 0.0  ;;  %v1710_v21 = vsel %vm51_vm0, %v1708_v62, 0.0 }
 0x40b   :  { %v1572_v11 = vmul.f32 1.442695, %v1571_v5 }
 0x40d   :  { %2266 = vpow2.f32 %v1572_v11  ;;  %v1669_v11 = vmul.f32 %v1667_v9, %v1667_v9 }
 0x40f   :  { %v1672_v14 = vsel %vm1671_vm9, %v1669_v11, 0.0 }
 0x410   :  { %v1674_v63 = vadd.f32 %v1673_v36, %v1672_v14 }
 0x415   :  { %v2261_v25 = vpop.eup %2260 }
 0x416   :  { %v2263_v3 = vpop.eup %2262  ;;  %v1532_v30 = vadd.f32 1.0, %v2261_v25 }
 0x417   :  { %v2265_v57 = vpop.eup %2264  ;;  %v1557_v32 = vmul.f32 %v2263_v3, %v3310_v31  ;;  %v1555_v7 = vmul.f32 %v2263_v3, %v3307_v27  ;;  %v1665_v31 = vld [vmem:[%s3560_s2] sm:$0xff]  ;;  %v1666_v27 = vld [vmem:[%s3560_s2 + $0x8] sm:$0xff]  ;;  %s1759_s2 = sshll.u32 %s2356_s15, 4  ;;  %s1760_s2 = int_to_ptr.vmem [resolvable:$true] %s1759_s2 }
 0x418   :  { %v1466_v33 = vadd.f32 1.0, %v2265_v57  ;;  %2268 = vlog2.f32 %v1532_v30  ;;  %v1686_v44 = vmul.f32 %v1665_v31, %v1665_v31  ;;  %v1687_v49 = vmul.f32 %v1666_v27, %v1666_v27  ;;  %s2326_s16 = scalar_lea.vmem %s1760_s2, 16  ;;  %s2330_s26 = scalar_lea.vmem %s1760_s2, 32 }
 0x419   :  { %v1556_v34 = vmul.f32 %v1555_v7, %v1155_v52  ;;  %v1558_v35 = vmul.f32 %v1557_v32, %v1183_v19  ;;  %p2327_p10 = scmp.ne.s32.totalorder %s1760_s2, %s2326_s16  ;;  %p2331_p11 = scmp.lt.s32.totalorder %s1760_s2, %s1760_s2 }
 0x41a   :  { %v2267_v53 = vpop.eup %2266  ;;  %2270 = vlog2.f32 %v1466_v33  ;;  %v1688_v46 = vsel %vm1671_vm9, %v1686_v44, 0.0  ;;  %v1689_v28 = vsel %vm1671_vm9, %v1687_v49, 0.0  ;;  %p2332_p12 = scmp.lt.s32.totalorder %s2330_s26, %s2326_s16 }
 0x41b   :  { %v1559_v39 = vadd.f32 %v1558_v35, %v1556_v34  ;;  %v1574_v40 = vadd.f32 1.0, %v2267_v53  ;;  %v1690_v60 = vadd.f32 %v1689_v28, %v1688_v46  ;;  %v1706_v28 = vld [vmem:[%s3563_s18] sm:$0xff] }
 0x41c   :  { %p2333_p13 = por %p2332_p12, %p2331_p11 }
 0x41d   :  { %v1564_v42 = vmul.f32 %v1559_v39, %v3244_v20  ;;  %2272 = vlog2.f32 %v1574_v40  ;;  %v1705_v20 = vld [vmem:[%s3562_s20 + $0x8] sm:$0xff] }
 0x41e   :  { %v1709_v13 = vmul.f32 %v1705_v20, %v1705_v20  ;;  %p2334_p0 = pnand %p2333_p13, %p2327_p10 }
 0x41f   :  { %v1565_v16 = vsel %vm146_vm1, %v1564_v42, 0.0 }
 0x420   :  { %1566 = vadd.xlane.f32.xlu0 %v1565_v16  ;;  %v1711_v18 = vsel %vm51_vm0, %v1709_v13, 0.0 }
 0x421   :  { %v1712_v56 = vadd.f32 %v1711_v18, %v1710_v21 }
 0x424   :  { %1626 = vadd.xlane.f32.xlu0 %v1625_v24 }
 0x425   :  { %v2269_v26 = vpop.eup %2268 }
 0x426   :  { %v1534_v54 = vmul.f32 0.6931472, %v2269_v26 }
 0x427   :  { %v2271_v8 = vpop.eup %2270 }
 0x428   :  { %1652 = vadd.xlane.f32.xlu0 %v1651_v45  ;;  %v1468_v48 = vmul.f32 0.6931472, %v2271_v8  ;;  %v1535_v5 = vadd.f32 %v1534_v54, %v1527_v61  ;;  %v1707_v8 = vld [vmem:[%s3563_s18 + $0x8] sm:$0xff]  ;;  %v1724_v54 = vmul.f32 %v1706_v28, %v1706_v28 }
 0x42a   :  { %v2273_v1 = vpop.eup %2272  ;;  %v1469_v4 = vadd.f32 %v1468_v48, %v1461_v47  ;;  %v1536_v29 = vsel %vm1470_vm10, %v1535_v5, 0.0  ;;  %v1725_v47 = vmul.f32 %v1707_v8, %v1707_v8 }
 0x42b   :  { %v1576_v6 = vmul.f32 0.6931472, %v2273_v1  ;;  %v1726_v1 = vsel %vm51_vm0, %v1724_v54, 0.0 }
 0x42c   :  { %v1471_v15 = vsel %vm1470_vm10, %v1469_v4, 0.0  ;;  %1691 = vadd.xlane.f32.xlu0 %v1690_v60  ;;  %v1727_v4 = vsel %vm51_vm0, %v1725_v47, 0.0 }
 0x42d   :  { %1472 = vadd.xlane.f32.xlu1 %v1471_v15  ;;  %v1577_v55 = vadd.f32 %v1576_v6, %v1569_v0  ;;  %v1728_v6 = vadd.f32 %v1727_v4, %v1726_v1 }
 0x42f   :  { %v1578_v23 = vsel %vm1470_vm10, %v1577_v55, 0.0 }
 0x430   :  { %1537 = vadd.xlane.f32.xlu0 %v1536_v29 }
 0x431   :  { %1579 = vadd.xlane.f32.xlu1 %v1578_v23 }
 0x435   :  { %1614 = vadd.xlane.f32.xlu1 %v1613_v37 }
 0x439   :  { %1639 = vadd.xlane.f32.xlu1 %v1638_v51 }
 0x43d   :  { %1675 = vadd.xlane.f32.xlu1 %v1674_v63 }
 0x441   :  { %1713 = vadd.xlane.f32.xlu1 %v1712_v56 }
 0x4a9   :  { %v1567_v50 = vpop.xlane.xlu0 %1566 }
 0x4aa   :  { %v1590_v58 = vand.u32 2147483647, %v1567_v50  ;;  %v1589_v60 = vmax.f32 %v1567_v50, 0.0 }
 0x4ac   :  { %v1591_v59 = vsub.f32 0.0, %v1590_v58 }
 0x4ad   :  { %v1627_v22 = vpop.xlane.xlu0 %1626 }
 0x4ae   :  { %v1592_v25 = vmul.f32 1.442695, %v1591_v59  ;;  %v1628_v17 = vrot.slane %v1627_v22, 4 }
 0x4b0   :  { %2274 = vpow2.f32 %v1592_v25  ;;  %v1629_v11 = vadd.f32 %v1628_v17, %v1627_v22 }
 0x4b1   :  { %v1653_v3 = vpop.xlane.xlu0 %1652 }
 0x4b2   :  { %v1654_v41 = vrot.slane %v1653_v3, 4  ;;  %v1630_v63 = vrot.slane %v1629_v11, 2 }
 0x4b4   :  { %v1655_v51 = vadd.f32 %v1654_v41, %v1653_v3 }
 0x4b5   :  { %v1692_v52 = vpop.xlane.xlu0 %1691 }
 0x4b6   :  { %v1473_v19 = vpop.xlane.xlu1 %1472  ;;  %v1693_v12 = vrot.slane %v1692_v52, 4  ;;  %v1656_v58 = vrot.slane %v1655_v51, 2 }
 0x4b7   :  { %v1474_v30 = vrot.slane %v1473_v19, 4 }
 0x4b8   :  { %v1694_v21 = vadd.f32 %v1693_v12, %v1692_v52 }
 0x4b9   :  { %v1475_v57 = vadd.f32 %v1474_v30, %v1473_v19  ;;  %v1538_v32 = vpop.xlane.xlu0 %1537 }
 0x4ba   :  { %v1539_v7 = vrot.slane %v1538_v32, 4  ;;  %v1580_v33 = vpop.xlane.xlu1 %1579 }
 0x4bb   :  { %v1476_v34 = vrot.slane %v1475_v57, 2  ;;  %v1581_v35 = vrot.slane %v1580_v33, 4 }
 0x4bc   :  { %v1540_v53 = vadd.f32 %v1539_v7, %v1538_v32  ;;  %v1631_v7 = vadd.f32 %v1630_v63, %v1629_v11 }
 0x4bd   :  { %v2275_v39 = vpop.eup %2274  ;;  %v1477_v40 = vadd.f32 %v1476_v34, %v1475_v57  ;;  %v1582_v42 = vadd.f32 %v1581_v35, %v1580_v33  ;;  %v1695_v57 = vrot.slane %v1694_v21, 2 }
 0x4be   :  { %v1594_v43 = vadd.f32 1.0, %v2275_v39  ;;  %v1541_v31 = vrot.slane %v1540_v53, 2  ;;  %v1615_v15 = vpop.xlane.xlu1 %1614 }
 0x4bf   :  { %v1478_v27 = vrot.slane %v1477_v40, 1  ;;  %v1583_v16 = vrot.slane %v1582_v42, 2  ;;  %v1616_v23 = vrot.slane %v1615_v15, 4 }
 0x4c0   :  { %2276 = vlog2.f32 %v1594_v43  ;;  %v1542_v24 = vadd.f32 %v1541_v31, %v1540_v53  ;;  %v1657_v53 = vadd.f32 %v1656_v58, %v1655_v51  ;;  %v1632_v43 = vrot.slane %v1631_v7, 1 }
 0x4c1   :  { %v1479_v38 = vadd.f32 %v1478_v27, %v1477_v40  ;;  %v1584_v44 = vadd.f32 %v1583_v16, %v1582_v42  ;;  %v1617_v2 = vadd.f32 %v1616_v23, %v1615_v15  ;;  %v1696_v31 = vadd.f32 %v1695_v57, %v1694_v21 }
 0x4c2   :  { %v1543_v49 = vrot.slane %v1542_v24, 1  ;;  %v1640_v55 = vpop.xlane.xlu1 %1639 }
 0x4c3   :  { %2169 = vpush %v1479_v38  ;;  %v1585_v26 = vrot.slane %v1584_v44, 1  ;;  %v1641_v37 = vrot.slane %v1640_v55, 4  ;;  %v1618_v13 = vrot.slane %v1617_v2, 2 }
 0x4c4   :  { %v1544_v45 = vadd.f32 %v1543_v49, %v1542_v24 }
 0x4c5   :  { %v1586_v46 = vadd.f32 %v1585_v26, %v1584_v44  ;;  %v1642_v20 = vadd.f32 %v1641_v37, %v1640_v55  ;;  %v1619_v30 = vadd.f32 %v1618_v13, %v1617_v2  ;;  %v1658_v44 = vrot.slane %v1657_v53, 1 }
 0x4c6   :  { %2171 = vpush %v1544_v45  ;;  %v1676_v29 = vpop.xlane.xlu1 %1675  ;;  %v1633_v45 = vadd.f32 %v1632_v43, %v1631_v7 }
 0x4c7   :  { %2173 = vpush %v1586_v46  ;;  %v1677_v10 = vrot.slane %v1676_v29, 4  ;;  %v1643_v56 = vrot.slane %v1642_v20, 2  ;;  %v1620_v39 = vrot.slane %v1619_v30, 1  ;;  %v1697_v46 = vrot.slane %v1696_v31, 1 }
 0x4c8   :  { %v1659_v47 = vadd.f32 %v1658_v44, %v1657_v53 }
 0x4c9   :  { %v1678_v14 = vadd.f32 %v1677_v10, %v1676_v29  ;;  %v1644_v34 = vadd.f32 %v1643_v56, %v1642_v20  ;;  %v1621_v49 = vadd.f32 %v1620_v39, %v1619_v30 }
 0x4ca   :  { %v1714_v9 = vpop.xlane.xlu1 %1713 }
 0x4cb   :  { %v1715_v62 = vrot.slane %v1714_v9, 4  ;;  %v1679_v25 = vrot.slane %v1678_v14, 2  ;;  %v1645_v16 = vrot.slane %v1644_v34, 1 }
 0x4cd   :  { %v2277_v48 = vpop.eup %2276  ;;  %v1716_v50 = vadd.f32 %v1715_v62, %v1714_v9  ;;  %v1680_v40 = vadd.f32 %v1679_v25, %v1678_v14  ;;  %v1646_v8 = vadd.f32 %v1645_v16, %v1644_v34 }
 0x4ce   :  { %v1596_v61 = vmul.f32 0.6931472, %v2277_v48 }
 0x4cf   :  { %v1717_v33 = vrot.slane %v1716_v50, 2  ;;  %v1681_v26 = vrot.slane %v1680_v40, 1 }
 0x4d0   :  { %v1597_v0 = vadd.f32 %v1596_v61, %v1589_v60  ;;  %v1698_v60 = vadd.f32 %v1697_v46, %v1696_v31 }
 0x4d1   :  { %v1718_v27 = vadd.f32 %v1717_v33, %v1716_v50  ;;  %v1682_v48 = vadd.f32 %v1681_v26, %v1680_v40 }
 0x4d2   :  { %v1598_v5 = vsel %vm1470_vm10, %v1597_v0, 0.0 }
 0x4d3   :  { %1599 = vadd.xlane.f32.xlu0 %v1598_v5  ;;  %v1719_v54 = vrot.slane %v1718_v27, 1 }
 0x4d5   :  { %v1720_v0 = vadd.f32 %v1719_v54, %v1718_v27 }
 0x4d7   :  { %1729 = vadd.xlane.f32.xlu0 %v1728_v6 }
 0x4f4   :  { %s3421_s5 = spop %2169 }
 0x4f5   :  { %v1481_v63 = vstv %s3421_s5 }
 0x4f6   :  { %v1483_v58 = vmul.f32 0.125, %v1481_v63 }
 0x4f7   :  { %s3423_s30 = spop %2171 }
 0x4f8   :  { %s2174_s28 = spop %2173  ;;  %v1546_v21 = vstv %s3423_s30 }
 0x4f9   :  { %v1588_v41 = vstv %s2174_s28 }
 0x55c   :  { %v1600_v36 = vpop.xlane.xlu0 %1599 }
 0x55d   :  { %v1601_v18 = vrot.slane %v1600_v36, 4 }
 0x55f   :  { %v1602_v59 = vadd.f32 %v1601_v18, %v1600_v36 }
 0x560   :  { %v1730_v19 = vpop.xlane.xlu0 %1729 }
 0x561   :  { %v1603_v32 = vrot.slane %v1602_v59, 2  ;;  %v1731_v22 = vrot.slane %v1730_v19, 4 }
 0x563   :  { %v1732_v3 = vadd.f32 %v1731_v22, %v1730_v19  ;;  %v1604_v35 = vadd.f32 %v1603_v32, %v1602_v59  ;;  %v1547_v59 = vmul.f32 0.125, %v1546_v21 }
 0x565   :  { %v1733_v52 = vrot.slane %v1732_v3, 2  ;;  %v1605_v42 = vrot.slane %v1604_v35, 1  ;;  %v1748_v32 = vmul.f32 0.01, %v1547_v59 }
 0x567   :  { %v1734_v24 = vadd.f32 %v1733_v52, %v1732_v3  ;;  %v1606_v38 = vadd.f32 %v1605_v42, %v1604_v35 }
 0x569   :  { %2175 = vpush %v1606_v38  ;;  %v1735_v28 = vrot.slane %v1734_v24, 1 }
 0x56a   :  { %2177 = vpush %v1621_v49 }
 0x56b   :  { %2179 = vpush %v1633_v45  ;;  %v1736_v61 = vadd.f32 %v1735_v28, %v1734_v24 }
 0x56c   :  { %2181 = vpush %v1646_v8 }
 0x56d   :  { %2183 = vpush %v1659_v47 }
 0x56e   :  { %2185 = vpush %v1682_v48 }
 0x56f   :  { %2187 = vpush %v1698_v60 }
 0x570   :  { %2189 = vpush %v1720_v0 }
 0x571   :  { %2191 = vpush %v1736_v61 }
 0x59a   :  { %s2176_s11 = spop %2175 }
 0x59b   :  { %s2178_s14 = spop %2177  ;;  %v1608_v15 = vstv %s2176_s11 }
 0x59c   :  { %v1623_v1 = vstv %s2178_s14  ;;  %s2180_s4 = spop %2179  ;;  %v1609_v11 = vadd.f32 %v1608_v15, %v1588_v41 }
 0x59d   :  { %v1635_v4 = vstv %s2180_s4  ;;  %s2182_s0 = spop %2181 }
 0x59e   :  { %v1636_v5 = vadd.f32 %v1635_v4, %v1623_v1  ;;  %s2184_s19 = spop %2183  ;;  %v1648_v6 = vstv %s2182_s0  ;;  %v1611_v18 = vmul.f32 0.0625, %v1609_v11 }
 0x59f   :  { %s2186_s21 = spop %2185  ;;  %v1661_v23 = vstv %s2184_s19 }
 0x5a0   :  { %v1649_v55 = vadd.f32 %v1648_v6, %v1636_v5  ;;  %v1684_v29 = vstv %s2186_s21  ;;  %s2188_s10 = spop %2187  ;;  %v1747_v19 = vadd.f32 %v1611_v18, %v1483_v58 }
 0x5a1   :  { %v1685_v17 = vmul.f32 0.0625, %v1684_v29  ;;  %v1700_v37 = vstv %s2188_s10  ;;  %s2190_s22 = spop %2189 }
 0x5a2   :  { %v1662_v9 = vadd.f32 %v1661_v23, %v1649_v55  ;;  %v1701_v2 = vmul.f32 0.0625, %v1700_v37  ;;  %v1722_v10 = vstv %s2190_s22  ;;  %s2192_s23 = spop %2191  ;;  %v1749_v33 = vadd.f32 %v1748_v32, %v1747_v19 }
 0x5a3   :  { %v1738_v12 = vstv %s2192_s23  ;;  %v1723_v51 = vmul.f32 0.0625, %v1722_v10 }
 0x5a4   :  { %v1663_v20 = vmul.f32 0.5, %v1662_v9  ;;  %v1702_v62 = vadd.f32 %v1701_v2, %v1685_v17  ;;  %v1739_v13 = vmul.f32 0.0625, %v1738_v12 }
 0x5a6   :  { %v1664_v14 = vmul.f32 0.125, %v1663_v20  ;;  %v1740_v36 = vadd.f32 %v1739_v13, %v1723_v51  ;;  %v1703_v56 = vmul.f32 0.5, %v1702_v62 }
 0x5a8   :  { %v1741_v50 = vmul.f32 0.5, %v1740_v36  ;;  %v1744_v30 = vmul.f32 0.1, %v1703_v56 }
 0x5aa   :  { %v1742_v25 = vadd.f32 %v1741_v50, %v1664_v14 }
 0x5ac   :  { %v1743_v57 = vmul.f32 0.0001, %v1742_v25 }
 0x5ae   :  { %v1745_v22 = vadd.f32 %v1744_v30, %v1743_v57 }
 0x5b0   :  { %v1746_v7 = vmul.f32 10.0, %v1745_v22 }
 0x5b2   :  { %v1750_v34 = vadd.f32 %v1749_v33, %v1746_v7 }
 0x5b4   :  { %1752 = vst.msk [vmem:[#allocation9] sm:$0x1] %vm1751_vm11, %v1750_v34 }
 0x5b5   :  { %2337 = shalt.err (!%p2334_p0)
}
 0x5b6   :  { %s3564_s29 = sld [smem:[#allocation46_spill]] }
 0x5bc   :  { %1762 = dma.vmem_to_hbm [thread:$0]  %s1760_s2, 16, %s3564_s29, [#allocation10]  }
 0x5bd   :  { %2348 = dma.done.wait [#allocation10], 16  }
 0x5be   :  { %2349 = vsyncadd [#allocation10], 4294967280 }
 0x5bf   :  { %1766 = vsyncpa [#allocation10], 1 }

</bundles_post_ra>
